<compile_context>
chip_gen: v7x
topology: tpu7x:2x2x1
jax: 0.10.0
libtpu: 0.0.40
codegen_flags: <defaults>
</compile_context>

<pallas_src>
import functools

import jax
import jax.numpy as jnp
from jax.experimental import pallas as pl
from jax.experimental.pallas import tpu as pltpu

_LANE = 128
_SUBLANE = 8


def _round_up(a, b):
    return (a + b - 1) // b * b


def _sum_kernel(scale_ref, bias_ref, x_ref, o_ref, acc_ref, *,
                hw_total, block_hw, num_j, fuse_finalize):
    # scale_ref, bias_ref: (1,) f32 scalars in SMEM (scale = w / (H*W)).
    # x_ref: (block_n, block_hw) tile in VMEM, native dtype (boundary blocks ragged).
    # o_ref: (block_n, 128) f32 output slab, resident across the reduction (j) axis.
    # acc_ref: (block_n, 1) f32 running-sum scratch.
    s = pl.program_id(1)
    j = pl.program_id(2)

    @pl.when(j == 0)
    def _init():
        acc_ref[...] = jnp.zeros_like(acc_ref)

    # Logical spatial block index and element offset of this tile.
    k = s * num_j + j
    start = k * block_hw

    @pl.when(start + block_hw <= hw_total)
    def _full_tile():
        acc_ref[...] += jnp.sum(x_ref[...].astype(jnp.float32),
                                axis=-1, keepdims=True)

    @pl.when(start + block_hw > hw_total)
    def _ragged_tile():
        # Boundary-block contents past H*W are unspecified -> mask them to zero.
        lane = jax.lax.broadcasted_iota(jnp.int32, (1, block_hw), 1)
        valid = (start + lane) < hw_total
        xf = jnp.where(valid, x_ref[...].astype(jnp.float32), 0.0)
        acc_ref[...] += jnp.sum(xf, axis=-1, keepdims=True)

    @pl.when(j == num_j - 1)
    def _finalize():
        if fuse_finalize:
            m = acc_ref[...] * scale_ref[0] + bias_ref[0]        # (block_n, 1)
            o_ref[...] = jnp.broadcast_to(jax.nn.sigmoid(m), o_ref.shape)
        else:
            # Raw partial sum; the (tiny) cross-split combine happens in the wrapper.
            o_ref[...] = jnp.broadcast_to(acc_ref[...], o_ref.shape)


def model_forward(x_nchw, weight, bias, *, max_block_bytes=4 * 1024 * 1024):
    """x_nchw: (N, 1, H, W) -> (N, 1, 1, 1) float32. Matches the torch Model."""
    N, C, H, W = x_nchw.shape
    assert C == 1, "module is Conv2d(1, 1, 1): single input channel"
    HW = H * W

    x = x_nchw.reshape(N, HW)                      # native dtype, no pad, no cast
    itemsize = x.dtype.itemsize
    sublane = max(_SUBLANE, 32 // itemsize)        # 8 (f32), 16 (bf16), 32 (int8)

    # Lane-aligned spatial tile first, then fill the byte budget with batch rows.
    budget_hw = max(_LANE, (max_block_bytes // (itemsize * sublane)) // _LANE * _LANE)
    block_hw = min(_round_up(HW, _LANE), budget_hw)
    budget_n = max(sublane,
                   (max_block_bytes // (itemsize * block_hw)) // sublane * sublane)
    block_n = min(_round_up(N, sublane), budget_n)

    n_tiles = pl.cdiv(N, block_n)
    j_total = pl.cdiv(HW, block_hw)
    # v7x has 2 TensorCores: keep >= 2 tiles on the "parallel" axes when possible.
    n_splits = 2 if (n_tiles < 2 and j_total >= 2) else 1
    num_j = pl.cdiv(j_total, n_splits)
    fuse_finalize = n_splits == 1

    def x_index_map(i, s, j):
        k = s * num_j + j
        # Clamp the split overhang block (its contribution is fully masked to zero).
        return (i, jnp.minimum(k, j_total - 1))

    x_spec_kwargs = {}
    if 2 <= n_tiles * n_splits * num_j <= 4:
        # Short pipeline: deepen buffering to hide the first-block DMA latency.
        x_spec_kwargs["pipeline_mode"] = pl.Buffered(3)
    x_spec = pl.BlockSpec((block_n, block_hw), x_index_map, **x_spec_kwargs)

    # mean(w*x + b) == sum(x) * (w / HW) + b   (mean is linear)
    w = weight.reshape(()).astype(jnp.float32)
    b = bias.reshape(()).astype(jnp.float32)
    scale = w / jnp.float32(HW)

    n_rows = n_tiles * block_n
    kernel = functools.partial(_sum_kernel, hw_total=HW, block_hw=block_hw,
                               num_j=num_j, fuse_finalize=fuse_finalize)

    out = pl.pallas_call(
        kernel,
        out_shape=jax.ShapeDtypeStruct((n_splits, n_rows, _LANE), jnp.float32),
        grid=(n_tiles, n_splits, num_j),
        in_specs=[
            pl.BlockSpec(memory_space=pltpu.MemorySpace.SMEM),
            pl.BlockSpec(memory_space=pltpu.MemorySpace.SMEM),
            x_spec,
        ],
        out_specs=pl.BlockSpec((None, block_n, _LANE), lambda i, s, j: (s, i, 0)),
        scratch_shapes=[pltpu.VMEM((block_n, 1), jnp.float32)],
        compiler_params=pltpu.CompilerParams(
            dimension_semantics=("parallel", "parallel", "arbitrary"),
            vmem_limit_bytes=48 * 1024 * 1024,
        ),
    )(scale.reshape(1), b.reshape(1), x)

    if fuse_finalize:
        res = out[0, :N, 0]                               # already sigmoid(affine)
    else:
        sums = jnp.sum(out[:, :N, 0], axis=0)             # combine the 2 splits
        res = jax.nn.sigmoid(sums * scale + b)
    return res.reshape(N, 1, 1, 1)


def _reference(x_nchw, weight, bias):
    x = x_nchw.astype(jnp.float32)
    w = weight.reshape(()).astype(jnp.float32)
    b = bias.reshape(()).astype(jnp.float32)
    return jax.nn.sigmoid(jnp.mean(x * w + b, axis=(2, 3), keepdims=True))


if __name__ == "__main__":
    key = jax.random.PRNGKey(0)
    k_w, k_b, k1, k2, k3, k4 = jax.random.split(key, 6)

    # Conv2d(1, 1, kernel_size=1) parameters: weight (1, 1, 1, 1), bias (1,).
    weight = jax.random.normal(k_w, (1, 1, 1, 1), dtype=jnp.float32) * 0.5
    bias = jax.random.normal(k_b, (1,), dtype=jnp.float32) * 0.1

    # 1) Spec shape (1,1,224,224): single full-image block, fused in-kernel finalize.
    x1 = jax.random.normal(k1, (1, 1, 224, 224), dtype=jnp.float32)
    o1 = model_forward(x1, weight, bias)
    jax.block_until_ready(o1)
    assert o1.shape == (1, 1, 1, 1)
    assert jnp.allclose(o1, _reference(x1, weight, bias), atol=1e-5, rtol=1e-5)

    # 2) bf16 input, multi-step reduction, 2-way parallel split, ragged tail mask.
    x2 = jax.random.normal(k2, (2, 1, 50, 50), dtype=jnp.float32).astype(jnp.bfloat16)
    o2 = model_forward(x2, weight, bias, max_block_bytes=4 * 1024)
    jax.block_until_ready(o2)
    assert o2.shape == (2, 1, 1, 1)
    assert jnp.allclose(o2, _reference(x2, weight, bias), atol=1e-5, rtol=1e-5)

    # 3) Odd tile count: split overhang (clamped, fully masked block) + Buffered(3).
    x3 = jax.random.normal(k3, (1, 1, 30, 40), dtype=jnp.float32)
    o3 = model_forward(x3, weight, bias, max_block_bytes=16 * 1024)
    jax.block_until_ready(o3)
    assert o3.shape == (1, 1, 1, 1)
    assert jnp.allclose(o3, _reference(x3, weight, bias), atol=1e-5, rtol=1e-5)

    # 4) Multiple batch tiles (ragged N) with fused finalize and a 2-step reduction.
    x4 = jax.random.normal(k4, (20, 1, 10, 30), dtype=jnp.float32)
    o4 = model_forward(x4, weight, bias, max_block_bytes=8 * 1024)
    jax.block_until_ready(o4)
    assert o4.shape == (20, 1, 1, 1)
    assert jnp.allclose(o4, _reference(x4, weight, bias), atol=1e-5, rtol=1e-5)

    print("KERNEL_OK")
</pallas_src>

<mosaic_0001>
module attributes {stable_mosaic.version = 11 : i64} {
  func.func @_sum_kernel(%arg0: i32, %arg1: i32, %arg2: i32, %arg3: memref<1xf32, #tpu.memory_space<smem>>, %arg4: memref<1xf32, #tpu.memory_space<smem>>, %arg5: memref<8x50176xf32, #tpu.memory_space<vmem>>, %arg6: memref<1x8x128xf32, #tpu.memory_space<vmem>>, %arg7: memref<8x1xf32, #tpu.memory_space<vmem>>) attributes {dimension_semantics = [#tpu.dimension_semantics<parallel>, #tpu.dimension_semantics<parallel>, #tpu.dimension_semantics<arbitrary>], iteration_bounds = array<i64: 1, 1, 1>, scalar_prefetch = 0 : i64, scratch_operands = 1 : i64, tpu.core_type = #tpu.core_type<tc>, window_params = [{transform_indices = @transform_0, window_bounds = array<i64: 1>}, {transform_indices = @transform_1, window_bounds = array<i64: 1>}, {transform_indices = @transform_2, window_bounds = array<i64: 8, 50176>}, {transform_indices = @transform_3, window_bounds = array<i64: 1, 8, 128>}]} {
    %c0_i32 = arith.constant 0 : i32
    %0 = arith.cmpi eq, %arg2, %c0_i32 : i32
    %1 = arith.extui %0 : i1 to i32
    %c0_i32_0 = arith.constant 0 : i32
    %2 = arith.cmpi ne, %1, %c0_i32_0 : i32
    scf.if %2 {
      %cst = arith.constant 0.000000e+00 : f32
      %17 = vector.broadcast %cst : f32 to vector<8x1xf32>
      %c0 = arith.constant 0 : index
      %c0_9 = arith.constant 0 : index
      %18 = vector.load %arg7[%c0, %c0_9] : memref<8x1xf32, #tpu.memory_space<vmem>>, vector<8x1xf32>
      tpu.vector_store %arg7[%c0, %c0_9], %17 {strides = array<i32>} : memref<8x1xf32, #tpu.memory_space<vmem>>, vector<8x1xf32>,
    } else {
    }
    %c1_i32 = arith.constant 1 : i32
    %3 = arith.muli %arg1, %c1_i32 : i32
    %4 = arith.addi %3, %arg2 : i32
    %c50176_i32 = arith.constant 50176 : i32
    %5 = arith.muli %4, %c50176_i32 : i32
    %c50176_i32_1 = arith.constant 50176 : i32
    %6 = arith.addi %5, %c50176_i32_1 : i32
    %c50176_i32_2 = arith.constant 50176 : i32
    %7 = arith.cmpi sle, %6, %c50176_i32_2 : i32
    %8 = arith.extui %7 : i1 to i32
    %c0_i32_3 = arith.constant 0 : i32
    %9 = arith.cmpi ne, %8, %c0_i32_3 : i32
    scf.if %9 {
      %c0 = arith.constant 0 : index
      %c0_9 = arith.constant 0 : index
      %17 = vector.load %arg7[%c0, %c0_9] : memref<8x1xf32, #tpu.memory_space<vmem>>, vector<8x1xf32>
      %c0_10 = arith.constant 0 : index
      %c0_11 = arith.constant 0 : index
      %18 = vector.load %arg5[%c0_10, %c0_11] : memref<8x50176xf32, #tpu.memory_space<vmem>>, vector<8x50176xf32>
      %cst = arith.constant dense<0.000000e+00> : vector<8xf32>
      %19 = vector.multi_reduction <add>, %18, %cst [1] : vector<8x50176xf32> to vector<8xf32>
      %20 = vector.shape_cast %19 : vector<8xf32> to vector<8x1xf32>
      %21 = arith.addf %17, %20 : vector<8x1xf32>
      %c0_12 = arith.constant 0 : index
      %c0_13 = arith.constant 0 : index
      %22 = vector.load %arg7[%c0_12, %c0_13] : memref<8x1xf32, #tpu.memory_space<vmem>>, vector<8x1xf32>
      tpu.vector_store %arg7[%c0_12, %c0_13], %21 {strides = array<i32>} : memref<8x1xf32, #tpu.memory_space<vmem>>, vector<8x1xf32>,
    } else {
    }
    %c50176_i32_4 = arith.constant 50176 : i32
    %10 = arith.addi %5, %c50176_i32_4 : i32
    %c50176_i32_5 = arith.constant 50176 : i32
    %11 = arith.cmpi sgt, %10, %c50176_i32_5 : i32
    %12 = arith.extui %11 : i1 to i32
    %c0_i32_6 = arith.constant 0 : i32
    %13 = arith.cmpi ne, %12, %c0_i32_6 : i32
    scf.if %13 {
      %17 = tpu.iota {dimensions = array<i32: 1>} : vector<1x50176xi32>
      %18 = vector.broadcast %5 : i32 to vector<1x50176xi32>
      %19 = arith.addi %18, %17 : vector<1x50176xi32>
      %c50176_i32_9 = arith.constant 50176 : i32
      %20 = vector.broadcast %c50176_i32_9 : i32 to vector<1x50176xi32>
      %21 = arith.cmpi slt, %19, %20 : vector<1x50176xi32>
      %c0 = arith.constant 0 : index
      %c0_10 = arith.constant 0 : index
      %22 = vector.load %arg5[%c0, %c0_10] : memref<8x50176xf32, #tpu.memory_space<vmem>>, vector<8x50176xf32>
      %cst = arith.constant 0.000000e+00 : f32
      %23 = vector.shape_cast %21 : vector<1x50176xi1> to vector<1x50176xi1>
      %24 = vector.broadcast %23 : vector<1x50176xi1> to vector<8x50176xi1>
      %25 = vector.broadcast %cst : f32 to vector<8x50176xf32>
      %26 = arith.select %24, %22, %25 : vector<8x50176xi1>, vector<8x50176xf32>
      %c0_11 = arith.constant 0 : index
      %c0_12 = arith.constant 0 : index
      %27 = vector.load %arg7[%c0_11, %c0_12] : memref<8x1xf32, #tpu.memory_space<vmem>>, vector<8x1xf32>
      %cst_13 = arith.constant dense<0.000000e+00> : vector<8xf32>
      %28 = vector.multi_reduction <add>, %26, %cst_13 [1] : vector<8x50176xf32> to vector<8xf32>
      %29 = vector.shape_cast %28 : vector<8xf32> to vector<8x1xf32>
      %30 = arith.addf %27, %29 : vector<8x1xf32>
      %c0_14 = arith.constant 0 : index
      %c0_15 = arith.constant 0 : index
      %31 = vector.load %arg7[%c0_14, %c0_15] : memref<8x1xf32, #tpu.memory_space<vmem>>, vector<8x1xf32>
      tpu.vector_store %arg7[%c0_14, %c0_15], %30 {strides = array<i32>} : memref<8x1xf32, #tpu.memory_space<vmem>>, vector<8x1xf32>,
    } else {
    }
    %c0_i32_7 = arith.constant 0 : i32
    %14 = arith.cmpi eq, %arg2, %c0_i32_7 : i32
    %15 = arith.extui %14 : i1 to i32
    %c0_i32_8 = arith.constant 0 : i32
    %16 = arith.cmpi ne, %15, %c0_i32_8 : i32
    scf.if %16 {
      %c0 = arith.constant 0 : index
      %c0_9 = arith.constant 0 : index
      %17 = vector.load %arg7[%c0, %c0_9] : memref<8x1xf32, #tpu.memory_space<vmem>>, vector<8x1xf32>
      %c0_10 = arith.constant 0 : index
      %18 = memref.load %arg3[%c0_10] : memref<1xf32, #tpu.memory_space<smem>>
      %19 = vector.broadcast %18 : f32 to vector<8x1xf32>
      %20 = arith.mulf %17, %19 : vector<8x1xf32>
      %c0_11 = arith.constant 0 : index
      %21 = memref.load %arg4[%c0_11] : memref<1xf32, #tpu.memory_space<smem>>
      %22 = vector.broadcast %21 : f32 to vector<8x1xf32>
      %23 = arith.addf %20, %22 : vector<8x1xf32>
      %24 = arith.negf %23 : vector<8x1xf32>
      %25 = math.exp %24 : vector<8x1xf32>
      %cst = arith.constant 1.000000e+00 : f32
      %26 = vector.broadcast %cst : f32 to vector<8x1xf32>
      %27 = arith.addf %26, %25 : vector<8x1xf32>
      %28 = arith.divf %26, %27 : vector<8x1xf32>
      %29 = vector.shape_cast %28 : vector<8x1xf32> to vector<8x1xf32>
      %30 = vector.broadcast %29 : vector<8x1xf32> to vector<8x128xf32>
      %c0_12 = arith.constant 0 : index
      %c0_13 = arith.constant 0 : index
      %c0_14 = arith.constant 0 : index
      %31 = vector.load %arg6[%c0_12, %c0_13, %c0_14] : memref<1x8x128xf32, #tpu.memory_space<vmem>>, vector<1x8x128xf32>
      %32 = vector.shape_cast %31 : vector<1x8x128xf32> to vector<8x128xf32>
      %33 = vector.shape_cast %30 : vector<8x128xf32> to vector<1x8x128xf32>
      tpu.vector_store %arg6[%c0_12, %c0_13, %c0_14], %33 {strides = array<i32>} : memref<1x8x128xf32, #tpu.memory_space<vmem>>, vector<1x8x128xf32>,
    } else {
    }
    return
  }
  func.func @transform_0(%arg0: i32, %arg1: i32, %arg2: i32) -> i32 {
    %c0_i32 = arith.constant 0 : i32
    %c0_i32_0 = arith.constant 0 : i32
    return %c0_i32 : i32
  }
  func.func @transform_1(%arg0: i32, %arg1: i32, %arg2: i32) -> i32 {
    %c0_i32 = arith.constant 0 : i32
    %c0_i32_0 = arith.constant 0 : i32
    return %c0_i32 : i32
  }
  func.func @transform_2(%arg0: i32, %arg1: i32, %arg2: i32) -> (i32, i32) {
    %c1_i32 = arith.constant 1 : i32
    %0 = arith.muli %arg1, %c1_i32 : i32
    %1 = arith.addi %0, %arg2 : i32
    %c0_i32 = arith.constant 0 : i32
    %2 = arith.minsi %1, %c0_i32 : i32
    %c0_i32_0 = arith.constant 0 : i32
    return %arg0, %2 : i32, i32
  }
  func.func @transform_3(%arg0: i32, %arg1: i32, %arg2: i32) -> (i32, i32, i32) {
    %c0_i32 = arith.constant 0 : i32
    %c0_i32_0 = arith.constant 0 : i32
    return %arg1, %arg0, %c0_i32 : i32, i32, i32
  }
}

</mosaic_0001>

<bundles_post_ra>
// kernel: tpu_custom_call.1
= control target key start
LH: loop header
LB: loop body
LE: loop exit
PB: predicated region body
PF: predicated region fallthrough
CT: control target
= control target key end

     0   :  { %10 = vsyncpa [#allocation6], 0  ;;  %s20417_s0 = inlined_call_operand.<no memory space> [shape: f32[1], index: 0, kind: input, shape index: {}]   ;;  %s20418_s1 = inlined_call_operand.<no memory space> [shape: f32[1], index: 1, kind: input, shape index: {}]   ;;  %s20419_s2 = inlined_call_operand.hbm [shape: f32[1,50176], index: 2, kind: input, shape index: {}]   ;;  %s20420_s3 = inlined_call_operand.hbm [shape: f32[1,8,128], index: 3, kind: output, shape index: {}]  }
   0x1   :  { %11 = vsyncpa [#allocation7], 0 }
   0x2   :  { %24 = vsyncadd [#allocation6], 43904  ;;  %s19574_s12 = smov [#allocation5]   ;;  %s19526_s16 = scalar_lea.hbm %s20419_s2, 6272 }
   0x3   :  { %s27_s13 = sshll.u32 %s19574_s12, 4  ;;  %p19527_p0 = scmp.ne.s32.totalorder %s20419_s2, %s19526_s16  ;;  %s28_s13 = int_to_ptr.vmem [resolvable:$true] %s27_s13 }
   0x4   :  { %p19530_p1 = scmp.lt.u32.totalorder %s19526_s16, %s20419_s2 }
   0x6   :  { %p19532_p2 = pnand %p19530_p1, %p19527_p0 }
   0x8   :  { %19535 = shalt.err (!%p19532_p2)
}
   0x9   :  { %s19536_s21 = scalar_lea.vmem %s28_s13, 6272  ;;  %s19540_s22 = scalar_lea.vmem %s28_s13, 50176 }
   0xa   :  { %p19537_p3 = scmp.ne.s32.totalorder %s28_s13, %s19536_s21  ;;  %p19541_p4 = scmp.lt.s32.totalorder %s28_s13, %s28_s13 }
   0xb   :  { %p19542_p5 = scmp.lt.s32.totalorder %s19540_s22, %s19536_s21 }
   0xd   :  { %p19543_p6 = por %p19542_p5, %p19541_p4 }
   0xf   :  { %p19544_p7 = pnand %p19543_p6, %p19537_p3 }
  0x11   :  { %19547 = shalt.err (!%p19544_p7)
}
  0x12   :  { %s19575_s23 = smov 6272   ;;  %s19576_s24 = smov 392  }
  0x13   :  { %33 = dma.hbm_to_vmem [thread:$0]  %s20419_s2, 6272, %s28_s13, [#allocation6], %s19575_s23, %s19575_s23, %s19576_s24  }
  0x14   :  { %19570 = dma.done.wait [#allocation6], 50176  }
  0x15   :  { %19571 = vsyncadd [#allocation6], 4294917120  ;;  %v19577_v0 = vmov 1966171168   ;;  %v850_v2 = vlaneseq  ;;  %v18934_v5 = vld [vmem:[#allocation5] ss:$392 sps:$4 sm:$0xff]  }
  0x16   :  { %v848_v1 = vunpack.c.l.s4 %v19577_v0  ;;  %v18937_v6 = vld [vmem:[#allocation5 + $0x310] ss:$392 sps:$4 sm:$0xff]   ;;  %v18940_v7 = vld [vmem:[#allocation5 + $0x620] ss:$392 sps:$4 sm:$0xff]   ;;  %v18936_v14 = vld [vmem:[#allocation5 + $0x4] ss:$392 sps:$4 sm:$0xff]  }
  0x17   :  { %v851_v4 = vshrl.u32 %v850_v2, 7  ;;  %v18943_v8 = vld [vmem:[#allocation5 + $0x930] ss:$392 sps:$4 sm:$0xff]   ;;  %v18939_v15 = vld [vmem:[#allocation5 + $0x314] ss:$392 sps:$4 sm:$0xff]   ;;  %vm45_vm0 = vcmask 7168  }
  0x18   :  { %v849_v3 = vunpack.c.0.s8 %v848_v1  ;;  %v18942_v20 = vld [vmem:[#allocation5 + $0x624] ss:$392 sps:$4 sm:$0xff]   ;;  %v18945_v21 = vld [vmem:[#allocation5 + $0x934] ss:$392 sps:$4 sm:$0xff]   ;;  %v18946_v33 = vld [vmem:[#allocation5 + $0x8] ss:$392 sps:$4 sm:$0xff]  }
  0x19   :  { %v18949_v35 = vld [vmem:[#allocation5 + $0x318] ss:$392 sps:$4 sm:$0xff]   ;;  %v18952_v36 = vld [vmem:[#allocation5 + $0x628] ss:$392 sps:$4 sm:$0xff]   ;;  %v18948_v51 = vld [vmem:[#allocation5 + $0xc] ss:$392 sps:$4 sm:$0xff]  }
  0x1a   :  { %v19613_v9 = vsub.s32 %v849_v3, %v851_v4  ;;  %v18955_v37 = vld [vmem:[#allocation5 + $0x938] ss:$392 sps:$4 sm:$0xff]   ;;  %v18951_v52 = vld [vmem:[#allocation5 + $0x31c] ss:$392 sps:$4 sm:$0xff]   ;;  %v18954_v53 = vld [vmem:[#allocation5 + $0x62c] ss:$392 sps:$4 sm:$0xff]  }
  0x1b   :  { %v18957_v54 = vld [vmem:[#allocation5 + $0x93c] ss:$392 sps:$4 sm:$0xff]   ;;  %s19580_s30 = smov [#allocation8]  }
  0x1c   :  { %v853_v10 = vrot.slane %v18934_v5, %v19613_v9  ;;  %v867_v11 = vrot.slane %v18937_v6, %v19613_v9  ;;  %v881_v12 = vrot.slane %v18940_v7, %v19613_v9  ;;  %v895_v13 = vrot.slane %v18943_v8, %v19613_v9  ;;  %s18914_s4 = sshll.u32 %s19580_s30, 4  ;;  %s18915_s4 = int_to_ptr.vmem [resolvable:$true] %s18914_s4 }
  0x1d   :  { %v860_v22 = vrot.slane %v18936_v14, %v19613_v9  ;;  %v874_v23 = vrot.slane %v18939_v15, %v19613_v9  ;;  %v888_v28 = vrot.slane %v18942_v20, %v19613_v9  ;;  %v902_v29 = vrot.slane %v18945_v21, %v19613_v9  ;;  %v18958_v14 = vld [vmem:[#allocation5 + $0x10] ss:$392 sps:$4 sm:$0xff]   ;;  %v18961_v15 = vld [vmem:[#allocation5 + $0x320] ss:$392 sps:$4 sm:$0xff]   ;;  %p19553_p9 = scmp.lt.s32.totalorder %s18915_s4, %s18915_s4 }
  0x1e   :  { %v903_v16 = vcombine.low %v853_v10, %v867_v11  ;;  %v904_v17 = vcombine.high %v853_v10, %v867_v11  ;;  %v907_v18 = vcombine.low %v881_v12, %v895_v13  ;;  %v908_v19 = vcombine.high %v881_v12, %v895_v13 }
  0x1f   :  { %v905_v30 = vcombine.low %v860_v22, %v874_v23  ;;  %v909_v34 = vcombine.low %v888_v28, %v902_v29  ;;  %v906_v38 = vcombine.high %v860_v22, %v874_v23  ;;  %v910_v39 = vcombine.high %v888_v28, %v902_v29 }
  0x20   :  { %v917_v24 = vrot.slane %v903_v16, %v19613_v9  ;;  %v931_v25 = vrot.slane %v904_v17, %v19613_v9  ;;  %v945_v26 = vrot.slane %v907_v18, %v19613_v9  ;;  %v959_v27 = vrot.slane %v908_v19, %v19613_v9  ;;  %v18964_v17 = vld [vmem:[#allocation5 + $0x630] ss:$392 sps:$4 sm:$0xff]   ;;  %v18967_v18 = vld [vmem:[#allocation5 + $0x940] ss:$392 sps:$4 sm:$0xff]  }
  0x21   :  { %v924_v40 = vrot.slane %v905_v30, %v19613_v9  ;;  %v989_v42 = vrot.slane %v18946_v33, %v19613_v9  ;;  %v952_v44 = vrot.slane %v909_v34, %v19613_v9  ;;  %v1003_v45 = vrot.slane %v18949_v35, %v19613_v9  ;;  %v18960_v35 = vld [vmem:[#allocation5 + $0x14] ss:$392 sps:$4 sm:$0xff]  }
  0x22   :  { %v967_v31 = vcombine.low %v917_v24, %v945_v26  ;;  %v971_v32 = vcombine.low %v931_v25, %v959_v27  ;;  %v968_v41 = vcombine.high %v917_v24, %v945_v26  ;;  %v1017_v46 = vrot.slane %v18952_v36, %v19613_v9 }
  0x23   :  { %v1031_v47 = vrot.slane %v18955_v37, %v19613_v9  ;;  %v938_v48 = vrot.slane %v906_v38, %v19613_v9  ;;  %v966_v49 = vrot.slane %v910_v39, %v19613_v9  ;;  %v972_v50 = vcombine.high %v931_v25, %v959_v27  ;;  %v18963_v37 = vld [vmem:[#allocation5 + $0x324] ss:$392 sps:$4 sm:$0xff]   ;;  %v18966_v38 = vld [vmem:[#allocation5 + $0x634] ss:$392 sps:$4 sm:$0xff]  }
  0x24   :  { %v7895_v43 = vadd.f32 %v971_v32, %v967_v31  ;;  %v969_v56 = vcombine.low %v924_v40, %v952_v44  ;;  %v1039_v57 = vcombine.low %v989_v42, %v1003_v45  ;;  %v1040_v60 = vcombine.high %v989_v42, %v1003_v45  ;;  %v18969_v39 = vld [vmem:[#allocation5 + $0x944] ss:$392 sps:$4 sm:$0xff]  }
  0x25   :  { %v1043_v58 = vcombine.low %v1017_v46, %v1031_v47  ;;  %v973_v59 = vcombine.low %v938_v48, %v966_v49  ;;  %v1044_v61 = vcombine.high %v1017_v46, %v1031_v47  ;;  %v996_v63 = vrot.slane %v18948_v51, %v19613_v9 }
  0x26   :  { %v7896_v55 = vadd.f32 %v7895_v43, %v968_v41  ;;  %v1010_v0 = vrot.slane %v18951_v52, %v19613_v9  ;;  %v1024_v1 = vrot.slane %v18954_v53, %v19613_v9  ;;  %v1038_v2 = vrot.slane %v18957_v54, %v19613_v9 }
  0x27   :  { %v970_v3 = vcombine.high %v924_v40, %v952_v44  ;;  %v1053_v4 = vrot.slane %v1039_v57, %v19613_v9  ;;  %v1081_v5 = vrot.slane %v1043_v58, %v19613_v9  ;;  %v974_v7 = vcombine.high %v938_v48, %v966_v49 }
  0x28   :  { %v7897_v62 = vadd.f32 %v7896_v55, %v972_v50  ;;  %v1067_v8 = vrot.slane %v1040_v60, %v19613_v9  ;;  %v1095_v10 = vrot.slane %v1044_v61, %v19613_v9  ;;  %v1041_v12 = vcombine.low %v996_v63, %v1010_v0 }
  0x29   :  { %v1045_v13 = vcombine.low %v1024_v1, %v1038_v2  ;;  %v1103_v16 = vcombine.low %v1053_v4, %v1081_v5  ;;  %v1042_v20 = vcombine.high %v996_v63, %v1010_v0  ;;  %v1046_v21 = vcombine.high %v1024_v1, %v1038_v2  ;;  %v18973_v63 = vld [vmem:[#allocation5 + $0x328] ss:$392 sps:$4 sm:$0xff]   ;;  %v18976_v1 = vld [vmem:[#allocation5 + $0x638] ss:$392 sps:$4 sm:$0xff]  }
  0x2a   :  { %v7898_v6 = vadd.f32 %v7897_v62, %v969_v56  ;;  %v1107_v22 = vcombine.low %v1067_v8, %v1095_v10  ;;  %v1060_v24 = vrot.slane %v1041_v12, %v19613_v9  ;;  %v1125_v26 = vrot.slane %v18958_v14, %v19613_v9  ;;  %v18970_v62 = vld [vmem:[#allocation5 + $0x18] ss:$392 sps:$4 sm:$0xff]   ;;  %v18979_v2 = vld [vmem:[#allocation5 + $0x948] ss:$392 sps:$4 sm:$0xff]  }
  0x2b   :  { %v1088_v25 = vrot.slane %v1045_v13, %v19613_v9  ;;  %v1139_v27 = vrot.slane %v18961_v15, %v19613_v9  ;;  %v1104_v28 = vcombine.high %v1053_v4, %v1081_v5  ;;  %v1153_v29 = vrot.slane %v18964_v17, %v19613_v9 }
  0x2c   :  { %v7899_v11 = vadd.f32 %v7898_v6, %v973_v59  ;;  %v1167_v30 = vrot.slane %v18967_v18, %v19613_v9  ;;  %v1074_v32 = vrot.slane %v1042_v20, %v19613_v9  ;;  %v1102_v33 = vrot.slane %v1046_v21, %v19613_v9  ;;  %v18972_v20 = vld [vmem:[#allocation5 + $0x1c] ss:$392 sps:$4 sm:$0xff]  }
  0x2d   :  { %v1108_v34 = vcombine.high %v1067_v8, %v1095_v10  ;;  %v1105_v40 = vcombine.low %v1060_v24, %v1088_v25  ;;  %v1175_v41 = vcombine.low %v1125_v26, %v1139_v27  ;;  %v1176_v45 = vcombine.high %v1125_v26, %v1139_v27 }
  0x2e   :  { %v7900_v19 = vadd.f32 %v7899_v11, %v970_v3  ;;  %v1179_v42 = vcombine.low %v1153_v29, %v1167_v30  ;;  %v1109_v44 = vcombine.low %v1074_v32, %v1102_v33  ;;  %v1180_v46 = vcombine.high %v1153_v29, %v1167_v30 }
  0x2f   :  { %v1132_v48 = vrot.slane %v18960_v35, %v19613_v9  ;;  %v1146_v49 = vrot.slane %v18963_v37, %v19613_v9  ;;  %v1160_v50 = vrot.slane %v18966_v38, %v19613_v9  ;;  %v1174_v51 = vrot.slane %v18969_v39, %v19613_v9 }
  0x30   :  { %v7901_v23 = vadd.f32 %v7900_v19, %v974_v7  ;;  %v1106_v52 = vcombine.high %v1060_v24, %v1088_v25  ;;  %v1189_v53 = vrot.slane %v1175_v41, %v19613_v9  ;;  %v1217_v54 = vrot.slane %v1179_v42, %v19613_v9  ;;  %v18981_v24 = vld [vmem:[#allocation5 + $0x94c] ss:$392 sps:$4 sm:$0xff]  }
  0x31   :  { %v1110_v56 = vcombine.high %v1074_v32, %v1102_v33  ;;  %v1203_v57 = vrot.slane %v1176_v45, %v19613_v9  ;;  %v1231_v58 = vrot.slane %v1180_v46, %v19613_v9  ;;  %v1177_v60 = vcombine.low %v1132_v48, %v1146_v49 }
  0x32   :  { %v7902_v31 = vadd.f32 %v7901_v23, %v1103_v16  ;;  %v1181_v61 = vcombine.low %v1160_v50, %v1174_v51  ;;  %v1239_v0 = vcombine.low %v1189_v53, %v1217_v54  ;;  %v1178_v4 = vcombine.high %v1132_v48, %v1146_v49  ;;  %v18978_v23 = vld [vmem:[#allocation5 + $0x63c] ss:$392 sps:$4 sm:$0xff]   ;;  %v18985_v48 = vld [vmem:[#allocation5 + $0x330] ss:$392 sps:$4 sm:$0xff]  }
  0x33   :  { %v1182_v5 = vcombine.high %v1160_v50, %v1174_v51  ;;  %v1243_v6 = vcombine.low %v1203_v57, %v1231_v58  ;;  %v1196_v8 = vrot.slane %v1177_v60, %v19613_v9  ;;  %v1261_v11 = vrot.slane %v18970_v62, %v19613_v9  ;;  %v18988_v50 = vld [vmem:[#allocation5 + $0x640] ss:$392 sps:$4 sm:$0xff]   ;;  %v18991_v51 = vld [vmem:[#allocation5 + $0x950] ss:$392 sps:$4 sm:$0xff]  }
  0x34   :  { %v7903_v36 = vadd.f32 %v7902_v31, %v1107_v22  ;;  %v1224_v10 = vrot.slane %v1181_v61, %v19613_v9  ;;  %v1275_v12 = vrot.slane %v18973_v63, %v19613_v9  ;;  %v1240_v13 = vcombine.high %v1189_v53, %v1217_v54  ;;  %v18975_v22 = vld [vmem:[#allocation5 + $0x32c] ss:$392 sps:$4 sm:$0xff]  }
  0x35   :  { %v1289_v14 = vrot.slane %v18976_v1, %v19613_v9  ;;  %v1303_v15 = vrot.slane %v18979_v2, %v19613_v9  ;;  %v1210_v17 = vrot.slane %v1178_v4, %v19613_v9  ;;  %v1238_v18 = vrot.slane %v1182_v5, %v19613_v9  ;;  %v18984_v4 = vld [vmem:[#allocation5 + $0x24] ss:$392 sps:$4 sm:$0xff]  }
  0x36   :  { %v7904_v43 = vadd.f32 %v7903_v36, %v1104_v28  ;;  %v1244_v19 = vcombine.high %v1203_v57, %v1231_v58  ;;  %v1241_v25 = vcombine.low %v1196_v8, %v1224_v10  ;;  %v1311_v26 = vcombine.low %v1261_v11, %v1275_v12 }
  0x37   :  { %v1315_v27 = vcombine.low %v1289_v14, %v1303_v15  ;;  %v1245_v29 = vcombine.low %v1210_v17, %v1238_v18  ;;  %v1312_v30 = vcombine.high %v1261_v11, %v1275_v12  ;;  %v1316_v31 = vcombine.high %v1289_v14, %v1303_v15 }
  0x38   :  { %v7905_v47 = vadd.f32 %v7904_v43, %v1108_v34  ;;  %v1268_v33 = vrot.slane %v18972_v20, %v19613_v9  ;;  %v1282_v34 = vrot.slane %v18975_v22, %v19613_v9  ;;  %v1296_v35 = vrot.slane %v18978_v23, %v19613_v9 }
  0x39   :  { %v1310_v36 = vrot.slane %v18981_v24, %v19613_v9  ;;  %v1242_v37 = vcombine.high %v1196_v8, %v1224_v10  ;;  %v1325_v38 = vrot.slane %v1311_v26, %v19613_v9  ;;  %v1353_v39 = vrot.slane %v1315_v27, %v19613_v9  ;;  %v18993_v8 = vld [vmem:[#allocation5 + $0x954] ss:$392 sps:$4 sm:$0xff]  }
  0x3a   :  { %v7906_v55 = vadd.f32 %v7905_v47, %v1105_v40  ;;  %v1246_v41 = vcombine.high %v1210_v17, %v1238_v18  ;;  %v1339_v42 = vrot.slane %v1312_v30, %v19613_v9  ;;  %v1367_v43 = vrot.slane %v1316_v31, %v19613_v9  ;;  %v18982_v47 = vld [vmem:[#allocation5 + $0x20] ss:$392 sps:$4 sm:$0xff]  }
  0x3b   :  { %v1313_v45 = vcombine.low %v1268_v33, %v1282_v34  ;;  %v1317_v46 = vcombine.low %v1296_v35, %v1310_v36  ;;  %v1375_v49 = vcombine.low %v1325_v38, %v1353_v39  ;;  %v1314_v53 = vcombine.high %v1268_v33, %v1282_v34  ;;  %v18997_v33 = vld [vmem:[#allocation5 + $0x338] ss:$392 sps:$4 sm:$0xff]  }
  0x3c   :  { %v7907_v59 = vadd.f32 %v7906_v55, %v1109_v44  ;;  %v1318_v54 = vcombine.high %v1296_v35, %v1310_v36  ;;  %v1379_v55 = vcombine.low %v1339_v42, %v1367_v43  ;;  %v1411_v60 = vrot.slane %v18985_v48, %v19613_v9  ;;  %v19000_v35 = vld [vmem:[#allocation5 + $0x648] ss:$392 sps:$4 sm:$0xff]   ;;  %v19003_v36 = vld [vmem:[#allocation5 + $0x958] ss:$392 sps:$4 sm:$0xff]  }
  0x3d   :  { %v1332_v57 = vrot.slane %v1313_v45, %v19613_v9  ;;  %v1360_v58 = vrot.slane %v1317_v46, %v19613_v9  ;;  %v1376_v61 = vcombine.high %v1325_v38, %v1353_v39  ;;  %v1425_v62 = vrot.slane %v18988_v50, %v19613_v9 }
  0x3e   :  { %v7908_v3 = vadd.f32 %v7907_v59, %v1106_v52  ;;  %v1397_v59 = vrot.slane %v18982_v47, %v19613_v9  ;;  %v1439_v63 = vrot.slane %v18991_v51, %v19613_v9  ;;  %v1346_v1 = vrot.slane %v1314_v53, %v19613_v9  ;;  %v18996_v53 = vld [vmem:[#allocation5 + $0x2c] ss:$392 sps:$4 sm:$0xff]  }
  0x3f   :  { %v1374_v2 = vrot.slane %v1318_v54, %v19613_v9  ;;  %v1377_v10 = vcombine.low %v1332_v57, %v1360_v58  ;;  %v1404_v18 = vrot.slane %v18984_v4, %v19613_v9  ;;  %v1378_v22 = vcombine.high %v1332_v57, %v1360_v58  ;;  %v19005_v57 = vld [vmem:[#allocation5 + $0x95c] ss:$392 sps:$4 sm:$0xff]  }
  0x40   :  { %v7909_v7 = vadd.f32 %v7908_v3, %v1110_v56  ;;  %v1380_v3 = vcombine.high %v1339_v42, %v1367_v43  ;;  %v1447_v11 = vcombine.low %v1397_v59, %v1411_v60  ;;  %v1451_v12 = vcombine.low %v1425_v62, %v1439_v63 }
  0x41   :  { %v1381_v14 = vcombine.low %v1346_v1, %v1374_v2  ;;  %v1448_v15 = vcombine.high %v1397_v59, %v1411_v60  ;;  %v1382_v26 = vcombine.high %v1346_v1, %v1374_v2  ;;  %v1547_v45 = vrot.slane %v18997_v33, %v19613_v9 }
  0x42   :  { %v7910_v16 = vadd.f32 %v7909_v7, %v1239_v0  ;;  %v18990_v7 = vld [vmem:[#allocation5 + $0x644] ss:$392 sps:$4 sm:$0xff]   ;;  %v1461_v23 = vrot.slane %v1447_v11, %v19613_v9  ;;  %v1489_v24 = vrot.slane %v1451_v12, %v19613_v9  ;;  %v1561_v47 = vrot.slane %v19000_v35, %v19613_v9 }
  0x43   :  { %v1432_v20 = vrot.slane %v18990_v7, %v19613_v9  ;;  %v1475_v27 = vrot.slane %v1448_v15, %v19613_v9  ;;  %v1575_v48 = vrot.slane %v19003_v36, %v19613_v9  ;;  %v1540_v2 = vrot.slane %v18996_v53, %v19613_v9 }
  0x44   :  { %v7911_v21 = vadd.f32 %v7910_v16, %v1243_v6  ;;  %v18987_v6 = vld [vmem:[#allocation5 + $0x334] ss:$392 sps:$4 sm:$0xff]   ;;  %v1452_v16 = vcombine.high %v1425_v62, %v1439_v63  ;;  %v1511_v34 = vcombine.low %v1461_v23, %v1489_v24  ;;  %v1512_v46 = vcombine.high %v1461_v23, %v1489_v24 }
  0x45   :  { %v1587_v60 = vcombine.low %v1561_v47, %v1575_v48 }
  0x46   :  { %v7912_v28 = vadd.f32 %v7911_v21, %v1240_v13  ;;  %v1446_v21 = vrot.slane %v18993_v8, %v19613_v9 }
  0x47   :  { %v1625_v8 = vrot.slane %v1587_v60, %v19613_v9 }
  0x48   :  { %v7913_v32 = vadd.f32 %v7912_v28, %v1244_v19  ;;  %v1418_v19 = vrot.slane %v18987_v6, %v19613_v9  ;;  %v1503_v28 = vrot.slane %v1452_v16, %v19613_v9  ;;  %v1453_v31 = vcombine.low %v1432_v20, %v1446_v21 }
  0x49   :  { %v1454_v39 = vcombine.high %v1432_v20, %v1446_v21  ;;  %v19012_v20 = vld [vmem:[#allocation5 + $0x650] ss:$392 sps:$4 sm:$0xff]   ;;  %v19015_v21 = vld [vmem:[#allocation5 + $0x960] ss:$392 sps:$4 sm:$0xff]  }
  0x4a   :  { %v7914_v40 = vadd.f32 %v7913_v32, %v1241_v25  ;;  %v1449_v30 = vcombine.low %v1404_v18, %v1418_v19  ;;  %v18994_v32 = vld [vmem:[#allocation5 + $0x28] ss:$392 sps:$4 sm:$0xff]   ;;  %v1450_v38 = vcombine.high %v1404_v18, %v1418_v19  ;;  %v1496_v43 = vrot.slane %v1453_v31, %v19613_v9 }
  0x4b   :  { %v1510_v51 = vrot.slane %v1454_v39, %v19613_v9  ;;  %v19009_v18 = vld [vmem:[#allocation5 + $0x340] ss:$392 sps:$4 sm:$0xff]   ;;  %v1711_v33 = vrot.slane %v19015_v21, %v19613_v9 }
  0x4c   :  { %v7915_v44 = vadd.f32 %v7914_v40, %v1245_v29  ;;  %v1515_v40 = vcombine.low %v1475_v27, %v1503_v28  ;;  %v1468_v42 = vrot.slane %v1449_v30, %v19613_v9  ;;  %v1482_v50 = vrot.slane %v1450_v38, %v19613_v9  ;;  %v19008_v38 = vld [vmem:[#allocation5 + $0x34] ss:$392 sps:$4 sm:$0xff]  }
  0x4d   :  { %v1683_v30 = vrot.slane %v19009_v18, %v19613_v9 }
  0x4e   :  { %v7916_v52 = vadd.f32 %v7915_v44, %v1242_v37  ;;  %v1533_v44 = vrot.slane %v18994_v32, %v19613_v9  ;;  %v1513_v58 = vcombine.low %v1468_v42, %v1496_v43  ;;  %v1517_v62 = vcombine.low %v1482_v50, %v1510_v51 }
  0x4f   :  { %v1514_v6 = vcombine.high %v1468_v42, %v1496_v43  ;;  %v1518_v11 = vcombine.high %v1482_v50, %v1510_v51  ;;  %v1697_v32 = vrot.slane %v19012_v20, %v19613_v9  ;;  %v19017_v42 = vld [vmem:[#allocation5 + $0x964] ss:$392 sps:$4 sm:$0xff]   ;;  %v1676_v51 = vrot.slane %v19008_v38, %v19613_v9 }
  0x50   :  { %v7917_v56 = vadd.f32 %v7916_v52, %v1246_v41  ;;  %v1516_v52 = vcombine.high %v1475_v27, %v1503_v28  ;;  %v1583_v59 = vcombine.low %v1533_v44, %v1547_v45  ;;  %v1584_v63 = vcombine.high %v1533_v44, %v1547_v45 }
  0x51   :  { %v1723_v45 = vcombine.low %v1697_v32, %v1711_v33 }
  0x52   :  { %v7918_v0 = vadd.f32 %v7917_v56, %v1375_v49  ;;  %v19002_v56 = vld [vmem:[#allocation5 + $0x64c] ss:$392 sps:$4 sm:$0xff]   ;;  %v1597_v7 = vrot.slane %v1583_v59, %v19613_v9  ;;  %v1611_v12 = vrot.slane %v1584_v63, %v19613_v9 }
  0x53   :  { %v1568_v4 = vrot.slane %v19002_v56, %v19613_v9 }
  0x54   :  { %v7919_v5 = vadd.f32 %v7918_v0, %v1379_v55  ;;  %v18999_v55 = vld [vmem:[#allocation5 + $0x33c] ss:$392 sps:$4 sm:$0xff]   ;;  %v1588_v0 = vcombine.high %v1561_v47, %v1575_v48  ;;  %v1647_v19 = vcombine.low %v1597_v7, %v1625_v8  ;;  %v1648_v31 = vcombine.high %v1597_v7, %v1625_v8 }
  0x56   :  { %v7920_v13 = vadd.f32 %v7919_v5, %v1376_v61  ;;  %v1582_v5 = vrot.slane %v19005_v57, %v19613_v9  ;;  %v1761_v57 = vrot.slane %v1723_v45, %v19613_v9 }
  0x58   :  { %v7921_v17 = vadd.f32 %v7920_v13, %v1380_v3  ;;  %v1554_v3 = vrot.slane %v18999_v55, %v19613_v9  ;;  %v1639_v13 = vrot.slane %v1588_v0, %v19613_v9  ;;  %v1589_v16 = vcombine.low %v1568_v4, %v1582_v5 }
  0x59   :  { %v1590_v24 = vcombine.high %v1568_v4, %v1582_v5  ;;  %v19024_v4 = vld [vmem:[#allocation5 + $0x658] ss:$392 sps:$4 sm:$0xff]   ;;  %v19027_v5 = vld [vmem:[#allocation5 + $0x968] ss:$392 sps:$4 sm:$0xff]  }
  0x5a   :  { %v7922_v25 = vadd.f32 %v7921_v17, %v1377_v10  ;;  %v1585_v15 = vcombine.low %v1540_v2, %v1554_v3  ;;  %v19006_v17 = vld [vmem:[#allocation5 + $0x30] ss:$392 sps:$4 sm:$0xff]   ;;  %v1586_v23 = vcombine.high %v1540_v2, %v1554_v3  ;;  %v1632_v28 = vrot.slane %v1589_v16, %v19613_v9 }
  0x5b   :  { %v1646_v36 = vrot.slane %v1590_v24, %v19613_v9  ;;  %v19021_v2 = vld [vmem:[#allocation5 + $0x348] ss:$392 sps:$4 sm:$0xff]   ;;  %v1847_v18 = vrot.slane %v19027_v5, %v19613_v9 }
  0x5c   :  { %v7923_v29 = vadd.f32 %v7922_v25, %v1381_v14  ;;  %v1651_v25 = vcombine.low %v1611_v12, %v1639_v13  ;;  %v1604_v27 = vrot.slane %v1585_v15, %v19613_v9  ;;  %v1618_v35 = vrot.slane %v1586_v23, %v19613_v9  ;;  %v19020_v23 = vld [vmem:[#allocation5 + $0x3c] ss:$392 sps:$4 sm:$0xff]  }
  0x5d   :  { %v1819_v15 = vrot.slane %v19021_v2, %v19613_v9 }
  0x5e   :  { %v7924_v37 = vadd.f32 %v7923_v29, %v1378_v22  ;;  %v1669_v29 = vrot.slane %v19006_v17, %v19613_v9  ;;  %v1649_v43 = vcombine.low %v1604_v27, %v1632_v28  ;;  %v1653_v47 = vcombine.low %v1618_v35, %v1646_v36 }
  0x5f   :  { %v1650_v55 = vcombine.high %v1604_v27, %v1632_v28  ;;  %v1654_v59 = vcombine.high %v1618_v35, %v1646_v36  ;;  %v1833_v17 = vrot.slane %v19024_v4, %v19613_v9  ;;  %v19029_v27 = vld [vmem:[#allocation5 + $0x96c] ss:$392 sps:$4 sm:$0xff]   ;;  %v1812_v36 = vrot.slane %v19020_v23, %v19613_v9 }
  0x60   :  { %v7925_v41 = vadd.f32 %v7924_v37, %v1382_v26  ;;  %v1652_v37 = vcombine.high %v1611_v12, %v1639_v13  ;;  %v1719_v44 = vcombine.low %v1669_v29, %v1683_v30  ;;  %v1720_v48 = vcombine.high %v1669_v29, %v1683_v30 }
  0x61   :  { %v1859_v30 = vcombine.low %v1833_v17, %v1847_v18 }
  0x62   :  { %v7926_v49 = vadd.f32 %v7925_v41, %v1511_v34  ;;  %v19014_v41 = vld [vmem:[#allocation5 + $0x654] ss:$392 sps:$4 sm:$0xff]   ;;  %v1733_v56 = vrot.slane %v1719_v44, %v19613_v9  ;;  %v1747_v60 = vrot.slane %v1720_v48, %v19613_v9 }
  0x63   :  { %v1704_v53 = vrot.slane %v19014_v41, %v19613_v9 }
  0x64   :  { %v7927_v54 = vadd.f32 %v7926_v49, %v1515_v40  ;;  %v19011_v40 = vld [vmem:[#allocation5 + $0x344] ss:$392 sps:$4 sm:$0xff]   ;;  %v1724_v49 = vcombine.high %v1697_v32, %v1711_v33  ;;  %v1783_v3 = vcombine.low %v1733_v56, %v1761_v57  ;;  %v1784_v16 = vcombine.high %v1733_v56, %v1761_v57 }
  0x66   :  { %v7928_v61 = vadd.f32 %v7927_v54, %v1512_v46  ;;  %v1718_v54 = vrot.slane %v19017_v42, %v19613_v9  ;;  %v1897_v42 = vrot.slane %v1859_v30, %v19613_v9 }
  0x68   :  { %v7929_v1 = vadd.f32 %v7928_v61, %v1516_v52  ;;  %v1690_v52 = vrot.slane %v19011_v40, %v19613_v9  ;;  %v1775_v61 = vrot.slane %v1724_v49, %v19613_v9  ;;  %v1725_v0 = vcombine.low %v1704_v53, %v1718_v54 }
  0x69   :  { %v1726_v8 = vcombine.high %v1704_v53, %v1718_v54  ;;  %v19036_v53 = vld [vmem:[#allocation5 + $0x660] ss:$392 sps:$4 sm:$0xff]   ;;  %v19039_v54 = vld [vmem:[#allocation5 + $0x970] ss:$392 sps:$4 sm:$0xff]  }
  0x6a   :  { %v7930_v10 = vadd.f32 %v7929_v1, %v1513_v58  ;;  %v1721_v63 = vcombine.low %v1676_v51, %v1690_v52  ;;  %v19018_v1 = vld [vmem:[#allocation5 + $0x38] ss:$392 sps:$4 sm:$0xff]   ;;  %v1722_v7 = vcombine.high %v1676_v51, %v1690_v52  ;;  %v1768_v13 = vrot.slane %v1725_v0, %v19613_v9 }
  0x6b   :  { %v1782_v21 = vrot.slane %v1726_v8, %v19613_v9  ;;  %v19033_v51 = vld [vmem:[#allocation5 + $0x350] ss:$392 sps:$4 sm:$0xff]   ;;  %v1983_v2 = vrot.slane %v19039_v54, %v19613_v9 }
  0x6c   :  { %v7931_v14 = vadd.f32 %v7930_v10, %v1517_v62  ;;  %v1787_v10 = vcombine.low %v1747_v60, %v1775_v61  ;;  %v1740_v12 = vrot.slane %v1721_v63, %v19613_v9  ;;  %v1754_v20 = vrot.slane %v1722_v7, %v19613_v9  ;;  %v19032_v7 = vld [vmem:[#allocation5 + $0x44] ss:$392 sps:$4 sm:$0xff]  }
  0x6d   :  { %v1955_v63 = vrot.slane %v19033_v51, %v19613_v9 }
  0x6e   :  { %v7932_v22 = vadd.f32 %v7931_v14, %v1514_v6  ;;  %v1805_v14 = vrot.slane %v19018_v1, %v19613_v9  ;;  %v1785_v28 = vcombine.low %v1740_v12, %v1768_v13  ;;  %v1789_v32 = vcombine.low %v1754_v20, %v1782_v21 }
  0x6f   :  { %v1786_v40 = vcombine.high %v1740_v12, %v1768_v13  ;;  %v1790_v44 = vcombine.high %v1754_v20, %v1782_v21  ;;  %v1969_v1 = vrot.slane %v19036_v53, %v19613_v9  ;;  %v19041_v12 = vld [vmem:[#allocation5 + $0x974] ss:$392 sps:$4 sm:$0xff]   ;;  %v1948_v21 = vrot.slane %v19032_v7, %v19613_v9 }
  0x70   :  { %v7933_v26 = vadd.f32 %v7932_v22, %v1518_v11  ;;  %v1788_v22 = vcombine.high %v1747_v60, %v1775_v61  ;;  %v1855_v29 = vcombine.low %v1805_v14, %v1819_v15  ;;  %v1856_v33 = vcombine.high %v1805_v14, %v1819_v15 }
  0x71   :  { %v1995_v15 = vcombine.low %v1969_v1, %v1983_v2 }
  0x72   :  { %v7934_v34 = vadd.f32 %v7933_v26, %v1647_v19  ;;  %v19026_v26 = vld [vmem:[#allocation5 + $0x65c] ss:$392 sps:$4 sm:$0xff]   ;;  %v1869_v41 = vrot.slane %v1855_v29, %v19613_v9  ;;  %v1883_v45 = vrot.slane %v1856_v33, %v19613_v9 }
  0x73   :  { %v1840_v38 = vrot.slane %v19026_v26, %v19613_v9 }
  0x74   :  { %v7935_v39 = vadd.f32 %v7934_v34, %v1651_v25  ;;  %v19023_v25 = vld [vmem:[#allocation5 + $0x34c] ss:$392 sps:$4 sm:$0xff]   ;;  %v1860_v34 = vcombine.high %v1833_v17, %v1847_v18  ;;  %v1919_v52 = vcombine.low %v1869_v41, %v1897_v42  ;;  %v1920_v0 = vcombine.high %v1869_v41, %v1897_v42 }
  0x76   :  { %v7936_v46 = vadd.f32 %v7935_v39, %v1648_v31  ;;  %v1854_v39 = vrot.slane %v19029_v27, %v19613_v9  ;;  %v2033_v27 = vrot.slane %v1995_v15, %v19613_v9 }
  0x78   :  { %v7937_v50 = vadd.f32 %v7936_v46, %v1652_v37  ;;  %v1826_v37 = vrot.slane %v19023_v25, %v19613_v9  ;;  %v1911_v46 = vrot.slane %v1860_v34, %v19613_v9  ;;  %v1861_v49 = vcombine.low %v1840_v38, %v1854_v39 }
  0x79   :  { %v1862_v57 = vcombine.high %v1840_v38, %v1854_v39  ;;  %v19048_v38 = vld [vmem:[#allocation5 + $0x668] ss:$392 sps:$4 sm:$0xff]   ;;  %v19051_v39 = vld [vmem:[#allocation5 + $0x978] ss:$392 sps:$4 sm:$0xff]  }
  0x7a   :  { %v7938_v58 = vadd.f32 %v7937_v50, %v1649_v43  ;;  %v1857_v48 = vcombine.low %v1812_v36, %v1826_v37  ;;  %v19030_v50 = vld [vmem:[#allocation5 + $0x40] ss:$392 sps:$4 sm:$0xff]   ;;  %v1858_v56 = vcombine.high %v1812_v36, %v1826_v37  ;;  %v1904_v61 = vrot.slane %v1861_v49, %v19613_v9 }
  0x7b   :  { %v1918_v5 = vrot.slane %v1862_v57, %v19613_v9  ;;  %v19045_v36 = vld [vmem:[#allocation5 + $0x358] ss:$392 sps:$4 sm:$0xff]   ;;  %v2119_v51 = vrot.slane %v19051_v39, %v19613_v9 }
  0x7c   :  { %v7939_v62 = vadd.f32 %v7938_v58, %v1653_v47  ;;  %v1923_v58 = vcombine.low %v1883_v45, %v1911_v46  ;;  %v1876_v60 = vrot.slane %v1857_v48, %v19613_v9  ;;  %v1890_v4 = vrot.slane %v1858_v56, %v19613_v9  ;;  %v19044_v56 = vld [vmem:[#allocation5 + $0x4c] ss:$392 sps:$4 sm:$0xff]  }
  0x7d   :  { %v2091_v48 = vrot.slane %v19045_v36, %v19613_v9 }
  0x7e   :  { %v7940_v6 = vadd.f32 %v7939_v62, %v1650_v55  ;;  %v1941_v62 = vrot.slane %v19030_v50, %v19613_v9  ;;  %v1921_v13 = vcombine.low %v1876_v60, %v1904_v61  ;;  %v1925_v17 = vcombine.low %v1890_v4, %v1918_v5 }
  0x7f   :  { %v1922_v25 = vcombine.high %v1876_v60, %v1904_v61  ;;  %v1926_v29 = vcombine.high %v1890_v4, %v1918_v5  ;;  %v2105_v50 = vrot.slane %v19048_v38, %v19613_v9  ;;  %v19053_v60 = vld [vmem:[#allocation5 + $0x97c] ss:$392 sps:$4 sm:$0xff]   ;;  %v2084_v5 = vrot.slane %v19044_v56, %v19613_v9 }
  0x80   :  { %v7941_v11 = vadd.f32 %v7940_v6, %v1654_v59  ;;  %v1924_v6 = vcombine.high %v1883_v45, %v1911_v46  ;;  %v1991_v14 = vcombine.low %v1941_v62, %v1955_v63  ;;  %v1992_v18 = vcombine.high %v1941_v62, %v1955_v63 }
  0x81   :  { %v2131_v63 = vcombine.low %v2105_v50, %v2119_v51 }
  0x82   :  { %v7942_v19 = vadd.f32 %v7941_v11, %v1783_v3  ;;  %v19038_v11 = vld [vmem:[#allocation5 + $0x664] ss:$392 sps:$4 sm:$0xff]   ;;  %v2005_v26 = vrot.slane %v1991_v14, %v19613_v9  ;;  %v2019_v30 = vrot.slane %v1992_v18, %v19613_v9 }
  0x83   :  { %v1976_v23 = vrot.slane %v19038_v11, %v19613_v9 }
  0x84   :  { %v7943_v24 = vadd.f32 %v7942_v19, %v1787_v10  ;;  %v19035_v10 = vld [vmem:[#allocation5 + $0x354] ss:$392 sps:$4 sm:$0xff]   ;;  %v1996_v19 = vcombine.high %v1969_v1, %v1983_v2  ;;  %v2055_v37 = vcombine.low %v2005_v26, %v2033_v27  ;;  %v2056_v49 = vcombine.high %v2005_v26, %v2033_v27 }
  0x86   :  { %v7944_v31 = vadd.f32 %v7943_v24, %v1784_v16  ;;  %v1990_v24 = vrot.slane %v19041_v12, %v19613_v9  ;;  %v2169_v12 = vrot.slane %v2131_v63, %v19613_v9 }
  0x88   :  { %v7945_v35 = vadd.f32 %v7944_v31, %v1788_v22  ;;  %v1962_v22 = vrot.slane %v19035_v10, %v19613_v9  ;;  %v2047_v31 = vrot.slane %v1996_v19, %v19613_v9  ;;  %v1997_v34 = vcombine.low %v1976_v23, %v1990_v24 }
  0x89   :  { %v1998_v42 = vcombine.high %v1976_v23, %v1990_v24  ;;  %v19060_v23 = vld [vmem:[#allocation5 + $0x670] ss:$392 sps:$4 sm:$0xff]   ;;  %v19063_v24 = vld [vmem:[#allocation5 + $0x980] ss:$392 sps:$4 sm:$0xff]  }
  0x8a   :  { %v7946_v43 = vadd.f32 %v7945_v35, %v1785_v28  ;;  %v1993_v33 = vcombine.low %v1948_v21, %v1962_v22  ;;  %v19042_v35 = vld [vmem:[#allocation5 + $0x48] ss:$392 sps:$4 sm:$0xff]   ;;  %v1994_v41 = vcombine.high %v1948_v21, %v1962_v22  ;;  %v2040_v46 = vrot.slane %v1997_v34, %v19613_v9 }
  0x8b   :  { %v2054_v54 = vrot.slane %v1998_v42, %v19613_v9  ;;  %v19057_v21 = vld [vmem:[#allocation5 + $0x360] ss:$392 sps:$4 sm:$0xff]   ;;  %v2255_v36 = vrot.slane %v19063_v24, %v19613_v9 }
  0x8c   :  { %v7947_v47 = vadd.f32 %v7946_v43, %v1789_v32  ;;  %v2059_v43 = vcombine.low %v2019_v30, %v2047_v31  ;;  %v2012_v45 = vrot.slane %v1993_v33, %v19613_v9  ;;  %v2026_v53 = vrot.slane %v1994_v41, %v19613_v9  ;;  %v19056_v41 = vld [vmem:[#allocation5 + $0x54] ss:$392 sps:$4 sm:$0xff]  }
  0x8d   :  { %v2227_v33 = vrot.slane %v19057_v21, %v19613_v9 }
  0x8e   :  { %v7948_v55 = vadd.f32 %v7947_v47, %v1786_v40  ;;  %v2077_v47 = vrot.slane %v19042_v35, %v19613_v9  ;;  %v2057_v61 = vcombine.low %v2012_v45, %v2040_v46  ;;  %v2061_v1 = vcombine.low %v2026_v53, %v2054_v54 }
  0x8f   :  { %v2058_v10 = vcombine.high %v2012_v45, %v2040_v46  ;;  %v2062_v14 = vcombine.high %v2026_v53, %v2054_v54  ;;  %v2241_v35 = vrot.slane %v19060_v23, %v19613_v9  ;;  %v19065_v45 = vld [vmem:[#allocation5 + $0x984] ss:$392 sps:$4 sm:$0xff]   ;;  %v2220_v54 = vrot.slane %v19056_v41, %v19613_v9 }
  0x90   :  { %v7949_v59 = vadd.f32 %v7948_v55, %v1790_v44  ;;  %v2060_v55 = vcombine.high %v2019_v30, %v2047_v31  ;;  %v2127_v62 = vcombine.low %v2077_v47, %v2091_v48  ;;  %v2128_v2 = vcombine.high %v2077_v47, %v2091_v48 }
  0x91   :  { %v2267_v48 = vcombine.low %v2241_v35, %v2255_v36 }
  0x92   :  { %v7950_v3 = vadd.f32 %v7949_v59, %v1919_v52  ;;  %v19050_v59 = vld [vmem:[#allocation5 + $0x66c] ss:$392 sps:$4 sm:$0xff]   ;;  %v2141_v11 = vrot.slane %v2127_v62, %v19613_v9  ;;  %v2155_v15 = vrot.slane %v2128_v2, %v19613_v9 }
  0x93   :  { %v2112_v7 = vrot.slane %v19050_v59, %v19613_v9 }
  0x94   :  { %v7951_v8 = vadd.f32 %v7950_v3, %v1923_v58  ;;  %v19047_v58 = vld [vmem:[#allocation5 + $0x35c] ss:$392 sps:$4 sm:$0xff]   ;;  %v2132_v3 = vcombine.high %v2105_v50, %v2119_v51  ;;  %v2191_v22 = vcombine.low %v2141_v11, %v2169_v12  ;;  %v2192_v34 = vcombine.high %v2141_v11, %v2169_v12 }
  0x96   :  { %v7952_v16 = vadd.f32 %v7951_v8, %v1920_v0  ;;  %v2126_v8 = vrot.slane %v19053_v60, %v19613_v9  ;;  %v2305_v60 = vrot.slane %v2267_v48, %v19613_v9 }
  0x98   :  { %v7953_v20 = vadd.f32 %v7952_v16, %v1924_v6  ;;  %v2098_v6 = vrot.slane %v19047_v58, %v19613_v9  ;;  %v2183_v16 = vrot.slane %v2132_v3, %v19613_v9  ;;  %v2133_v19 = vcombine.low %v2112_v7, %v2126_v8 }
  0x99   :  { %v2134_v27 = vcombine.high %v2112_v7, %v2126_v8  ;;  %v19072_v7 = vld [vmem:[#allocation5 + $0x678] ss:$392 sps:$4 sm:$0xff]   ;;  %v19075_v8 = vld [vmem:[#allocation5 + $0x988] ss:$392 sps:$4 sm:$0xff]  }
  0x9a   :  { %v7954_v28 = vadd.f32 %v7953_v20, %v1921_v13  ;;  %v2129_v18 = vcombine.low %v2084_v5, %v2098_v6  ;;  %v19054_v20 = vld [vmem:[#allocation5 + $0x50] ss:$392 sps:$4 sm:$0xff]   ;;  %v2130_v26 = vcombine.high %v2084_v5, %v2098_v6  ;;  %v2176_v31 = vrot.slane %v2133_v19, %v19613_v9 }
  0x9b   :  { %v2190_v39 = vrot.slane %v2134_v27, %v19613_v9  ;;  %v19069_v5 = vld [vmem:[#allocation5 + $0x368] ss:$392 sps:$4 sm:$0xff]   ;;  %v2391_v21 = vrot.slane %v19075_v8, %v19613_v9 }
  0x9c   :  { %v7955_v32 = vadd.f32 %v7954_v28, %v1925_v17  ;;  %v2195_v28 = vcombine.low %v2155_v15, %v2183_v16  ;;  %v2148_v30 = vrot.slane %v2129_v18, %v19613_v9  ;;  %v2162_v38 = vrot.slane %v2130_v26, %v19613_v9  ;;  %v19068_v26 = vld [vmem:[#allocation5 + $0x5c] ss:$392 sps:$4 sm:$0xff]  }
  0x9d   :  { %v2363_v18 = vrot.slane %v19069_v5, %v19613_v9 }
  0x9e   :  { %v7956_v40 = vadd.f32 %v7955_v32, %v1922_v25  ;;  %v2213_v32 = vrot.slane %v19054_v20, %v19613_v9  ;;  %v2193_v46 = vcombine.low %v2148_v30, %v2176_v31  ;;  %v2197_v50 = vcombine.low %v2162_v38, %v2190_v39 }
  0x9f   :  { %v2194_v58 = vcombine.high %v2148_v30, %v2176_v31  ;;  %v2198_v62 = vcombine.high %v2162_v38, %v2190_v39  ;;  %v2377_v20 = vrot.slane %v19072_v7, %v19613_v9  ;;  %v19077_v30 = vld [vmem:[#allocation5 + $0x98c] ss:$392 sps:$4 sm:$0xff]   ;;  %v2356_v39 = vrot.slane %v19068_v26, %v19613_v9 }
  0xa0   :  { %v7957_v44 = vadd.f32 %v7956_v40, %v1926_v29  ;;  %v2196_v40 = vcombine.high %v2155_v15, %v2183_v16  ;;  %v2263_v47 = vcombine.low %v2213_v32, %v2227_v33  ;;  %v2264_v51 = vcombine.high %v2213_v32, %v2227_v33 }
  0xa1   :  { %v2403_v33 = vcombine.low %v2377_v20, %v2391_v21 }
  0xa2   :  { %v7958_v52 = vadd.f32 %v7957_v44, %v2055_v37  ;;  %v19062_v44 = vld [vmem:[#allocation5 + $0x674] ss:$392 sps:$4 sm:$0xff]   ;;  %v2277_v59 = vrot.slane %v2263_v47, %v19613_v9  ;;  %v2291_v63 = vrot.slane %v2264_v51, %v19613_v9 }
  0xa3   :  { %v2248_v56 = vrot.slane %v19062_v44, %v19613_v9 }
  0xa4   :  { %v7959_v57 = vadd.f32 %v7958_v52, %v2059_v43  ;;  %v19059_v43 = vld [vmem:[#allocation5 + $0x364] ss:$392 sps:$4 sm:$0xff]   ;;  %v2268_v52 = vcombine.high %v2241_v35, %v2255_v36  ;;  %v2327_v6 = vcombine.low %v2277_v59, %v2305_v60  ;;  %v2328_v19 = vcombine.high %v2277_v59, %v2305_v60 }
  0xa6   :  { %v7960_v0 = vadd.f32 %v7959_v57, %v2056_v49  ;;  %v2262_v57 = vrot.slane %v19065_v45, %v19613_v9  ;;  %v2441_v45 = vrot.slane %v2403_v33, %v19613_v9 }
  0xa8   :  { %v7961_v4 = vadd.f32 %v7960_v0, %v2060_v55  ;;  %v2234_v55 = vrot.slane %v19059_v43, %v19613_v9  ;;  %v2319_v0 = vrot.slane %v2268_v52, %v19613_v9  ;;  %v2269_v3 = vcombine.low %v2248_v56, %v2262_v57 }
  0xa9   :  { %v2270_v12 = vcombine.high %v2248_v56, %v2262_v57  ;;  %v19084_v56 = vld [vmem:[#allocation5 + $0x680] ss:$392 sps:$4 sm:$0xff]   ;;  %v19087_v57 = vld [vmem:[#allocation5 + $0x990] ss:$392 sps:$4 sm:$0xff]  }
  0xaa   :  { %v7962_v13 = vadd.f32 %v7961_v4, %v2057_v61  ;;  %v2265_v2 = vcombine.low %v2220_v54, %v2234_v55  ;;  %v19066_v4 = vld [vmem:[#allocation5 + $0x58] ss:$392 sps:$4 sm:$0xff]   ;;  %v2266_v11 = vcombine.high %v2220_v54, %v2234_v55  ;;  %v2312_v16 = vrot.slane %v2269_v3, %v19613_v9 }
  0xab   :  { %v2326_v24 = vrot.slane %v2270_v12, %v19613_v9  ;;  %v19081_v54 = vld [vmem:[#allocation5 + $0x370] ss:$392 sps:$4 sm:$0xff]   ;;  %v2527_v5 = vrot.slane %v19087_v57, %v19613_v9 }
  0xac   :  { %v7963_v17 = vadd.f32 %v7962_v13, %v2061_v1  ;;  %v2331_v13 = vcombine.low %v2291_v63, %v2319_v0  ;;  %v2284_v15 = vrot.slane %v2265_v2, %v19613_v9  ;;  %v2298_v23 = vrot.slane %v2266_v11, %v19613_v9  ;;  %v19080_v11 = vld [vmem:[#allocation5 + $0x64] ss:$392 sps:$4 sm:$0xff]  }
  0xad   :  { %v2499_v2 = vrot.slane %v19081_v54, %v19613_v9 }
  0xae   :  { %v7964_v25 = vadd.f32 %v7963_v17, %v2058_v10  ;;  %v2349_v17 = vrot.slane %v19066_v4, %v19613_v9  ;;  %v2329_v31 = vcombine.low %v2284_v15, %v2312_v16  ;;  %v2333_v35 = vcombine.low %v2298_v23, %v2326_v24 }
  0xaf   :  { %v2330_v43 = vcombine.high %v2284_v15, %v2312_v16  ;;  %v2334_v47 = vcombine.high %v2298_v23, %v2326_v24  ;;  %v2513_v4 = vrot.slane %v19084_v56, %v19613_v9  ;;  %v19089_v15 = vld [vmem:[#allocation5 + $0x994] ss:$392 sps:$4 sm:$0xff]   ;;  %v2492_v24 = vrot.slane %v19080_v11, %v19613_v9 }
  0xb0   :  { %v7965_v29 = vadd.f32 %v7964_v25, %v2062_v14  ;;  %v2332_v25 = vcombine.high %v2291_v63, %v2319_v0  ;;  %v2399_v32 = vcombine.low %v2349_v17, %v2363_v18  ;;  %v2400_v36 = vcombine.high %v2349_v17, %v2363_v18 }
  0xb1   :  { %v2539_v18 = vcombine.low %v2513_v4, %v2527_v5 }
  0xb2   :  { %v7966_v37 = vadd.f32 %v7965_v29, %v2191_v22  ;;  %v19074_v29 = vld [vmem:[#allocation5 + $0x67c] ss:$392 sps:$4 sm:$0xff]   ;;  %v2413_v44 = vrot.slane %v2399_v32, %v19613_v9  ;;  %v2427_v48 = vrot.slane %v2400_v36, %v19613_v9 }
  0xb3   :  { %v2384_v41 = vrot.slane %v19074_v29, %v19613_v9 }
  0xb4   :  { %v7967_v42 = vadd.f32 %v7966_v37, %v2195_v28  ;;  %v19071_v28 = vld [vmem:[#allocation5 + $0x36c] ss:$392 sps:$4 sm:$0xff]   ;;  %v2404_v37 = vcombine.high %v2377_v20, %v2391_v21  ;;  %v2463_v55 = vcombine.low %v2413_v44, %v2441_v45  ;;  %v2464_v3 = vcombine.high %v2413_v44, %v2441_v45 }
  0xb6   :  { %v7968_v49 = vadd.f32 %v7967_v42, %v2192_v34  ;;  %v2398_v42 = vrot.slane %v19077_v30, %v19613_v9  ;;  %v2577_v30 = vrot.slane %v2539_v18, %v19613_v9 }
  0xb8   :  { %v7969_v53 = vadd.f32 %v7968_v49, %v2196_v40  ;;  %v2370_v40 = vrot.slane %v19071_v28, %v19613_v9  ;;  %v2455_v49 = vrot.slane %v2404_v37, %v19613_v9  ;;  %v2405_v52 = vcombine.low %v2384_v41, %v2398_v42 }
  0xb9   :  { %v2406_v60 = vcombine.high %v2384_v41, %v2398_v42  ;;  %v19096_v41 = vld [vmem:[#allocation5 + $0x688] ss:$392 sps:$4 sm:$0xff]   ;;  %v19099_v42 = vld [vmem:[#allocation5 + $0x998] ss:$392 sps:$4 sm:$0xff]  }
  0xba   :  { %v7970_v61 = vadd.f32 %v7969_v53, %v2193_v46  ;;  %v2401_v51 = vcombine.low %v2356_v39, %v2370_v40  ;;  %v19078_v53 = vld [vmem:[#allocation5 + $0x60] ss:$392 sps:$4 sm:$0xff]   ;;  %v2402_v59 = vcombine.high %v2356_v39, %v2370_v40  ;;  %v2448_v0 = vrot.slane %v2405_v52, %v19613_v9 }
  0xbb   :  { %v2462_v8 = vrot.slane %v2406_v60, %v19613_v9  ;;  %v19093_v39 = vld [vmem:[#allocation5 + $0x378] ss:$392 sps:$4 sm:$0xff]   ;;  %v2663_v54 = vrot.slane %v19099_v42, %v19613_v9 }
  0xbc   :  { %v7971_v1 = vadd.f32 %v7970_v61, %v2197_v50  ;;  %v2467_v61 = vcombine.low %v2427_v48, %v2455_v49  ;;  %v2420_v63 = vrot.slane %v2401_v51, %v19613_v9  ;;  %v2434_v7 = vrot.slane %v2402_v59, %v19613_v9  ;;  %v19092_v59 = vld [vmem:[#allocation5 + $0x6c] ss:$392 sps:$4 sm:$0xff]  }
  0xbd   :  { %v2635_v51 = vrot.slane %v19093_v39, %v19613_v9 }
  0xbe   :  { %v7972_v10 = vadd.f32 %v7971_v1, %v2194_v58  ;;  %v2485_v1 = vrot.slane %v19078_v53, %v19613_v9  ;;  %v2465_v16 = vcombine.low %v2420_v63, %v2448_v0  ;;  %v2469_v20 = vcombine.low %v2434_v7, %v2462_v8 }
  0xbf   :  { %v2466_v28 = vcombine.high %v2420_v63, %v2448_v0  ;;  %v2470_v32 = vcombine.high %v2434_v7, %v2462_v8  ;;  %v2649_v53 = vrot.slane %v19096_v41, %v19613_v9  ;;  %v19101_v63 = vld [vmem:[#allocation5 + $0x99c] ss:$392 sps:$4 sm:$0xff]   ;;  %v2628_v8 = vrot.slane %v19092_v59, %v19613_v9 }
  0xc0   :  { %v7973_v14 = vadd.f32 %v7972_v10, %v2198_v62  ;;  %v2468_v10 = vcombine.high %v2427_v48, %v2455_v49  ;;  %v2535_v17 = vcombine.low %v2485_v1, %v2499_v2  ;;  %v2536_v21 = vcombine.high %v2485_v1, %v2499_v2 }
  0xc1   :  { %v2675_v2 = vcombine.low %v2649_v53, %v2663_v54 }
  0xc2   :  { %v7974_v22 = vadd.f32 %v7973_v14, %v2327_v6  ;;  %v19086_v14 = vld [vmem:[#allocation5 + $0x684] ss:$392 sps:$4 sm:$0xff]   ;;  %v2549_v29 = vrot.slane %v2535_v17, %v19613_v9  ;;  %v2563_v33 = vrot.slane %v2536_v21, %v19613_v9 }
  0xc3   :  { %v2520_v26 = vrot.slane %v19086_v14, %v19613_v9 }
  0xc4   :  { %v7975_v27 = vadd.f32 %v7974_v22, %v2331_v13  ;;  %v19083_v13 = vld [vmem:[#allocation5 + $0x374] ss:$392 sps:$4 sm:$0xff]   ;;  %v2540_v22 = vcombine.high %v2513_v4, %v2527_v5  ;;  %v2599_v40 = vcombine.low %v2549_v29, %v2577_v30  ;;  %v2600_v52 = vcombine.high %v2549_v29, %v2577_v30 }
  0xc6   :  { %v7976_v34 = vadd.f32 %v7975_v27, %v2328_v19  ;;  %v2534_v27 = vrot.slane %v19089_v15, %v19613_v9  ;;  %v2713_v15 = vrot.slane %v2675_v2, %v19613_v9 }
  0xc8   :  { %v7977_v38 = vadd.f32 %v7976_v34, %v2332_v25  ;;  %v2506_v25 = vrot.slane %v19083_v13, %v19613_v9  ;;  %v2591_v34 = vrot.slane %v2540_v22, %v19613_v9  ;;  %v2541_v37 = vcombine.low %v2520_v26, %v2534_v27 }
  0xc9   :  { %v2542_v45 = vcombine.high %v2520_v26, %v2534_v27  ;;  %v19108_v26 = vld [vmem:[#allocation5 + $0x690] ss:$392 sps:$4 sm:$0xff]   ;;  %v19111_v27 = vld [vmem:[#allocation5 + $0x9a0] ss:$392 sps:$4 sm:$0xff]  }
  0xca   :  { %v7978_v46 = vadd.f32 %v7977_v38, %v2329_v31  ;;  %v2537_v36 = vcombine.low %v2492_v24, %v2506_v25  ;;  %v19090_v38 = vld [vmem:[#allocation5 + $0x68] ss:$392 sps:$4 sm:$0xff]   ;;  %v2538_v44 = vcombine.high %v2492_v24, %v2506_v25  ;;  %v2584_v49 = vrot.slane %v2541_v37, %v19613_v9 }
  0xcb   :  { %v2598_v57 = vrot.slane %v2542_v45, %v19613_v9  ;;  %v19105_v24 = vld [vmem:[#allocation5 + $0x380] ss:$392 sps:$4 sm:$0xff]   ;;  %v2799_v39 = vrot.slane %v19111_v27, %v19613_v9 }
  0xcc   :  { %v7979_v50 = vadd.f32 %v7978_v46, %v2333_v35  ;;  %v2603_v46 = vcombine.low %v2563_v33, %v2591_v34  ;;  %v2556_v48 = vrot.slane %v2537_v36, %v19613_v9  ;;  %v2570_v56 = vrot.slane %v2538_v44, %v19613_v9  ;;  %v19104_v44 = vld [vmem:[#allocation5 + $0x74] ss:$392 sps:$4 sm:$0xff]  }
  0xcd   :  { %v2771_v36 = vrot.slane %v19105_v24, %v19613_v9 }
  0xce   :  { %v7980_v58 = vadd.f32 %v7979_v50, %v2330_v43  ;;  %v2621_v50 = vrot.slane %v19090_v38, %v19613_v9  ;;  %v2601_v0 = vcombine.low %v2556_v48, %v2584_v49  ;;  %v2605_v4 = vcombine.low %v2570_v56, %v2598_v57 }
  0xcf   :  { %v2602_v13 = vcombine.high %v2556_v48, %v2584_v49  ;;  %v2606_v17 = vcombine.high %v2570_v56, %v2598_v57  ;;  %v2785_v38 = vrot.slane %v19108_v26, %v19613_v9  ;;  %v19113_v48 = vld [vmem:[#allocation5 + $0x9a4] ss:$392 sps:$4 sm:$0xff]   ;;  %v2764_v57 = vrot.slane %v19104_v44, %v19613_v9 }
  0xd0   :  { %v7981_v62 = vadd.f32 %v7980_v58, %v2334_v47  ;;  %v2604_v58 = vcombine.high %v2563_v33, %v2591_v34  ;;  %v2671_v1 = vcombine.low %v2621_v50, %v2635_v51  ;;  %v2672_v5 = vcombine.high %v2621_v50, %v2635_v51 }
  0xd1   :  { %v2811_v51 = vcombine.low %v2785_v38, %v2799_v39 }
  0xd2   :  { %v7982_v6 = vadd.f32 %v7981_v62, %v2463_v55  ;;  %v19098_v62 = vld [vmem:[#allocation5 + $0x68c] ss:$392 sps:$4 sm:$0xff]   ;;  %v2685_v14 = vrot.slane %v2671_v1, %v19613_v9  ;;  %v2699_v18 = vrot.slane %v2672_v5, %v19613_v9 }
  0xd3   :  { %v2656_v11 = vrot.slane %v19098_v62, %v19613_v9 }
  0xd4   :  { %v7983_v12 = vadd.f32 %v7982_v6, %v2467_v61  ;;  %v19095_v61 = vld [vmem:[#allocation5 + $0x37c] ss:$392 sps:$4 sm:$0xff]   ;;  %v2676_v6 = vcombine.high %v2649_v53, %v2663_v54  ;;  %v2735_v25 = vcombine.low %v2685_v14, %v2713_v15  ;;  %v2736_v37 = vcombine.high %v2685_v14, %v2713_v15 }
  0xd6   :  { %v7984_v19 = vadd.f32 %v7983_v12, %v2464_v3  ;;  %v2670_v12 = vrot.slane %v19101_v63, %v19613_v9  ;;  %v2849_v63 = vrot.slane %v2811_v51, %v19613_v9 }
  0xd8   :  { %v7985_v23 = vadd.f32 %v7984_v19, %v2468_v10  ;;  %v2642_v10 = vrot.slane %v19095_v61, %v19613_v9  ;;  %v2727_v19 = vrot.slane %v2676_v6, %v19613_v9  ;;  %v2677_v22 = vcombine.low %v2656_v11, %v2670_v12 }
  0xd9   :  { %v2678_v30 = vcombine.high %v2656_v11, %v2670_v12  ;;  %v19120_v11 = vld [vmem:[#allocation5 + $0x698] ss:$392 sps:$4 sm:$0xff]   ;;  %v19123_v12 = vld [vmem:[#allocation5 + $0x9a8] ss:$392 sps:$4 sm:$0xff]  }
  0xda   :  { %v7986_v31 = vadd.f32 %v7985_v23, %v2465_v16  ;;  %v2673_v21 = vcombine.low %v2628_v8, %v2642_v10  ;;  %v19102_v23 = vld [vmem:[#allocation5 + $0x70] ss:$392 sps:$4 sm:$0xff]   ;;  %v2674_v29 = vcombine.high %v2628_v8, %v2642_v10  ;;  %v2720_v34 = vrot.slane %v2677_v22, %v19613_v9 }
  0xdb   :  { %v2734_v42 = vrot.slane %v2678_v30, %v19613_v9  ;;  %v19117_v8 = vld [vmem:[#allocation5 + $0x388] ss:$392 sps:$4 sm:$0xff]   ;;  %v2935_v24 = vrot.slane %v19123_v12, %v19613_v9 }
  0xdc   :  { %v7987_v35 = vadd.f32 %v7986_v31, %v2469_v20  ;;  %v2739_v31 = vcombine.low %v2699_v18, %v2727_v19  ;;  %v2692_v33 = vrot.slane %v2673_v21, %v19613_v9  ;;  %v2706_v41 = vrot.slane %v2674_v29, %v19613_v9  ;;  %v19116_v29 = vld [vmem:[#allocation5 + $0x7c] ss:$392 sps:$4 sm:$0xff]  }
  0xdd   :  { %v2907_v21 = vrot.slane %v19117_v8, %v19613_v9 }
  0xde   :  { %v7988_v43 = vadd.f32 %v7987_v35, %v2466_v28  ;;  %v2757_v35 = vrot.slane %v19102_v23, %v19613_v9  ;;  %v2737_v49 = vcombine.low %v2692_v33, %v2720_v34  ;;  %v2741_v53 = vcombine.low %v2706_v41, %v2734_v42 }
  0xdf   :  { %v2738_v61 = vcombine.high %v2692_v33, %v2720_v34  ;;  %v2742_v1 = vcombine.high %v2706_v41, %v2734_v42  ;;  %v2921_v23 = vrot.slane %v19120_v11, %v19613_v9  ;;  %v19125_v33 = vld [vmem:[#allocation5 + $0x9ac] ss:$392 sps:$4 sm:$0xff]   ;;  %v2900_v42 = vrot.slane %v19116_v29, %v19613_v9 }
  0xe0   :  { %v7989_v47 = vadd.f32 %v7988_v43, %v2470_v32  ;;  %v2740_v43 = vcombine.high %v2699_v18, %v2727_v19  ;;  %v2807_v50 = vcombine.low %v2757_v35, %v2771_v36  ;;  %v2808_v54 = vcombine.high %v2757_v35, %v2771_v36 }
  0xe1   :  { %v2947_v36 = vcombine.low %v2921_v23, %v2935_v24 }
  0xe2   :  { %v7990_v55 = vadd.f32 %v7989_v47, %v2599_v40  ;;  %v19110_v47 = vld [vmem:[#allocation5 + $0x694] ss:$392 sps:$4 sm:$0xff]   ;;  %v2821_v62 = vrot.slane %v2807_v50, %v19613_v9  ;;  %v2835_v2 = vrot.slane %v2808_v54, %v19613_v9 }
  0xe3   :  { %v2792_v59 = vrot.slane %v19110_v47, %v19613_v9 }
  0xe4   :  { %v7991_v60 = vadd.f32 %v7990_v55, %v2603_v46  ;;  %v19107_v46 = vld [vmem:[#allocation5 + $0x384] ss:$392 sps:$4 sm:$0xff]   ;;  %v2812_v55 = vcombine.high %v2785_v38, %v2799_v39  ;;  %v2871_v10 = vcombine.low %v2821_v62, %v2849_v63  ;;  %v2872_v22 = vcombine.high %v2821_v62, %v2849_v63 }
  0xe6   :  { %v7992_v3 = vadd.f32 %v7991_v60, %v2600_v52  ;;  %v2806_v60 = vrot.slane %v19113_v48, %v19613_v9  ;;  %v2985_v48 = vrot.slane %v2947_v36, %v19613_v9 }
  0xe8   :  { %v7993_v7 = vadd.f32 %v7992_v3, %v2604_v58  ;;  %v2778_v58 = vrot.slane %v19107_v46, %v19613_v9  ;;  %v2863_v3 = vrot.slane %v2812_v55, %v19613_v9  ;;  %v2813_v6 = vcombine.low %v2792_v59, %v2806_v60 }
  0xe9   :  { %v2814_v15 = vcombine.high %v2792_v59, %v2806_v60  ;;  %v19132_v59 = vld [vmem:[#allocation5 + $0x6a0] ss:$392 sps:$4 sm:$0xff]   ;;  %v19135_v60 = vld [vmem:[#allocation5 + $0x9b0] ss:$392 sps:$4 sm:$0xff]  }
  0xea   :  { %v7994_v16 = vadd.f32 %v7993_v7, %v2601_v0  ;;  %v2809_v5 = vcombine.low %v2764_v57, %v2778_v58  ;;  %v19114_v7 = vld [vmem:[#allocation5 + $0x78] ss:$392 sps:$4 sm:$0xff]   ;;  %v2810_v14 = vcombine.high %v2764_v57, %v2778_v58  ;;  %v2856_v19 = vrot.slane %v2813_v6, %v19613_v9 }
  0xeb   :  { %v2870_v27 = vrot.slane %v2814_v15, %v19613_v9  ;;  %v19129_v57 = vld [vmem:[#allocation5 + $0x390] ss:$392 sps:$4 sm:$0xff]   ;;  %v3071_v8 = vrot.slane %v19135_v60, %v19613_v9 }
  0xec   :  { %v7995_v20 = vadd.f32 %v7994_v16, %v2605_v4  ;;  %v2875_v16 = vcombine.low %v2835_v2, %v2863_v3  ;;  %v2828_v18 = vrot.slane %v2809_v5, %v19613_v9  ;;  %v2842_v26 = vrot.slane %v2810_v14, %v19613_v9  ;;  %v19128_v14 = vld [vmem:[#allocation5 + $0x84] ss:$392 sps:$4 sm:$0xff]  }
  0xed   :  { %v3043_v5 = vrot.slane %v19129_v57, %v19613_v9 }
  0xee   :  { %v7996_v28 = vadd.f32 %v7995_v20, %v2602_v13  ;;  %v2893_v20 = vrot.slane %v19114_v7, %v19613_v9  ;;  %v2873_v34 = vcombine.low %v2828_v18, %v2856_v19  ;;  %v2877_v38 = vcombine.low %v2842_v26, %v2870_v27 }
  0xef   :  { %v2874_v46 = vcombine.high %v2828_v18, %v2856_v19  ;;  %v2878_v50 = vcombine.high %v2842_v26, %v2870_v27  ;;  %v3057_v7 = vrot.slane %v19132_v59, %v19613_v9  ;;  %v19137_v18 = vld [vmem:[#allocation5 + $0x9b4] ss:$392 sps:$4 sm:$0xff]   ;;  %v3036_v27 = vrot.slane %v19128_v14, %v19613_v9 }
  0xf0   :  { %v7997_v32 = vadd.f32 %v7996_v28, %v2606_v17  ;;  %v2876_v28 = vcombine.high %v2835_v2, %v2863_v3  ;;  %v2943_v35 = vcombine.low %v2893_v20, %v2907_v21  ;;  %v2944_v39 = vcombine.high %v2893_v20, %v2907_v21 }
  0xf1   :  { %v3083_v21 = vcombine.low %v3057_v7, %v3071_v8 }
  0xf2   :  { %v7998_v40 = vadd.f32 %v7997_v32, %v2735_v25  ;;  %v19122_v32 = vld [vmem:[#allocation5 + $0x69c] ss:$392 sps:$4 sm:$0xff]   ;;  %v2957_v47 = vrot.slane %v2943_v35, %v19613_v9  ;;  %v2971_v51 = vrot.slane %v2944_v39, %v19613_v9 }
  0xf3   :  { %v2928_v44 = vrot.slane %v19122_v32, %v19613_v9 }
  0xf4   :  { %v7999_v45 = vadd.f32 %v7998_v40, %v2739_v31  ;;  %v19119_v31 = vld [vmem:[#allocation5 + $0x38c] ss:$392 sps:$4 sm:$0xff]   ;;  %v2948_v40 = vcombine.high %v2921_v23, %v2935_v24  ;;  %v3007_v58 = vcombine.low %v2957_v47, %v2985_v48  ;;  %v3008_v6 = vcombine.high %v2957_v47, %v2985_v48 }
  0xf6   :  { %v8000_v52 = vadd.f32 %v7999_v45, %v2736_v37  ;;  %v2942_v45 = vrot.slane %v19125_v33, %v19613_v9  ;;  %v3121_v33 = vrot.slane %v3083_v21, %v19613_v9 }
  0xf8   :  { %v8001_v56 = vadd.f32 %v8000_v52, %v2740_v43  ;;  %v2914_v43 = vrot.slane %v19119_v31, %v19613_v9  ;;  %v2999_v52 = vrot.slane %v2948_v40, %v19613_v9  ;;  %v2949_v55 = vcombine.low %v2928_v44, %v2942_v45 }
  0xf9   :  { %v2950_v63 = vcombine.high %v2928_v44, %v2942_v45  ;;  %v19144_v44 = vld [vmem:[#allocation5 + $0x6a8] ss:$392 sps:$4 sm:$0xff]   ;;  %v19147_v45 = vld [vmem:[#allocation5 + $0x9b8] ss:$392 sps:$4 sm:$0xff]  }
  0xfa   :  { %v8002_v0 = vadd.f32 %v8001_v56, %v2737_v49  ;;  %v2945_v54 = vcombine.low %v2900_v42, %v2914_v43  ;;  %v19126_v56 = vld [vmem:[#allocation5 + $0x80] ss:$392 sps:$4 sm:$0xff]   ;;  %v2946_v62 = vcombine.high %v2900_v42, %v2914_v43  ;;  %v2992_v3 = vrot.slane %v2949_v55, %v19613_v9 }
  0xfb   :  { %v3006_v12 = vrot.slane %v2950_v63, %v19613_v9  ;;  %v19141_v42 = vld [vmem:[#allocation5 + $0x398] ss:$392 sps:$4 sm:$0xff]   ;;  %v3207_v57 = vrot.slane %v19147_v45, %v19613_v9 }
  0xfc   :  { %v8003_v4 = vadd.f32 %v8002_v0, %v2741_v53  ;;  %v3011_v0 = vcombine.low %v2971_v51, %v2999_v52  ;;  %v2964_v2 = vrot.slane %v2945_v54, %v19613_v9  ;;  %v2978_v11 = vrot.slane %v2946_v62, %v19613_v9  ;;  %v19140_v62 = vld [vmem:[#allocation5 + $0x8c] ss:$392 sps:$4 sm:$0xff]  }
  0xfd   :  { %v3179_v54 = vrot.slane %v19141_v42, %v19613_v9 }
  0xfe   :  { %v8004_v13 = vadd.f32 %v8003_v4, %v2738_v61  ;;  %v3029_v4 = vrot.slane %v19126_v56, %v19613_v9  ;;  %v3009_v19 = vcombine.low %v2964_v2, %v2992_v3  ;;  %v3013_v23 = vcombine.low %v2978_v11, %v3006_v12 }
  0xff   :  { %v3010_v31 = vcombine.high %v2964_v2, %v2992_v3  ;;  %v3014_v35 = vcombine.high %v2978_v11, %v3006_v12  ;;  %v3193_v56 = vrot.slane %v19144_v44, %v19613_v9  ;;  %v19149_v2 = vld [vmem:[#allocation5 + $0x9bc] ss:$392 sps:$4 sm:$0xff]   ;;  %v3172_v12 = vrot.slane %v19140_v62, %v19613_v9 }
 0x100   :  { %v8005_v17 = vadd.f32 %v8004_v13, %v2742_v1  ;;  %v3012_v13 = vcombine.high %v2971_v51, %v2999_v52  ;;  %v3079_v20 = vcombine.low %v3029_v4, %v3043_v5  ;;  %v3080_v24 = vcombine.high %v3029_v4, %v3043_v5 }
 0x101   :  { %v3219_v5 = vcombine.low %v3193_v56, %v3207_v57 }
 0x102   :  { %v8006_v25 = vadd.f32 %v8005_v17, %v2871_v10  ;;  %v19134_v17 = vld [vmem:[#allocation5 + $0x6a4] ss:$392 sps:$4 sm:$0xff]   ;;  %v3093_v32 = vrot.slane %v3079_v20, %v19613_v9  ;;  %v3107_v36 = vrot.slane %v3080_v24, %v19613_v9 }
 0x103   :  { %v3064_v29 = vrot.slane %v19134_v17, %v19613_v9 }
 0x104   :  { %v8007_v30 = vadd.f32 %v8006_v25, %v2875_v16  ;;  %v19131_v16 = vld [vmem:[#allocation5 + $0x394] ss:$392 sps:$4 sm:$0xff]   ;;  %v3084_v25 = vcombine.high %v3057_v7, %v3071_v8  ;;  %v3143_v43 = vcombine.low %v3093_v32, %v3121_v33  ;;  %v3144_v55 = vcombine.high %v3093_v32, %v3121_v33 }
 0x106   :  { %v8008_v37 = vadd.f32 %v8007_v30, %v2872_v22  ;;  %v3078_v30 = vrot.slane %v19137_v18, %v19613_v9  ;;  %v3257_v18 = vrot.slane %v3219_v5, %v19613_v9 }
 0x108   :  { %v8009_v41 = vadd.f32 %v8008_v37, %v2876_v28  ;;  %v3050_v28 = vrot.slane %v19131_v16, %v19613_v9  ;;  %v3135_v37 = vrot.slane %v3084_v25, %v19613_v9  ;;  %v3085_v40 = vcombine.low %v3064_v29, %v3078_v30 }
 0x109   :  { %v3086_v48 = vcombine.high %v3064_v29, %v3078_v30  ;;  %v19156_v29 = vld [vmem:[#allocation5 + $0x6b0] ss:$392 sps:$4 sm:$0xff]   ;;  %v19159_v30 = vld [vmem:[#allocation5 + $0x9c0] ss:$392 sps:$4 sm:$0xff]  }
 0x10a   :  { %v8010_v49 = vadd.f32 %v8009_v41, %v2873_v34  ;;  %v3081_v39 = vcombine.low %v3036_v27, %v3050_v28  ;;  %v19138_v41 = vld [vmem:[#allocation5 + $0x88] ss:$392 sps:$4 sm:$0xff]   ;;  %v3082_v47 = vcombine.high %v3036_v27, %v3050_v28  ;;  %v3128_v52 = vrot.slane %v3085_v40, %v19613_v9 }
 0x10b   :  { %v3142_v60 = vrot.slane %v3086_v48, %v19613_v9  ;;  %v19153_v27 = vld [vmem:[#allocation5 + $0x3a0] ss:$392 sps:$4 sm:$0xff]   ;;  %v3343_v42 = vrot.slane %v19159_v30, %v19613_v9 }
 0x10c   :  { %v8011_v53 = vadd.f32 %v8010_v49, %v2877_v38  ;;  %v3147_v49 = vcombine.low %v3107_v36, %v3135_v37  ;;  %v3100_v51 = vrot.slane %v3081_v39, %v19613_v9  ;;  %v3114_v59 = vrot.slane %v3082_v47, %v19613_v9  ;;  %v19152_v47 = vld [vmem:[#allocation5 + $0x94] ss:$392 sps:$4 sm:$0xff]  }
 0x10d   :  { %v3315_v39 = vrot.slane %v19153_v27, %v19613_v9 }
 0x10e   :  { %v8012_v61 = vadd.f32 %v8011_v53, %v2874_v46  ;;  %v3165_v53 = vrot.slane %v19138_v41, %v19613_v9  ;;  %v3145_v3 = vcombine.low %v3100_v51, %v3128_v52  ;;  %v3149_v7 = vcombine.low %v3114_v59, %v3142_v60 }
 0x10f   :  { %v3146_v16 = vcombine.high %v3100_v51, %v3128_v52  ;;  %v3150_v20 = vcombine.high %v3114_v59, %v3142_v60  ;;  %v3329_v41 = vrot.slane %v19156_v29, %v19613_v9  ;;  %v19161_v51 = vld [vmem:[#allocation5 + $0x9c4] ss:$392 sps:$4 sm:$0xff]   ;;  %v3308_v60 = vrot.slane %v19152_v47, %v19613_v9 }
 0x110   :  { %v8013_v1 = vadd.f32 %v8012_v61, %v2878_v50  ;;  %v3148_v61 = vcombine.high %v3107_v36, %v3135_v37  ;;  %v3215_v4 = vcombine.low %v3165_v53, %v3179_v54  ;;  %v3216_v8 = vcombine.high %v3165_v53, %v3179_v54 }
 0x111   :  { %v3355_v54 = vcombine.low %v3329_v41, %v3343_v42 }
 0x112   :  { %v8014_v10 = vadd.f32 %v8013_v1, %v3007_v58  ;;  %v19146_v1 = vld [vmem:[#allocation5 + $0x6ac] ss:$392 sps:$4 sm:$0xff]   ;;  %v3229_v17 = vrot.slane %v3215_v4, %v19613_v9  ;;  %v3243_v21 = vrot.slane %v3216_v8, %v19613_v9 }
 0x113   :  { %v3200_v14 = vrot.slane %v19146_v1, %v19613_v9 }
 0x114   :  { %v8015_v15 = vadd.f32 %v8014_v10, %v3011_v0  ;;  %v19143_v0 = vld [vmem:[#allocation5 + $0x39c] ss:$392 sps:$4 sm:$0xff]   ;;  %v3220_v10 = vcombine.high %v3193_v56, %v3207_v57  ;;  %v3279_v28 = vcombine.low %v3229_v17, %v3257_v18  ;;  %v3280_v40 = vcombine.high %v3229_v17, %v3257_v18 }
 0x116   :  { %v8016_v22 = vadd.f32 %v8015_v15, %v3008_v6  ;;  %v3214_v15 = vrot.slane %v19149_v2, %v19613_v9  ;;  %v3393_v2 = vrot.slane %v3355_v54, %v19613_v9 }
 0x118   :  { %v8017_v26 = vadd.f32 %v8016_v22, %v3012_v13  ;;  %v3186_v13 = vrot.slane %v19143_v0, %v19613_v9  ;;  %v3271_v22 = vrot.slane %v3220_v10, %v19613_v9  ;;  %v3221_v25 = vcombine.low %v3200_v14, %v3214_v15 }
 0x119   :  { %v3222_v33 = vcombine.high %v3200_v14, %v3214_v15  ;;  %v19168_v14 = vld [vmem:[#allocation5 + $0x6b8] ss:$392 sps:$4 sm:$0xff]   ;;  %v19171_v15 = vld [vmem:[#allocation5 + $0x9c8] ss:$392 sps:$4 sm:$0xff]  }
 0x11a   :  { %v8018_v34 = vadd.f32 %v8017_v26, %v3009_v19  ;;  %v3217_v24 = vcombine.low %v3172_v12, %v3186_v13  ;;  %v19150_v26 = vld [vmem:[#allocation5 + $0x90] ss:$392 sps:$4 sm:$0xff]   ;;  %v3218_v32 = vcombine.high %v3172_v12, %v3186_v13  ;;  %v3264_v37 = vrot.slane %v3221_v25, %v19613_v9 }
 0x11b   :  { %v3278_v45 = vrot.slane %v3222_v33, %v19613_v9  ;;  %v19165_v12 = vld [vmem:[#allocation5 + $0x3a8] ss:$392 sps:$4 sm:$0xff]   ;;  %v3479_v27 = vrot.slane %v19171_v15, %v19613_v9 }
 0x11c   :  { %v8019_v38 = vadd.f32 %v8018_v34, %v3013_v23  ;;  %v3283_v34 = vcombine.low %v3243_v21, %v3271_v22  ;;  %v3236_v36 = vrot.slane %v3217_v24, %v19613_v9  ;;  %v3250_v44 = vrot.slane %v3218_v32, %v19613_v9  ;;  %v19164_v32 = vld [vmem:[#allocation5 + $0x9c] ss:$392 sps:$4 sm:$0xff]  }
 0x11d   :  { %v3451_v24 = vrot.slane %v19165_v12, %v19613_v9 }
 0x11e   :  { %v8020_v46 = vadd.f32 %v8019_v38, %v3010_v31  ;;  %v3301_v38 = vrot.slane %v19150_v26, %v19613_v9  ;;  %v3281_v52 = vcombine.low %v3236_v36, %v3264_v37  ;;  %v3285_v56 = vcombine.low %v3250_v44, %v3278_v45 }
 0x11f   :  { %v3282_v0 = vcombine.high %v3236_v36, %v3264_v37  ;;  %v3286_v4 = vcombine.high %v3250_v44, %v3278_v45  ;;  %v3465_v26 = vrot.slane %v19168_v14, %v19613_v9  ;;  %v19173_v36 = vld [vmem:[#allocation5 + $0x9cc] ss:$392 sps:$4 sm:$0xff]   ;;  %v3444_v45 = vrot.slane %v19164_v32, %v19613_v9 }
 0x120   :  { %v8021_v50 = vadd.f32 %v8020_v46, %v3014_v35  ;;  %v3284_v46 = vcombine.high %v3243_v21, %v3271_v22  ;;  %v3351_v53 = vcombine.low %v3301_v38, %v3315_v39  ;;  %v3352_v57 = vcombine.high %v3301_v38, %v3315_v39 }
 0x121   :  { %v3491_v39 = vcombine.low %v3465_v26, %v3479_v27 }
 0x122   :  { %v8022_v58 = vadd.f32 %v8021_v50, %v3143_v43  ;;  %v19158_v50 = vld [vmem:[#allocation5 + $0x6b4] ss:$392 sps:$4 sm:$0xff]   ;;  %v3365_v1 = vrot.slane %v3351_v53, %v19613_v9  ;;  %v3379_v5 = vrot.slane %v3352_v57, %v19613_v9 }
 0x123   :  { %v3336_v62 = vrot.slane %v19158_v50, %v19613_v9 }
 0x124   :  { %v8023_v63 = vadd.f32 %v8022_v58, %v3147_v49  ;;  %v19155_v49 = vld [vmem:[#allocation5 + $0x3a4] ss:$392 sps:$4 sm:$0xff]   ;;  %v3356_v58 = vcombine.high %v3329_v41, %v3343_v42  ;;  %v3415_v13 = vcombine.low %v3365_v1, %v3393_v2  ;;  %v3416_v25 = vcombine.high %v3365_v1, %v3393_v2 }
 0x126   :  { %v8024_v6 = vadd.f32 %v8023_v63, %v3144_v55  ;;  %v3350_v63 = vrot.slane %v19161_v51, %v19613_v9  ;;  %v3529_v51 = vrot.slane %v3491_v39, %v19613_v9 }
 0x128   :  { %v8025_v11 = vadd.f32 %v8024_v6, %v3148_v61  ;;  %v3322_v61 = vrot.slane %v19155_v49, %v19613_v9  ;;  %v3407_v6 = vrot.slane %v3356_v58, %v19613_v9  ;;  %v3357_v10 = vcombine.low %v3336_v62, %v3350_v63 }
 0x129   :  { %v3358_v18 = vcombine.high %v3336_v62, %v3350_v63  ;;  %v19180_v62 = vld [vmem:[#allocation5 + $0x6c0] ss:$392 sps:$4 sm:$0xff]   ;;  %v19183_v63 = vld [vmem:[#allocation5 + $0x9d0] ss:$392 sps:$4 sm:$0xff]  }
 0x12a   :  { %v8026_v19 = vadd.f32 %v8025_v11, %v3145_v3  ;;  %v3353_v8 = vcombine.low %v3308_v60, %v3322_v61  ;;  %v19162_v11 = vld [vmem:[#allocation5 + $0x98] ss:$392 sps:$4 sm:$0xff]   ;;  %v3354_v17 = vcombine.high %v3308_v60, %v3322_v61  ;;  %v3400_v22 = vrot.slane %v3357_v10, %v19613_v9 }
 0x12b   :  { %v3414_v30 = vrot.slane %v3358_v18, %v19613_v9  ;;  %v19177_v60 = vld [vmem:[#allocation5 + $0x3b0] ss:$392 sps:$4 sm:$0xff]   ;;  %v3615_v12 = vrot.slane %v19183_v63, %v19613_v9 }
 0x12c   :  { %v8027_v23 = vadd.f32 %v8026_v19, %v3149_v7  ;;  %v3419_v19 = vcombine.low %v3379_v5, %v3407_v6  ;;  %v3372_v21 = vrot.slane %v3353_v8, %v19613_v9  ;;  %v3386_v29 = vrot.slane %v3354_v17, %v19613_v9  ;;  %v19176_v17 = vld [vmem:[#allocation5 + $0xa4] ss:$392 sps:$4 sm:$0xff]  }
 0x12d   :  { %v3587_v8 = vrot.slane %v19177_v60, %v19613_v9 }
 0x12e   :  { %v8028_v31 = vadd.f32 %v8027_v23, %v3146_v16  ;;  %v3437_v23 = vrot.slane %v19162_v11, %v19613_v9  ;;  %v3417_v37 = vcombine.low %v3372_v21, %v3400_v22  ;;  %v3421_v41 = vcombine.low %v3386_v29, %v3414_v30 }
 0x12f   :  { %v3418_v49 = vcombine.high %v3372_v21, %v3400_v22  ;;  %v3422_v53 = vcombine.high %v3386_v29, %v3414_v30  ;;  %v3601_v11 = vrot.slane %v19180_v62, %v19613_v9  ;;  %v19185_v21 = vld [vmem:[#allocation5 + $0x9d4] ss:$392 sps:$4 sm:$0xff]   ;;  %v3580_v30 = vrot.slane %v19176_v17, %v19613_v9 }
 0x130   :  { %v8029_v35 = vadd.f32 %v8028_v31, %v3150_v20  ;;  %v3420_v31 = vcombine.high %v3379_v5, %v3407_v6  ;;  %v3487_v38 = vcombine.low %v3437_v23, %v3451_v24  ;;  %v3488_v42 = vcombine.high %v3437_v23, %v3451_v24 }
 0x131   :  { %v3627_v24 = vcombine.low %v3601_v11, %v3615_v12 }
 0x132   :  { %v8030_v43 = vadd.f32 %v8029_v35, %v3279_v28  ;;  %v19170_v35 = vld [vmem:[#allocation5 + $0x6bc] ss:$392 sps:$4 sm:$0xff]   ;;  %v3501_v50 = vrot.slane %v3487_v38, %v19613_v9  ;;  %v3515_v54 = vrot.slane %v3488_v42, %v19613_v9 }
 0x133   :  { %v3472_v47 = vrot.slane %v19170_v35, %v19613_v9 }
 0x134   :  { %v8031_v48 = vadd.f32 %v8030_v43, %v3283_v34  ;;  %v19167_v34 = vld [vmem:[#allocation5 + $0x3ac] ss:$392 sps:$4 sm:$0xff]   ;;  %v3492_v43 = vcombine.high %v3465_v26, %v3479_v27  ;;  %v3551_v61 = vcombine.low %v3501_v50, %v3529_v51  ;;  %v3552_v10 = vcombine.high %v3501_v50, %v3529_v51 }
 0x136   :  { %v8032_v55 = vadd.f32 %v8031_v48, %v3280_v40  ;;  %v3486_v48 = vrot.slane %v19173_v36, %v19613_v9  ;;  %v3665_v36 = vrot.slane %v3627_v24, %v19613_v9 }
 0x138   :  { %v8033_v59 = vadd.f32 %v8032_v55, %v3284_v46  ;;  %v3458_v46 = vrot.slane %v19167_v34, %v19613_v9  ;;  %v3543_v55 = vrot.slane %v3492_v43, %v19613_v9  ;;  %v3493_v58 = vcombine.low %v3472_v47, %v3486_v48 }
 0x139   :  { %v3494_v2 = vcombine.high %v3472_v47, %v3486_v48  ;;  %v19192_v47 = vld [vmem:[#allocation5 + $0x6c8] ss:$392 sps:$4 sm:$0xff]   ;;  %v19195_v48 = vld [vmem:[#allocation5 + $0x9d8] ss:$392 sps:$4 sm:$0xff]  }
 0x13a   :  { %v8034_v3 = vadd.f32 %v8033_v59, %v3281_v52  ;;  %v3489_v57 = vcombine.low %v3444_v45, %v3458_v46  ;;  %v19174_v59 = vld [vmem:[#allocation5 + $0xa0] ss:$392 sps:$4 sm:$0xff]   ;;  %v3490_v1 = vcombine.high %v3444_v45, %v3458_v46  ;;  %v3536_v6 = vrot.slane %v3493_v58, %v19613_v9 }
 0x13b   :  { %v3550_v15 = vrot.slane %v3494_v2, %v19613_v9  ;;  %v19189_v45 = vld [vmem:[#allocation5 + $0x3b8] ss:$392 sps:$4 sm:$0xff]   ;;  %v3751_v60 = vrot.slane %v19195_v48, %v19613_v9 }
 0x13c   :  { %v8035_v7 = vadd.f32 %v8034_v3, %v3285_v56  ;;  %v3555_v3 = vcombine.low %v3515_v54, %v3543_v55  ;;  %v3508_v5 = vrot.slane %v3489_v57, %v19613_v9  ;;  %v3522_v14 = vrot.slane %v3490_v1, %v19613_v9  ;;  %v19188_v1 = vld [vmem:[#allocation5 + $0xac] ss:$392 sps:$4 sm:$0xff]  }
 0x13d   :  { %v3723_v57 = vrot.slane %v19189_v45, %v19613_v9 }
 0x13e   :  { %v8036_v16 = vadd.f32 %v8035_v7, %v3282_v0  ;;  %v3573_v7 = vrot.slane %v19174_v59, %v19613_v9  ;;  %v3553_v22 = vcombine.low %v3508_v5, %v3536_v6  ;;  %v3557_v26 = vcombine.low %v3522_v14, %v3550_v15 }
 0x13f   :  { %v3554_v34 = vcombine.high %v3508_v5, %v3536_v6  ;;  %v3558_v38 = vcombine.high %v3522_v14, %v3550_v15  ;;  %v3737_v59 = vrot.slane %v19192_v47, %v19613_v9  ;;  %v19197_v5 = vld [vmem:[#allocation5 + $0x9dc] ss:$392 sps:$4 sm:$0xff]   ;;  %v3716_v15 = vrot.slane %v19188_v1, %v19613_v9 }
 0x140   :  { %v8037_v20 = vadd.f32 %v8036_v16, %v3286_v4  ;;  %v3556_v16 = vcombine.high %v3515_v54, %v3543_v55  ;;  %v3623_v23 = vcombine.low %v3573_v7, %v3587_v8  ;;  %v3624_v27 = vcombine.high %v3573_v7, %v3587_v8 }
 0x141   :  { %v3763_v8 = vcombine.low %v3737_v59, %v3751_v60 }
 0x142   :  { %v8038_v28 = vadd.f32 %v8037_v20, %v3415_v13  ;;  %v19182_v20 = vld [vmem:[#allocation5 + $0x6c4] ss:$392 sps:$4 sm:$0xff]   ;;  %v3637_v35 = vrot.slane %v3623_v23, %v19613_v9  ;;  %v3651_v39 = vrot.slane %v3624_v27, %v19613_v9 }
 0x143   :  { %v3608_v32 = vrot.slane %v19182_v20, %v19613_v9 }
 0x144   :  { %v8039_v33 = vadd.f32 %v8038_v28, %v3419_v19  ;;  %v19179_v19 = vld [vmem:[#allocation5 + $0x3b4] ss:$392 sps:$4 sm:$0xff]   ;;  %v3628_v28 = vcombine.high %v3601_v11, %v3615_v12  ;;  %v3687_v46 = vcombine.low %v3637_v35, %v3665_v36  ;;  %v3688_v58 = vcombine.high %v3637_v35, %v3665_v36 }
 0x146   :  { %v8040_v40 = vadd.f32 %v8039_v33, %v3416_v25  ;;  %v3622_v33 = vrot.slane %v19185_v21, %v19613_v9  ;;  %v3801_v21 = vrot.slane %v3763_v8, %v19613_v9 }
 0x148   :  { %v8041_v44 = vadd.f32 %v8040_v40, %v3420_v31  ;;  %v3594_v31 = vrot.slane %v19179_v19, %v19613_v9  ;;  %v3679_v40 = vrot.slane %v3628_v28, %v19613_v9  ;;  %v3629_v43 = vcombine.low %v3608_v32, %v3622_v33 }
 0x149   :  { %v3630_v51 = vcombine.high %v3608_v32, %v3622_v33  ;;  %v19204_v32 = vld [vmem:[#allocation5 + $0x6d0] ss:$392 sps:$4 sm:$0xff]   ;;  %v19207_v33 = vld [vmem:[#allocation5 + $0x9e0] ss:$392 sps:$4 sm:$0xff]  }
 0x14a   :  { %v8042_v52 = vadd.f32 %v8041_v44, %v3417_v37  ;;  %v3625_v42 = vcombine.low %v3580_v30, %v3594_v31  ;;  %v19186_v44 = vld [vmem:[#allocation5 + $0xa8] ss:$392 sps:$4 sm:$0xff]   ;;  %v3626_v50 = vcombine.high %v3580_v30, %v3594_v31  ;;  %v3672_v55 = vrot.slane %v3629_v43, %v19613_v9 }
 0x14b   :  { %v3686_v63 = vrot.slane %v3630_v51, %v19613_v9  ;;  %v19201_v30 = vld [vmem:[#allocation5 + $0x3c0] ss:$392 sps:$4 sm:$0xff]   ;;  %v3887_v45 = vrot.slane %v19207_v33, %v19613_v9 }
 0x14c   :  { %v8043_v56 = vadd.f32 %v8042_v52, %v3421_v41  ;;  %v3691_v52 = vcombine.low %v3651_v39, %v3679_v40  ;;  %v3644_v54 = vrot.slane %v3625_v42, %v19613_v9  ;;  %v3658_v62 = vrot.slane %v3626_v50, %v19613_v9  ;;  %v19200_v50 = vld [vmem:[#allocation5 + $0xb4] ss:$392 sps:$4 sm:$0xff]  }
 0x14d   :  { %v3859_v42 = vrot.slane %v19201_v30, %v19613_v9 }
 0x14e   :  { %v8044_v0 = vadd.f32 %v8043_v56, %v3418_v49  ;;  %v3709_v56 = vrot.slane %v19186_v44, %v19613_v9  ;;  %v3689_v6 = vcombine.low %v3644_v54, %v3672_v55  ;;  %v3693_v11 = vcombine.low %v3658_v62, %v3686_v63 }
 0x14f   :  { %v3690_v19 = vcombine.high %v3644_v54, %v3672_v55  ;;  %v3694_v23 = vcombine.high %v3658_v62, %v3686_v63  ;;  %v3873_v44 = vrot.slane %v19204_v32, %v19613_v9  ;;  %v19209_v54 = vld [vmem:[#allocation5 + $0x9e4] ss:$392 sps:$4 sm:$0xff]   ;;  %v3852_v63 = vrot.slane %v19200_v50, %v19613_v9 }
 0x150   :  { %v8045_v4 = vadd.f32 %v8044_v0, %v3422_v53  ;;  %v3692_v0 = vcombine.high %v3651_v39, %v3679_v40  ;;  %v3759_v7 = vcombine.low %v3709_v56, %v3723_v57  ;;  %v3760_v12 = vcombine.high %v3709_v56, %v3723_v57 }
 0x151   :  { %v3899_v57 = vcombine.low %v3873_v44, %v3887_v45 }
 0x152   :  { %v8046_v13 = vadd.f32 %v8045_v4, %v3551_v61  ;;  %v19194_v4 = vld [vmem:[#allocation5 + $0x6cc] ss:$392 sps:$4 sm:$0xff]   ;;  %v3773_v20 = vrot.slane %v3759_v7, %v19613_v9  ;;  %v3787_v24 = vrot.slane %v3760_v12, %v19613_v9 }
 0x153   :  { %v3744_v17 = vrot.slane %v19194_v4, %v19613_v9 }
 0x154   :  { %v8047_v18 = vadd.f32 %v8046_v13, %v3555_v3  ;;  %v19191_v3 = vld [vmem:[#allocation5 + $0x3bc] ss:$392 sps:$4 sm:$0xff]   ;;  %v3764_v13 = vcombine.high %v3737_v59, %v3751_v60  ;;  %v3823_v31 = vcombine.low %v3773_v20, %v3801_v21  ;;  %v3824_v43 = vcombine.high %v3773_v20, %v3801_v21 }
 0x156   :  { %v8048_v25 = vadd.f32 %v8047_v18, %v3552_v10  ;;  %v3758_v18 = vrot.slane %v19197_v5, %v19613_v9  ;;  %v3937_v5 = vrot.slane %v3899_v57, %v19613_v9 }
 0x158   :  { %v8049_v29 = vadd.f32 %v8048_v25, %v3556_v16  ;;  %v3730_v16 = vrot.slane %v19191_v3, %v19613_v9  ;;  %v3815_v25 = vrot.slane %v3764_v13, %v19613_v9  ;;  %v3765_v28 = vcombine.low %v3744_v17, %v3758_v18 }
 0x159   :  { %v3766_v36 = vcombine.high %v3744_v17, %v3758_v18  ;;  %v19216_v17 = vld [vmem:[#allocation5 + $0x6d8] ss:$392 sps:$4 sm:$0xff]   ;;  %v19219_v18 = vld [vmem:[#allocation5 + $0x9e8] ss:$392 sps:$4 sm:$0xff]  }
 0x15a   :  { %v8050_v37 = vadd.f32 %v8049_v29, %v3553_v22  ;;  %v3761_v27 = vcombine.low %v3716_v15, %v3730_v16  ;;  %v19198_v29 = vld [vmem:[#allocation5 + $0xb0] ss:$392 sps:$4 sm:$0xff]   ;;  %v3762_v35 = vcombine.high %v3716_v15, %v3730_v16  ;;  %v3808_v40 = vrot.slane %v3765_v28, %v19613_v9 }
 0x15b   :  { %v3822_v48 = vrot.slane %v3766_v36, %v19613_v9  ;;  %v19213_v15 = vld [vmem:[#allocation5 + $0x3c8] ss:$392 sps:$4 sm:$0xff]   ;;  %v4023_v30 = vrot.slane %v19219_v18, %v19613_v9 }
 0x15c   :  { %v8051_v41 = vadd.f32 %v8050_v37, %v3557_v26  ;;  %v3827_v37 = vcombine.low %v3787_v24, %v3815_v25  ;;  %v3780_v39 = vrot.slane %v3761_v27, %v19613_v9  ;;  %v3794_v47 = vrot.slane %v3762_v35, %v19613_v9  ;;  %v19212_v35 = vld [vmem:[#allocation5 + $0xbc] ss:$392 sps:$4 sm:$0xff]  }
 0x15d   :  { %v3995_v27 = vrot.slane %v19213_v15, %v19613_v9 }
 0x15e   :  { %v8052_v49 = vadd.f32 %v8051_v41, %v3554_v34  ;;  %v3845_v41 = vrot.slane %v19198_v29, %v19613_v9  ;;  %v3825_v55 = vcombine.low %v3780_v39, %v3808_v40  ;;  %v3829_v59 = vcombine.low %v3794_v47, %v3822_v48 }
 0x15f   :  { %v3826_v3 = vcombine.high %v3780_v39, %v3808_v40  ;;  %v3830_v7 = vcombine.high %v3794_v47, %v3822_v48  ;;  %v4009_v29 = vrot.slane %v19216_v17, %v19613_v9  ;;  %v19221_v39 = vld [vmem:[#allocation5 + $0x9ec] ss:$392 sps:$4 sm:$0xff]   ;;  %v3988_v48 = vrot.slane %v19212_v35, %v19613_v9 }
 0x160   :  { %v8053_v53 = vadd.f32 %v8052_v49, %v3558_v38  ;;  %v3828_v49 = vcombine.high %v3787_v24, %v3815_v25  ;;  %v3895_v56 = vcombine.low %v3845_v41, %v3859_v42  ;;  %v3896_v60 = vcombine.high %v3845_v41, %v3859_v42 }
 0x161   :  { %v4035_v42 = vcombine.low %v4009_v29, %v4023_v30 }
 0x162   :  { %v8054_v61 = vadd.f32 %v8053_v53, %v3687_v46  ;;  %v19206_v53 = vld [vmem:[#allocation5 + $0x6d4] ss:$392 sps:$4 sm:$0xff]   ;;  %v3909_v4 = vrot.slane %v3895_v56, %v19613_v9  ;;  %v3923_v8 = vrot.slane %v3896_v60, %v19613_v9 }
 0x163   :  { %v3880_v1 = vrot.slane %v19206_v53, %v19613_v9 }
 0x164   :  { %v8055_v2 = vadd.f32 %v8054_v61, %v3691_v52  ;;  %v19203_v52 = vld [vmem:[#allocation5 + $0x3c4] ss:$392 sps:$4 sm:$0xff]   ;;  %v3900_v61 = vcombine.high %v3873_v44, %v3887_v45  ;;  %v3959_v16 = vcombine.low %v3909_v4, %v3937_v5  ;;  %v3960_v28 = vcombine.high %v3909_v4, %v3937_v5 }
 0x166   :  { %v8056_v10 = vadd.f32 %v8055_v2, %v3688_v58  ;;  %v3894_v2 = vrot.slane %v19209_v54, %v19613_v9  ;;  %v4073_v54 = vrot.slane %v4035_v42, %v19613_v9 }
 0x168   :  { %v8057_v14 = vadd.f32 %v8056_v10, %v3692_v0  ;;  %v3866_v0 = vrot.slane %v19203_v52, %v19613_v9  ;;  %v3951_v10 = vrot.slane %v3900_v61, %v19613_v9  ;;  %v3901_v13 = vcombine.low %v3880_v1, %v3894_v2 }
 0x169   :  { %v3902_v21 = vcombine.high %v3880_v1, %v3894_v2  ;;  %v19228_v1 = vld [vmem:[#allocation5 + $0x6e0] ss:$392 sps:$4 sm:$0xff]   ;;  %v19231_v2 = vld [vmem:[#allocation5 + $0x9f0] ss:$392 sps:$4 sm:$0xff]  }
 0x16a   :  { %v8058_v22 = vadd.f32 %v8057_v14, %v3689_v6  ;;  %v3897_v12 = vcombine.low %v3852_v63, %v3866_v0  ;;  %v19210_v14 = vld [vmem:[#allocation5 + $0xb8] ss:$392 sps:$4 sm:$0xff]   ;;  %v3898_v20 = vcombine.high %v3852_v63, %v3866_v0  ;;  %v3944_v25 = vrot.slane %v3901_v13, %v19613_v9 }
 0x16b   :  { %v3958_v33 = vrot.slane %v3902_v21, %v19613_v9  ;;  %v19225_v63 = vld [vmem:[#allocation5 + $0x3d0] ss:$392 sps:$4 sm:$0xff]   ;;  %v4159_v15 = vrot.slane %v19231_v2, %v19613_v9 }
 0x16c   :  { %v8059_v26 = vadd.f32 %v8058_v22, %v3693_v11  ;;  %v3963_v22 = vcombine.low %v3923_v8, %v3951_v10  ;;  %v3916_v24 = vrot.slane %v3897_v12, %v19613_v9  ;;  %v3930_v32 = vrot.slane %v3898_v20, %v19613_v9  ;;  %v19224_v20 = vld [vmem:[#allocation5 + $0xc4] ss:$392 sps:$4 sm:$0xff]  }
 0x16d   :  { %v4131_v12 = vrot.slane %v19225_v63, %v19613_v9 }
 0x16e   :  { %v8060_v34 = vadd.f32 %v8059_v26, %v3690_v19  ;;  %v3981_v26 = vrot.slane %v19210_v14, %v19613_v9  ;;  %v3961_v40 = vcombine.low %v3916_v24, %v3944_v25  ;;  %v3965_v44 = vcombine.low %v3930_v32, %v3958_v33 }
 0x16f   :  { %v3962_v52 = vcombine.high %v3916_v24, %v3944_v25  ;;  %v3966_v56 = vcombine.high %v3930_v32, %v3958_v33  ;;  %v4145_v14 = vrot.slane %v19228_v1, %v19613_v9  ;;  %v19233_v24 = vld [vmem:[#allocation5 + $0x9f4] ss:$392 sps:$4 sm:$0xff]   ;;  %v4124_v33 = vrot.slane %v19224_v20, %v19613_v9 }
 0x170   :  { %v8061_v38 = vadd.f32 %v8060_v34, %v3694_v23  ;;  %v3964_v34 = vcombine.high %v3923_v8, %v3951_v10  ;;  %v4031_v41 = vcombine.low %v3981_v26, %v3995_v27  ;;  %v4032_v45 = vcombine.high %v3981_v26, %v3995_v27 }
 0x171   :  { %v4171_v27 = vcombine.low %v4145_v14, %v4159_v15 }
 0x172   :  { %v8062_v46 = vadd.f32 %v8061_v38, %v3823_v31  ;;  %v19218_v38 = vld [vmem:[#allocation5 + $0x6dc] ss:$392 sps:$4 sm:$0xff]   ;;  %v4045_v53 = vrot.slane %v4031_v41, %v19613_v9  ;;  %v4059_v57 = vrot.slane %v4032_v45, %v19613_v9 }
 0x173   :  { %v4016_v50 = vrot.slane %v19218_v38, %v19613_v9 }
 0x174   :  { %v8063_v51 = vadd.f32 %v8062_v46, %v3827_v37  ;;  %v19215_v37 = vld [vmem:[#allocation5 + $0x3cc] ss:$392 sps:$4 sm:$0xff]   ;;  %v4036_v46 = vcombine.high %v4009_v29, %v4023_v30  ;;  %v4095_v0 = vcombine.low %v4045_v53, %v4073_v54  ;;  %v4096_v13 = vcombine.high %v4045_v53, %v4073_v54 }
 0x176   :  { %v8064_v58 = vadd.f32 %v8063_v51, %v3824_v43  ;;  %v4030_v51 = vrot.slane %v19221_v39, %v19613_v9  ;;  %v4209_v39 = vrot.slane %v4171_v27, %v19613_v9 }
 0x178   :  { %v8065_v62 = vadd.f32 %v8064_v58, %v3828_v49  ;;  %v4002_v49 = vrot.slane %v19215_v37, %v19613_v9  ;;  %v4087_v58 = vrot.slane %v4036_v46, %v19613_v9  ;;  %v4037_v61 = vcombine.low %v4016_v50, %v4030_v51 }
 0x179   :  { %v4038_v5 = vcombine.high %v4016_v50, %v4030_v51  ;;  %v19240_v50 = vld [vmem:[#allocation5 + $0x6e8] ss:$392 sps:$4 sm:$0xff]   ;;  %v19243_v51 = vld [vmem:[#allocation5 + $0x9f8] ss:$392 sps:$4 sm:$0xff]  }
 0x17a   :  { %v8066_v6 = vadd.f32 %v8065_v62, %v3825_v55  ;;  %v4033_v60 = vcombine.low %v3988_v48, %v4002_v49  ;;  %v19222_v62 = vld [vmem:[#allocation5 + $0xc0] ss:$392 sps:$4 sm:$0xff]   ;;  %v4034_v4 = vcombine.high %v3988_v48, %v4002_v49  ;;  %v4080_v10 = vrot.slane %v4037_v61, %v19613_v9 }
 0x17b   :  { %v4094_v18 = vrot.slane %v4038_v5, %v19613_v9  ;;  %v19237_v48 = vld [vmem:[#allocation5 + $0x3d8] ss:$392 sps:$4 sm:$0xff]   ;;  %v4295_v63 = vrot.slane %v19243_v51, %v19613_v9 }
 0x17c   :  { %v8067_v11 = vadd.f32 %v8066_v6, %v3829_v59  ;;  %v4099_v6 = vcombine.low %v4059_v57, %v4087_v58  ;;  %v4052_v8 = vrot.slane %v4033_v60, %v19613_v9  ;;  %v4066_v17 = vrot.slane %v4034_v4, %v19613_v9  ;;  %v19236_v4 = vld [vmem:[#allocation5 + $0xcc] ss:$392 sps:$4 sm:$0xff]  }
 0x17d   :  { %v4267_v60 = vrot.slane %v19237_v48, %v19613_v9 }
 0x17e   :  { %v8068_v19 = vadd.f32 %v8067_v11, %v3826_v3  ;;  %v4117_v11 = vrot.slane %v19222_v62, %v19613_v9  ;;  %v4097_v25 = vcombine.low %v4052_v8, %v4080_v10  ;;  %v4101_v29 = vcombine.low %v4066_v17, %v4094_v18 }
 0x17f   :  { %v4098_v37 = vcombine.high %v4052_v8, %v4080_v10  ;;  %v4102_v41 = vcombine.high %v4066_v17, %v4094_v18  ;;  %v4281_v62 = vrot.slane %v19240_v50, %v19613_v9  ;;  %v19245_v8 = vld [vmem:[#allocation5 + $0x9fc] ss:$392 sps:$4 sm:$0xff]   ;;  %v4260_v18 = vrot.slane %v19236_v4, %v19613_v9 }
 0x180   :  { %v8069_v23 = vadd.f32 %v8068_v19, %v3830_v7  ;;  %v4100_v19 = vcombine.high %v4059_v57, %v4087_v58  ;;  %v4167_v26 = vcombine.low %v4117_v11, %v4131_v12  ;;  %v4168_v30 = vcombine.high %v4117_v11, %v4131_v12 }
 0x181   :  { %v4307_v12 = vcombine.low %v4281_v62, %v4295_v63 }
 0x182   :  { %v8070_v31 = vadd.f32 %v8069_v23, %v3959_v16  ;;  %v19230_v23 = vld [vmem:[#allocation5 + $0x6e4] ss:$392 sps:$4 sm:$0xff]   ;;  %v4181_v38 = vrot.slane %v4167_v26, %v19613_v9  ;;  %v4195_v42 = vrot.slane %v4168_v30, %v19613_v9 }
 0x183   :  { %v4152_v35 = vrot.slane %v19230_v23, %v19613_v9 }
 0x184   :  { %v8071_v36 = vadd.f32 %v8070_v31, %v3963_v22  ;;  %v19227_v22 = vld [vmem:[#allocation5 + $0x3d4] ss:$392 sps:$4 sm:$0xff]   ;;  %v4172_v31 = vcombine.high %v4145_v14, %v4159_v15  ;;  %v4231_v49 = vcombine.low %v4181_v38, %v4209_v39  ;;  %v4232_v61 = vcombine.high %v4181_v38, %v4209_v39 }
 0x186   :  { %v8072_v43 = vadd.f32 %v8071_v36, %v3960_v28  ;;  %v4166_v36 = vrot.slane %v19233_v24, %v19613_v9  ;;  %v4345_v24 = vrot.slane %v4307_v12, %v19613_v9 }
 0x188   :  { %v8073_v47 = vadd.f32 %v8072_v43, %v3964_v34  ;;  %v4138_v34 = vrot.slane %v19227_v22, %v19613_v9  ;;  %v4223_v43 = vrot.slane %v4172_v31, %v19613_v9  ;;  %v4173_v46 = vcombine.low %v4152_v35, %v4166_v36 }
 0x189   :  { %v4174_v54 = vcombine.high %v4152_v35, %v4166_v36  ;;  %v19252_v35 = vld [vmem:[#allocation5 + $0x6f0] ss:$392 sps:$4 sm:$0xff]   ;;  %v19255_v36 = vld [vmem:[#allocation5 + $0xa00] ss:$392 sps:$4 sm:$0xff]  }
 0x18a   :  { %v8074_v55 = vadd.f32 %v8073_v47, %v3961_v40  ;;  %v4169_v45 = vcombine.low %v4124_v33, %v4138_v34  ;;  %v19234_v47 = vld [vmem:[#allocation5 + $0xc8] ss:$392 sps:$4 sm:$0xff]   ;;  %v4170_v53 = vcombine.high %v4124_v33, %v4138_v34  ;;  %v4216_v58 = vrot.slane %v4173_v46, %v19613_v9 }
 0x18b   :  { %v4230_v2 = vrot.slane %v4174_v54, %v19613_v9  ;;  %v19249_v33 = vld [vmem:[#allocation5 + $0x3e0] ss:$392 sps:$4 sm:$0xff]   ;;  %v4431_v48 = vrot.slane %v19255_v36, %v19613_v9 }
 0x18c   :  { %v8075_v59 = vadd.f32 %v8074_v55, %v3965_v44  ;;  %v4235_v55 = vcombine.low %v4195_v42, %v4223_v43  ;;  %v4188_v57 = vrot.slane %v4169_v45, %v19613_v9  ;;  %v4202_v1 = vrot.slane %v4170_v53, %v19613_v9  ;;  %v19248_v53 = vld [vmem:[#allocation5 + $0xd4] ss:$392 sps:$4 sm:$0xff]  }
 0x18d   :  { %v4403_v45 = vrot.slane %v19249_v33, %v19613_v9 }
 0x18e   :  { %v8076_v3 = vadd.f32 %v8075_v59, %v3962_v52  ;;  %v4253_v59 = vrot.slane %v19234_v47, %v19613_v9  ;;  %v4233_v10 = vcombine.low %v4188_v57, %v4216_v58  ;;  %v4237_v14 = vcombine.low %v4202_v1, %v4230_v2 }
 0x18f   :  { %v4234_v22 = vcombine.high %v4188_v57, %v4216_v58  ;;  %v4238_v26 = vcombine.high %v4202_v1, %v4230_v2  ;;  %v4417_v47 = vrot.slane %v19252_v35, %v19613_v9  ;;  %v19257_v57 = vld [vmem:[#allocation5 + $0xa04] ss:$392 sps:$4 sm:$0xff]   ;;  %v4396_v2 = vrot.slane %v19248_v53, %v19613_v9 }
 0x190   :  { %v8077_v7 = vadd.f32 %v8076_v3, %v3966_v56  ;;  %v4236_v3 = vcombine.high %v4195_v42, %v4223_v43  ;;  %v4303_v11 = vcombine.low %v4253_v59, %v4267_v60  ;;  %v4304_v15 = vcombine.high %v4253_v59, %v4267_v60 }
 0x191   :  { %v4443_v60 = vcombine.low %v4417_v47, %v4431_v48 }
 0x192   :  { %v8078_v16 = vadd.f32 %v8077_v7, %v4095_v0  ;;  %v19242_v7 = vld [vmem:[#allocation5 + $0x6ec] ss:$392 sps:$4 sm:$0xff]   ;;  %v4317_v23 = vrot.slane %v4303_v11, %v19613_v9  ;;  %v4331_v27 = vrot.slane %v4304_v15, %v19613_v9 }
 0x193   :  { %v4288_v20 = vrot.slane %v19242_v7, %v19613_v9 }
 0x194   :  { %v8079_v21 = vadd.f32 %v8078_v16, %v4099_v6  ;;  %v19239_v6 = vld [vmem:[#allocation5 + $0x3dc] ss:$392 sps:$4 sm:$0xff]   ;;  %v4308_v16 = vcombine.high %v4281_v62, %v4295_v63  ;;  %v4367_v34 = vcombine.low %v4317_v23, %v4345_v24  ;;  %v4368_v46 = vcombine.high %v4317_v23, %v4345_v24 }
 0x196   :  { %v8080_v28 = vadd.f32 %v8079_v21, %v4096_v13  ;;  %v4302_v21 = vrot.slane %v19245_v8, %v19613_v9  ;;  %v4481_v8 = vrot.slane %v4443_v60, %v19613_v9 }
 0x198   :  { %v8081_v32 = vadd.f32 %v8080_v28, %v4100_v19  ;;  %v4274_v19 = vrot.slane %v19239_v6, %v19613_v9  ;;  %v4359_v28 = vrot.slane %v4308_v16, %v19613_v9  ;;  %v4309_v31 = vcombine.low %v4288_v20, %v4302_v21 }
 0x199   :  { %v4310_v39 = vcombine.high %v4288_v20, %v4302_v21  ;;  %v19264_v20 = vld [vmem:[#allocation5 + $0x6f8] ss:$392 sps:$4 sm:$0xff]   ;;  %v19267_v21 = vld [vmem:[#allocation5 + $0xa08] ss:$392 sps:$4 sm:$0xff]  }
 0x19a   :  { %v8082_v40 = vadd.f32 %v8081_v32, %v4097_v25  ;;  %v4305_v30 = vcombine.low %v4260_v18, %v4274_v19  ;;  %v19246_v32 = vld [vmem:[#allocation5 + $0xd0] ss:$392 sps:$4 sm:$0xff]   ;;  %v4306_v38 = vcombine.high %v4260_v18, %v4274_v19  ;;  %v4352_v43 = vrot.slane %v4309_v31, %v19613_v9 }
 0x19b   :  { %v4366_v51 = vrot.slane %v4310_v39, %v19613_v9  ;;  %v19261_v18 = vld [vmem:[#allocation5 + $0x3e8] ss:$392 sps:$4 sm:$0xff]   ;;  %v4567_v33 = vrot.slane %v19267_v21, %v19613_v9 }
 0x19c   :  { %v8083_v44 = vadd.f32 %v8082_v40, %v4101_v29  ;;  %v4371_v40 = vcombine.low %v4331_v27, %v4359_v28  ;;  %v4324_v42 = vrot.slane %v4305_v30, %v19613_v9  ;;  %v4338_v50 = vrot.slane %v4306_v38, %v19613_v9  ;;  %v19260_v38 = vld [vmem:[#allocation5 + $0xdc] ss:$392 sps:$4 sm:$0xff]  }
 0x19d   :  { %v4539_v30 = vrot.slane %v19261_v18, %v19613_v9 }
 0x19e   :  { %v8084_v52 = vadd.f32 %v8083_v44, %v4098_v37  ;;  %v4389_v44 = vrot.slane %v19246_v32, %v19613_v9  ;;  %v4369_v58 = vcombine.low %v4324_v42, %v4352_v43  ;;  %v4373_v62 = vcombine.low %v4338_v50, %v4366_v51 }
 0x19f   :  { %v4370_v6 = vcombine.high %v4324_v42, %v4352_v43  ;;  %v4374_v11 = vcombine.high %v4338_v50, %v4366_v51  ;;  %v4553_v32 = vrot.slane %v19264_v20, %v19613_v9  ;;  %v19269_v42 = vld [vmem:[#allocation5 + $0xa0c] ss:$392 sps:$4 sm:$0xff]   ;;  %v4532_v51 = vrot.slane %v19260_v38, %v19613_v9 }
 0x1a0   :  { %v8085_v56 = vadd.f32 %v8084_v52, %v4102_v41  ;;  %v4372_v52 = vcombine.high %v4331_v27, %v4359_v28  ;;  %v4439_v59 = vcombine.low %v4389_v44, %v4403_v45  ;;  %v4440_v63 = vcombine.high %v4389_v44, %v4403_v45 }
 0x1a1   :  { %v4579_v45 = vcombine.low %v4553_v32, %v4567_v33 }
 0x1a2   :  { %v8086_v0 = vadd.f32 %v8085_v56, %v4231_v49  ;;  %v19254_v56 = vld [vmem:[#allocation5 + $0x6f4] ss:$392 sps:$4 sm:$0xff]   ;;  %v4453_v7 = vrot.slane %v4439_v59, %v19613_v9  ;;  %v4467_v12 = vrot.slane %v4440_v63, %v19613_v9 }
 0x1a3   :  { %v4424_v4 = vrot.slane %v19254_v56, %v19613_v9 }
 0x1a4   :  { %v8087_v5 = vadd.f32 %v8086_v0, %v4235_v55  ;;  %v19251_v55 = vld [vmem:[#allocation5 + $0x3e4] ss:$392 sps:$4 sm:$0xff]   ;;  %v4444_v0 = vcombine.high %v4417_v47, %v4431_v48  ;;  %v4503_v19 = vcombine.low %v4453_v7, %v4481_v8  ;;  %v4504_v31 = vcombine.high %v4453_v7, %v4481_v8 }
 0x1a6   :  { %v8088_v13 = vadd.f32 %v8087_v5, %v4232_v61  ;;  %v4438_v5 = vrot.slane %v19257_v57, %v19613_v9  ;;  %v4617_v57 = vrot.slane %v4579_v45, %v19613_v9 }
 0x1a8   :  { %v8089_v17 = vadd.f32 %v8088_v13, %v4236_v3  ;;  %v4410_v3 = vrot.slane %v19251_v55, %v19613_v9  ;;  %v4495_v13 = vrot.slane %v4444_v0, %v19613_v9  ;;  %v4445_v16 = vcombine.low %v4424_v4, %v4438_v5 }
 0x1a9   :  { %v4446_v24 = vcombine.high %v4424_v4, %v4438_v5  ;;  %v19276_v4 = vld [vmem:[#allocation5 + $0x700] ss:$392 sps:$4 sm:$0xff]   ;;  %v19279_v5 = vld [vmem:[#allocation5 + $0xa10] ss:$392 sps:$4 sm:$0xff]  }
 0x1aa   :  { %v8090_v25 = vadd.f32 %v8089_v17, %v4233_v10  ;;  %v4441_v15 = vcombine.low %v4396_v2, %v4410_v3  ;;  %v19258_v17 = vld [vmem:[#allocation5 + $0xd8] ss:$392 sps:$4 sm:$0xff]   ;;  %v4442_v23 = vcombine.high %v4396_v2, %v4410_v3  ;;  %v4488_v28 = vrot.slane %v4445_v16, %v19613_v9 }
 0x1ab   :  { %v4502_v36 = vrot.slane %v4446_v24, %v19613_v9  ;;  %v19273_v2 = vld [vmem:[#allocation5 + $0x3f0] ss:$392 sps:$4 sm:$0xff]   ;;  %v4703_v18 = vrot.slane %v19279_v5, %v19613_v9 }
 0x1ac   :  { %v8091_v29 = vadd.f32 %v8090_v25, %v4237_v14  ;;  %v4507_v25 = vcombine.low %v4467_v12, %v4495_v13  ;;  %v4460_v27 = vrot.slane %v4441_v15, %v19613_v9  ;;  %v4474_v35 = vrot.slane %v4442_v23, %v19613_v9  ;;  %v19272_v23 = vld [vmem:[#allocation5 + $0xe4] ss:$392 sps:$4 sm:$0xff]  }
 0x1ad   :  { %v4675_v15 = vrot.slane %v19273_v2, %v19613_v9 }
 0x1ae   :  { %v8092_v37 = vadd.f32 %v8091_v29, %v4234_v22  ;;  %v4525_v29 = vrot.slane %v19258_v17, %v19613_v9  ;;  %v4505_v43 = vcombine.low %v4460_v27, %v4488_v28  ;;  %v4509_v47 = vcombine.low %v4474_v35, %v4502_v36 }
 0x1af   :  { %v4506_v55 = vcombine.high %v4460_v27, %v4488_v28  ;;  %v4510_v59 = vcombine.high %v4474_v35, %v4502_v36  ;;  %v4689_v17 = vrot.slane %v19276_v4, %v19613_v9  ;;  %v19281_v27 = vld [vmem:[#allocation5 + $0xa14] ss:$392 sps:$4 sm:$0xff]   ;;  %v4668_v36 = vrot.slane %v19272_v23, %v19613_v9 }
 0x1b0   :  { %v8093_v41 = vadd.f32 %v8092_v37, %v4238_v26  ;;  %v4508_v37 = vcombine.high %v4467_v12, %v4495_v13  ;;  %v4575_v44 = vcombine.low %v4525_v29, %v4539_v30  ;;  %v4576_v48 = vcombine.high %v4525_v29, %v4539_v30 }
 0x1b1   :  { %v4715_v30 = vcombine.low %v4689_v17, %v4703_v18 }
 0x1b2   :  { %v8094_v49 = vadd.f32 %v8093_v41, %v4367_v34  ;;  %v19266_v41 = vld [vmem:[#allocation5 + $0x6fc] ss:$392 sps:$4 sm:$0xff]   ;;  %v4589_v56 = vrot.slane %v4575_v44, %v19613_v9  ;;  %v4603_v60 = vrot.slane %v4576_v48, %v19613_v9 }
 0x1b3   :  { %v4560_v53 = vrot.slane %v19266_v41, %v19613_v9 }
 0x1b4   :  { %v8095_v54 = vadd.f32 %v8094_v49, %v4371_v40  ;;  %v19263_v40 = vld [vmem:[#allocation5 + $0x3ec] ss:$392 sps:$4 sm:$0xff]   ;;  %v4580_v49 = vcombine.high %v4553_v32, %v4567_v33  ;;  %v4639_v3 = vcombine.low %v4589_v56, %v4617_v57  ;;  %v4640_v16 = vcombine.high %v4589_v56, %v4617_v57 }
 0x1b6   :  { %v8096_v61 = vadd.f32 %v8095_v54, %v4368_v46  ;;  %v4574_v54 = vrot.slane %v19269_v42, %v19613_v9  ;;  %v4753_v42 = vrot.slane %v4715_v30, %v19613_v9 }
 0x1b8   :  { %v8097_v1 = vadd.f32 %v8096_v61, %v4372_v52  ;;  %v4546_v52 = vrot.slane %v19263_v40, %v19613_v9  ;;  %v4631_v61 = vrot.slane %v4580_v49, %v19613_v9  ;;  %v4581_v0 = vcombine.low %v4560_v53, %v4574_v54 }
 0x1b9   :  { %v4582_v8 = vcombine.high %v4560_v53, %v4574_v54  ;;  %v19288_v53 = vld [vmem:[#allocation5 + $0x708] ss:$392 sps:$4 sm:$0xff]   ;;  %v19291_v54 = vld [vmem:[#allocation5 + $0xa18] ss:$392 sps:$4 sm:$0xff]  }
 0x1ba   :  { %v8098_v10 = vadd.f32 %v8097_v1, %v4369_v58  ;;  %v4577_v63 = vcombine.low %v4532_v51, %v4546_v52  ;;  %v19270_v1 = vld [vmem:[#allocation5 + $0xe0] ss:$392 sps:$4 sm:$0xff]   ;;  %v4578_v7 = vcombine.high %v4532_v51, %v4546_v52  ;;  %v4624_v13 = vrot.slane %v4581_v0, %v19613_v9 }
 0x1bb   :  { %v4638_v21 = vrot.slane %v4582_v8, %v19613_v9  ;;  %v19285_v51 = vld [vmem:[#allocation5 + $0x3f8] ss:$392 sps:$4 sm:$0xff]   ;;  %v4839_v2 = vrot.slane %v19291_v54, %v19613_v9 }
 0x1bc   :  { %v8099_v14 = vadd.f32 %v8098_v10, %v4373_v62  ;;  %v4643_v10 = vcombine.low %v4603_v60, %v4631_v61  ;;  %v4596_v12 = vrot.slane %v4577_v63, %v19613_v9  ;;  %v4610_v20 = vrot.slane %v4578_v7, %v19613_v9  ;;  %v19284_v7 = vld [vmem:[#allocation5 + $0xec] ss:$392 sps:$4 sm:$0xff]  }
 0x1bd   :  { %v4811_v63 = vrot.slane %v19285_v51, %v19613_v9 }
 0x1be   :  { %v8100_v22 = vadd.f32 %v8099_v14, %v4370_v6  ;;  %v4661_v14 = vrot.slane %v19270_v1, %v19613_v9  ;;  %v4641_v28 = vcombine.low %v4596_v12, %v4624_v13  ;;  %v4645_v32 = vcombine.low %v4610_v20, %v4638_v21 }
 0x1bf   :  { %v4642_v40 = vcombine.high %v4596_v12, %v4624_v13  ;;  %v4646_v44 = vcombine.high %v4610_v20, %v4638_v21  ;;  %v4825_v1 = vrot.slane %v19288_v53, %v19613_v9  ;;  %v19293_v12 = vld [vmem:[#allocation5 + $0xa1c] ss:$392 sps:$4 sm:$0xff]   ;;  %v4804_v21 = vrot.slane %v19284_v7, %v19613_v9 }
 0x1c0   :  { %v8101_v26 = vadd.f32 %v8100_v22, %v4374_v11  ;;  %v4644_v22 = vcombine.high %v4603_v60, %v4631_v61  ;;  %v4711_v29 = vcombine.low %v4661_v14, %v4675_v15  ;;  %v4712_v33 = vcombine.high %v4661_v14, %v4675_v15 }
 0x1c1   :  { %v4851_v15 = vcombine.low %v4825_v1, %v4839_v2 }
 0x1c2   :  { %v8102_v34 = vadd.f32 %v8101_v26, %v4503_v19  ;;  %v19278_v26 = vld [vmem:[#allocation5 + $0x704] ss:$392 sps:$4 sm:$0xff]   ;;  %v4725_v41 = vrot.slane %v4711_v29, %v19613_v9  ;;  %v4739_v45 = vrot.slane %v4712_v33, %v19613_v9 }
 0x1c3   :  { %v4696_v38 = vrot.slane %v19278_v26, %v19613_v9 }
 0x1c4   :  { %v8103_v39 = vadd.f32 %v8102_v34, %v4507_v25  ;;  %v19275_v25 = vld [vmem:[#allocation5 + $0x3f4] ss:$392 sps:$4 sm:$0xff]   ;;  %v4716_v34 = vcombine.high %v4689_v17, %v4703_v18  ;;  %v4775_v52 = vcombine.low %v4725_v41, %v4753_v42  ;;  %v4776_v0 = vcombine.high %v4725_v41, %v4753_v42 }
 0x1c6   :  { %v8104_v46 = vadd.f32 %v8103_v39, %v4504_v31  ;;  %v4710_v39 = vrot.slane %v19281_v27, %v19613_v9  ;;  %v4889_v27 = vrot.slane %v4851_v15, %v19613_v9 }
 0x1c8   :  { %v8105_v50 = vadd.f32 %v8104_v46, %v4508_v37  ;;  %v4682_v37 = vrot.slane %v19275_v25, %v19613_v9  ;;  %v4767_v46 = vrot.slane %v4716_v34, %v19613_v9  ;;  %v4717_v49 = vcombine.low %v4696_v38, %v4710_v39 }
 0x1c9   :  { %v4718_v57 = vcombine.high %v4696_v38, %v4710_v39  ;;  %v19300_v38 = vld [vmem:[#allocation5 + $0x710] ss:$392 sps:$4 sm:$0xff]   ;;  %v19303_v39 = vld [vmem:[#allocation5 + $0xa20] ss:$392 sps:$4 sm:$0xff]  }
 0x1ca   :  { %v8106_v58 = vadd.f32 %v8105_v50, %v4505_v43  ;;  %v4713_v48 = vcombine.low %v4668_v36, %v4682_v37  ;;  %v19282_v50 = vld [vmem:[#allocation5 + $0xe8] ss:$392 sps:$4 sm:$0xff]   ;;  %v4714_v56 = vcombine.high %v4668_v36, %v4682_v37  ;;  %v4760_v61 = vrot.slane %v4717_v49, %v19613_v9 }
 0x1cb   :  { %v4774_v5 = vrot.slane %v4718_v57, %v19613_v9  ;;  %v19297_v36 = vld [vmem:[#allocation5 + $0x400] ss:$392 sps:$4 sm:$0xff]   ;;  %v4975_v51 = vrot.slane %v19303_v39, %v19613_v9 }
 0x1cc   :  { %v8107_v62 = vadd.f32 %v8106_v58, %v4509_v47  ;;  %v4779_v58 = vcombine.low %v4739_v45, %v4767_v46  ;;  %v4732_v60 = vrot.slane %v4713_v48, %v19613_v9  ;;  %v4746_v4 = vrot.slane %v4714_v56, %v19613_v9  ;;  %v19296_v56 = vld [vmem:[#allocation5 + $0xf4] ss:$392 sps:$4 sm:$0xff]  }
 0x1cd   :  { %v4947_v48 = vrot.slane %v19297_v36, %v19613_v9 }
 0x1ce   :  { %v8108_v6 = vadd.f32 %v8107_v62, %v4506_v55  ;;  %v4797_v62 = vrot.slane %v19282_v50, %v19613_v9  ;;  %v4777_v13 = vcombine.low %v4732_v60, %v4760_v61  ;;  %v4781_v17 = vcombine.low %v4746_v4, %v4774_v5 }
 0x1cf   :  { %v4778_v25 = vcombine.high %v4732_v60, %v4760_v61  ;;  %v4782_v29 = vcombine.high %v4746_v4, %v4774_v5  ;;  %v4961_v50 = vrot.slane %v19300_v38, %v19613_v9  ;;  %v19305_v60 = vld [vmem:[#allocation5 + $0xa24] ss:$392 sps:$4 sm:$0xff]   ;;  %v4940_v5 = vrot.slane %v19296_v56, %v19613_v9 }
 0x1d0   :  { %v8109_v11 = vadd.f32 %v8108_v6, %v4510_v59  ;;  %v4780_v6 = vcombine.high %v4739_v45, %v4767_v46  ;;  %v4847_v14 = vcombine.low %v4797_v62, %v4811_v63  ;;  %v4848_v18 = vcombine.high %v4797_v62, %v4811_v63 }
 0x1d1   :  { %v4987_v63 = vcombine.low %v4961_v50, %v4975_v51 }
 0x1d2   :  { %v8110_v19 = vadd.f32 %v8109_v11, %v4639_v3  ;;  %v19290_v11 = vld [vmem:[#allocation5 + $0x70c] ss:$392 sps:$4 sm:$0xff]   ;;  %v4861_v26 = vrot.slane %v4847_v14, %v19613_v9  ;;  %v4875_v30 = vrot.slane %v4848_v18, %v19613_v9 }
 0x1d3   :  { %v4832_v23 = vrot.slane %v19290_v11, %v19613_v9 }
 0x1d4   :  { %v8111_v24 = vadd.f32 %v8110_v19, %v4643_v10  ;;  %v19287_v10 = vld [vmem:[#allocation5 + $0x3fc] ss:$392 sps:$4 sm:$0xff]   ;;  %v4852_v19 = vcombine.high %v4825_v1, %v4839_v2  ;;  %v4911_v37 = vcombine.low %v4861_v26, %v4889_v27  ;;  %v4912_v49 = vcombine.high %v4861_v26, %v4889_v27 }
 0x1d6   :  { %v8112_v31 = vadd.f32 %v8111_v24, %v4640_v16  ;;  %v4846_v24 = vrot.slane %v19293_v12, %v19613_v9  ;;  %v5025_v12 = vrot.slane %v4987_v63, %v19613_v9 }
 0x1d8   :  { %v8113_v35 = vadd.f32 %v8112_v31, %v4644_v22  ;;  %v4818_v22 = vrot.slane %v19287_v10, %v19613_v9  ;;  %v4903_v31 = vrot.slane %v4852_v19, %v19613_v9  ;;  %v4853_v34 = vcombine.low %v4832_v23, %v4846_v24 }
 0x1d9   :  { %v4854_v42 = vcombine.high %v4832_v23, %v4846_v24  ;;  %v19312_v23 = vld [vmem:[#allocation5 + $0x718] ss:$392 sps:$4 sm:$0xff]   ;;  %v19315_v24 = vld [vmem:[#allocation5 + $0xa28] ss:$392 sps:$4 sm:$0xff]  }
 0x1da   :  { %v8114_v43 = vadd.f32 %v8113_v35, %v4641_v28  ;;  %v4849_v33 = vcombine.low %v4804_v21, %v4818_v22  ;;  %v19294_v35 = vld [vmem:[#allocation5 + $0xf0] ss:$392 sps:$4 sm:$0xff]   ;;  %v4850_v41 = vcombine.high %v4804_v21, %v4818_v22  ;;  %v4896_v46 = vrot.slane %v4853_v34, %v19613_v9 }
 0x1db   :  { %v4910_v54 = vrot.slane %v4854_v42, %v19613_v9  ;;  %v19309_v21 = vld [vmem:[#allocation5 + $0x408] ss:$392 sps:$4 sm:$0xff]   ;;  %v5111_v36 = vrot.slane %v19315_v24, %v19613_v9 }
 0x1dc   :  { %v8115_v47 = vadd.f32 %v8114_v43, %v4645_v32  ;;  %v4915_v43 = vcombine.low %v4875_v30, %v4903_v31  ;;  %v4868_v45 = vrot.slane %v4849_v33, %v19613_v9  ;;  %v4882_v53 = vrot.slane %v4850_v41, %v19613_v9  ;;  %v19308_v41 = vld [vmem:[#allocation5 + $0xfc] ss:$392 sps:$4 sm:$0xff]  }
 0x1dd   :  { %v5083_v33 = vrot.slane %v19309_v21, %v19613_v9 }
 0x1de   :  { %v8116_v55 = vadd.f32 %v8115_v47, %v4642_v40  ;;  %v4933_v47 = vrot.slane %v19294_v35, %v19613_v9  ;;  %v4913_v61 = vcombine.low %v4868_v45, %v4896_v46  ;;  %v4917_v1 = vcombine.low %v4882_v53, %v4910_v54 }
 0x1df   :  { %v4914_v10 = vcombine.high %v4868_v45, %v4896_v46  ;;  %v4918_v14 = vcombine.high %v4882_v53, %v4910_v54  ;;  %v5097_v35 = vrot.slane %v19312_v23, %v19613_v9  ;;  %v19317_v45 = vld [vmem:[#allocation5 + $0xa2c] ss:$392 sps:$4 sm:$0xff]   ;;  %v5076_v54 = vrot.slane %v19308_v41, %v19613_v9 }
 0x1e0   :  { %v8117_v59 = vadd.f32 %v8116_v55, %v4646_v44  ;;  %v4916_v55 = vcombine.high %v4875_v30, %v4903_v31  ;;  %v4983_v62 = vcombine.low %v4933_v47, %v4947_v48  ;;  %v4984_v2 = vcombine.high %v4933_v47, %v4947_v48 }
 0x1e1   :  { %v5123_v48 = vcombine.low %v5097_v35, %v5111_v36 }
 0x1e2   :  { %v8118_v3 = vadd.f32 %v8117_v59, %v4775_v52  ;;  %v19302_v59 = vld [vmem:[#allocation5 + $0x714] ss:$392 sps:$4 sm:$0xff]   ;;  %v4997_v11 = vrot.slane %v4983_v62, %v19613_v9  ;;  %v5011_v15 = vrot.slane %v4984_v2, %v19613_v9 }
 0x1e3   :  { %v4968_v7 = vrot.slane %v19302_v59, %v19613_v9 }
 0x1e4   :  { %v8119_v8 = vadd.f32 %v8118_v3, %v4779_v58  ;;  %v19299_v58 = vld [vmem:[#allocation5 + $0x404] ss:$392 sps:$4 sm:$0xff]   ;;  %v4988_v3 = vcombine.high %v4961_v50, %v4975_v51  ;;  %v5047_v22 = vcombine.low %v4997_v11, %v5025_v12  ;;  %v5048_v34 = vcombine.high %v4997_v11, %v5025_v12 }
 0x1e6   :  { %v8120_v16 = vadd.f32 %v8119_v8, %v4776_v0  ;;  %v4982_v8 = vrot.slane %v19305_v60, %v19613_v9  ;;  %v5161_v60 = vrot.slane %v5123_v48, %v19613_v9 }
 0x1e8   :  { %v8121_v20 = vadd.f32 %v8120_v16, %v4780_v6  ;;  %v4954_v6 = vrot.slane %v19299_v58, %v19613_v9  ;;  %v5039_v16 = vrot.slane %v4988_v3, %v19613_v9  ;;  %v4989_v19 = vcombine.low %v4968_v7, %v4982_v8 }
 0x1e9   :  { %v4990_v27 = vcombine.high %v4968_v7, %v4982_v8  ;;  %v19324_v7 = vld [vmem:[#allocation5 + $0x720] ss:$392 sps:$4 sm:$0xff]   ;;  %v19327_v8 = vld [vmem:[#allocation5 + $0xa30] ss:$392 sps:$4 sm:$0xff]  }
 0x1ea   :  { %v8122_v28 = vadd.f32 %v8121_v20, %v4777_v13  ;;  %v4985_v18 = vcombine.low %v4940_v5, %v4954_v6  ;;  %v19306_v20 = vld [vmem:[#allocation5 + $0xf8] ss:$392 sps:$4 sm:$0xff]   ;;  %v4986_v26 = vcombine.high %v4940_v5, %v4954_v6  ;;  %v5032_v31 = vrot.slane %v4989_v19, %v19613_v9 }
 0x1eb   :  { %v5046_v39 = vrot.slane %v4990_v27, %v19613_v9  ;;  %v19321_v5 = vld [vmem:[#allocation5 + $0x410] ss:$392 sps:$4 sm:$0xff]   ;;  %v5247_v21 = vrot.slane %v19327_v8, %v19613_v9 }
 0x1ec   :  { %v8123_v32 = vadd.f32 %v8122_v28, %v4781_v17  ;;  %v5051_v28 = vcombine.low %v5011_v15, %v5039_v16  ;;  %v5004_v30 = vrot.slane %v4985_v18, %v19613_v9  ;;  %v5018_v38 = vrot.slane %v4986_v26, %v19613_v9  ;;  %v19320_v26 = vld [vmem:[#allocation5 + $0x104] ss:$392 sps:$4 sm:$0xff]  }
 0x1ed   :  { %v5219_v18 = vrot.slane %v19321_v5, %v19613_v9 }
 0x1ee   :  { %v8124_v40 = vadd.f32 %v8123_v32, %v4778_v25  ;;  %v5069_v32 = vrot.slane %v19306_v20, %v19613_v9  ;;  %v5049_v46 = vcombine.low %v5004_v30, %v5032_v31  ;;  %v5053_v50 = vcombine.low %v5018_v38, %v5046_v39 }
 0x1ef   :  { %v5050_v58 = vcombine.high %v5004_v30, %v5032_v31  ;;  %v5054_v62 = vcombine.high %v5018_v38, %v5046_v39  ;;  %v5233_v20 = vrot.slane %v19324_v7, %v19613_v9  ;;  %v19329_v30 = vld [vmem:[#allocation5 + $0xa34] ss:$392 sps:$4 sm:$0xff]   ;;  %v5212_v39 = vrot.slane %v19320_v26, %v19613_v9 }
 0x1f0   :  { %v8125_v44 = vadd.f32 %v8124_v40, %v4782_v29  ;;  %v5052_v40 = vcombine.high %v5011_v15, %v5039_v16  ;;  %v5119_v47 = vcombine.low %v5069_v32, %v5083_v33  ;;  %v5120_v51 = vcombine.high %v5069_v32, %v5083_v33 }
 0x1f1   :  { %v5259_v33 = vcombine.low %v5233_v20, %v5247_v21 }
 0x1f2   :  { %v8126_v52 = vadd.f32 %v8125_v44, %v4911_v37  ;;  %v19314_v44 = vld [vmem:[#allocation5 + $0x71c] ss:$392 sps:$4 sm:$0xff]   ;;  %v5133_v59 = vrot.slane %v5119_v47, %v19613_v9  ;;  %v5147_v63 = vrot.slane %v5120_v51, %v19613_v9 }
 0x1f3   :  { %v5104_v56 = vrot.slane %v19314_v44, %v19613_v9 }
 0x1f4   :  { %v8127_v57 = vadd.f32 %v8126_v52, %v4915_v43  ;;  %v19311_v43 = vld [vmem:[#allocation5 + $0x40c] ss:$392 sps:$4 sm:$0xff]   ;;  %v5124_v52 = vcombine.high %v5097_v35, %v5111_v36  ;;  %v5183_v6 = vcombine.low %v5133_v59, %v5161_v60  ;;  %v5184_v19 = vcombine.high %v5133_v59, %v5161_v60 }
 0x1f6   :  { %v8128_v0 = vadd.f32 %v8127_v57, %v4912_v49  ;;  %v5118_v57 = vrot.slane %v19317_v45, %v19613_v9  ;;  %v5297_v45 = vrot.slane %v5259_v33, %v19613_v9 }
 0x1f8   :  { %v8129_v4 = vadd.f32 %v8128_v0, %v4916_v55  ;;  %v5090_v55 = vrot.slane %v19311_v43, %v19613_v9  ;;  %v5175_v0 = vrot.slane %v5124_v52, %v19613_v9  ;;  %v5125_v3 = vcombine.low %v5104_v56, %v5118_v57 }
 0x1f9   :  { %v5126_v12 = vcombine.high %v5104_v56, %v5118_v57  ;;  %v19336_v56 = vld [vmem:[#allocation5 + $0x728] ss:$392 sps:$4 sm:$0xff]   ;;  %v19339_v57 = vld [vmem:[#allocation5 + $0xa38] ss:$392 sps:$4 sm:$0xff]  }
 0x1fa   :  { %v8130_v13 = vadd.f32 %v8129_v4, %v4913_v61  ;;  %v5121_v2 = vcombine.low %v5076_v54, %v5090_v55  ;;  %v19318_v4 = vld [vmem:[#allocation5 + $0x100] ss:$392 sps:$4 sm:$0xff]   ;;  %v5122_v11 = vcombine.high %v5076_v54, %v5090_v55  ;;  %v5168_v16 = vrot.slane %v5125_v3, %v19613_v9 }
 0x1fb   :  { %v5182_v24 = vrot.slane %v5126_v12, %v19613_v9  ;;  %v19333_v54 = vld [vmem:[#allocation5 + $0x418] ss:$392 sps:$4 sm:$0xff]   ;;  %v5383_v5 = vrot.slane %v19339_v57, %v19613_v9 }
 0x1fc   :  { %v8131_v17 = vadd.f32 %v8130_v13, %v4917_v1  ;;  %v5187_v13 = vcombine.low %v5147_v63, %v5175_v0  ;;  %v5140_v15 = vrot.slane %v5121_v2, %v19613_v9  ;;  %v5154_v23 = vrot.slane %v5122_v11, %v19613_v9  ;;  %v19332_v11 = vld [vmem:[#allocation5 + $0x10c] ss:$392 sps:$4 sm:$0xff]  }
 0x1fd   :  { %v5355_v2 = vrot.slane %v19333_v54, %v19613_v9 }
 0x1fe   :  { %v8132_v25 = vadd.f32 %v8131_v17, %v4914_v10  ;;  %v5205_v17 = vrot.slane %v19318_v4, %v19613_v9  ;;  %v5185_v31 = vcombine.low %v5140_v15, %v5168_v16  ;;  %v5189_v35 = vcombine.low %v5154_v23, %v5182_v24 }
 0x1ff   :  { %v5186_v43 = vcombine.high %v5140_v15, %v5168_v16  ;;  %v5190_v47 = vcombine.high %v5154_v23, %v5182_v24  ;;  %v5369_v4 = vrot.slane %v19336_v56, %v19613_v9  ;;  %v19341_v15 = vld [vmem:[#allocation5 + $0xa3c] ss:$392 sps:$4 sm:$0xff]   ;;  %v5348_v24 = vrot.slane %v19332_v11, %v19613_v9 }
 0x200   :  { %v8133_v29 = vadd.f32 %v8132_v25, %v4918_v14  ;;  %v5188_v25 = vcombine.high %v5147_v63, %v5175_v0  ;;  %v5255_v32 = vcombine.low %v5205_v17, %v5219_v18  ;;  %v5256_v36 = vcombine.high %v5205_v17, %v5219_v18 }
 0x201   :  { %v5395_v18 = vcombine.low %v5369_v4, %v5383_v5 }
 0x202   :  { %v8134_v37 = vadd.f32 %v8133_v29, %v5047_v22  ;;  %v19326_v29 = vld [vmem:[#allocation5 + $0x724] ss:$392 sps:$4 sm:$0xff]   ;;  %v5269_v44 = vrot.slane %v5255_v32, %v19613_v9  ;;  %v5283_v48 = vrot.slane %v5256_v36, %v19613_v9 }
 0x203   :  { %v5240_v41 = vrot.slane %v19326_v29, %v19613_v9 }
 0x204   :  { %v8135_v42 = vadd.f32 %v8134_v37, %v5051_v28  ;;  %v19323_v28 = vld [vmem:[#allocation5 + $0x414] ss:$392 sps:$4 sm:$0xff]   ;;  %v5260_v37 = vcombine.high %v5233_v20, %v5247_v21  ;;  %v5319_v55 = vcombine.low %v5269_v44, %v5297_v45  ;;  %v5320_v3 = vcombine.high %v5269_v44, %v5297_v45 }
 0x206   :  { %v8136_v49 = vadd.f32 %v8135_v42, %v5048_v34  ;;  %v5254_v42 = vrot.slane %v19329_v30, %v19613_v9  ;;  %v5433_v30 = vrot.slane %v5395_v18, %v19613_v9 }
 0x208   :  { %v8137_v53 = vadd.f32 %v8136_v49, %v5052_v40  ;;  %v5226_v40 = vrot.slane %v19323_v28, %v19613_v9  ;;  %v5311_v49 = vrot.slane %v5260_v37, %v19613_v9  ;;  %v5261_v52 = vcombine.low %v5240_v41, %v5254_v42 }
 0x209   :  { %v5262_v60 = vcombine.high %v5240_v41, %v5254_v42  ;;  %v19348_v41 = vld [vmem:[#allocation5 + $0x730] ss:$392 sps:$4 sm:$0xff]   ;;  %v19351_v42 = vld [vmem:[#allocation5 + $0xa40] ss:$392 sps:$4 sm:$0xff]  }
 0x20a   :  { %v8138_v61 = vadd.f32 %v8137_v53, %v5049_v46  ;;  %v5257_v51 = vcombine.low %v5212_v39, %v5226_v40  ;;  %v19330_v53 = vld [vmem:[#allocation5 + $0x108] ss:$392 sps:$4 sm:$0xff]   ;;  %v5258_v59 = vcombine.high %v5212_v39, %v5226_v40  ;;  %v5304_v0 = vrot.slane %v5261_v52, %v19613_v9 }
 0x20b   :  { %v5318_v8 = vrot.slane %v5262_v60, %v19613_v9  ;;  %v19345_v39 = vld [vmem:[#allocation5 + $0x420] ss:$392 sps:$4 sm:$0xff]   ;;  %v5519_v54 = vrot.slane %v19351_v42, %v19613_v9 }
 0x20c   :  { %v8139_v1 = vadd.f32 %v8138_v61, %v5053_v50  ;;  %v5323_v61 = vcombine.low %v5283_v48, %v5311_v49  ;;  %v5276_v63 = vrot.slane %v5257_v51, %v19613_v9  ;;  %v5290_v7 = vrot.slane %v5258_v59, %v19613_v9  ;;  %v19344_v59 = vld [vmem:[#allocation5 + $0x114] ss:$392 sps:$4 sm:$0xff]  }
 0x20d   :  { %v5491_v51 = vrot.slane %v19345_v39, %v19613_v9 }
 0x20e   :  { %v8140_v10 = vadd.f32 %v8139_v1, %v5050_v58  ;;  %v5341_v1 = vrot.slane %v19330_v53, %v19613_v9  ;;  %v5321_v16 = vcombine.low %v5276_v63, %v5304_v0  ;;  %v5325_v20 = vcombine.low %v5290_v7, %v5318_v8 }
 0x20f   :  { %v5322_v28 = vcombine.high %v5276_v63, %v5304_v0  ;;  %v5326_v32 = vcombine.high %v5290_v7, %v5318_v8  ;;  %v5505_v53 = vrot.slane %v19348_v41, %v19613_v9  ;;  %v19353_v63 = vld [vmem:[#allocation5 + $0xa44] ss:$392 sps:$4 sm:$0xff]   ;;  %v5484_v8 = vrot.slane %v19344_v59, %v19613_v9 }
 0x210   :  { %v8141_v14 = vadd.f32 %v8140_v10, %v5054_v62  ;;  %v5324_v10 = vcombine.high %v5283_v48, %v5311_v49  ;;  %v5391_v17 = vcombine.low %v5341_v1, %v5355_v2  ;;  %v5392_v21 = vcombine.high %v5341_v1, %v5355_v2 }
 0x211   :  { %v5531_v2 = vcombine.low %v5505_v53, %v5519_v54 }
 0x212   :  { %v8142_v22 = vadd.f32 %v8141_v14, %v5183_v6  ;;  %v19338_v14 = vld [vmem:[#allocation5 + $0x72c] ss:$392 sps:$4 sm:$0xff]   ;;  %v5405_v29 = vrot.slane %v5391_v17, %v19613_v9  ;;  %v5419_v33 = vrot.slane %v5392_v21, %v19613_v9 }
 0x213   :  { %v5376_v26 = vrot.slane %v19338_v14, %v19613_v9 }
 0x214   :  { %v8143_v27 = vadd.f32 %v8142_v22, %v5187_v13  ;;  %v19335_v13 = vld [vmem:[#allocation5 + $0x41c] ss:$392 sps:$4 sm:$0xff]   ;;  %v5396_v22 = vcombine.high %v5369_v4, %v5383_v5  ;;  %v5455_v40 = vcombine.low %v5405_v29, %v5433_v30  ;;  %v5456_v52 = vcombine.high %v5405_v29, %v5433_v30 }
 0x216   :  { %v8144_v34 = vadd.f32 %v8143_v27, %v5184_v19  ;;  %v5390_v27 = vrot.slane %v19341_v15, %v19613_v9  ;;  %v5569_v15 = vrot.slane %v5531_v2, %v19613_v9 }
 0x218   :  { %v8145_v38 = vadd.f32 %v8144_v34, %v5188_v25  ;;  %v5362_v25 = vrot.slane %v19335_v13, %v19613_v9  ;;  %v5447_v34 = vrot.slane %v5396_v22, %v19613_v9  ;;  %v5397_v37 = vcombine.low %v5376_v26, %v5390_v27 }
 0x219   :  { %v5398_v45 = vcombine.high %v5376_v26, %v5390_v27  ;;  %v19360_v26 = vld [vmem:[#allocation5 + $0x738] ss:$392 sps:$4 sm:$0xff]   ;;  %v19363_v27 = vld [vmem:[#allocation5 + $0xa48] ss:$392 sps:$4 sm:$0xff]  }
 0x21a   :  { %v8146_v46 = vadd.f32 %v8145_v38, %v5185_v31  ;;  %v5393_v36 = vcombine.low %v5348_v24, %v5362_v25  ;;  %v19342_v38 = vld [vmem:[#allocation5 + $0x110] ss:$392 sps:$4 sm:$0xff]   ;;  %v5394_v44 = vcombine.high %v5348_v24, %v5362_v25  ;;  %v5440_v49 = vrot.slane %v5397_v37, %v19613_v9 }
 0x21b   :  { %v5454_v57 = vrot.slane %v5398_v45, %v19613_v9  ;;  %v19357_v24 = vld [vmem:[#allocation5 + $0x428] ss:$392 sps:$4 sm:$0xff]   ;;  %v5655_v39 = vrot.slane %v19363_v27, %v19613_v9 }
 0x21c   :  { %v8147_v50 = vadd.f32 %v8146_v46, %v5189_v35  ;;  %v5459_v46 = vcombine.low %v5419_v33, %v5447_v34  ;;  %v5412_v48 = vrot.slane %v5393_v36, %v19613_v9  ;;  %v5426_v56 = vrot.slane %v5394_v44, %v19613_v9  ;;  %v19356_v44 = vld [vmem:[#allocation5 + $0x11c] ss:$392 sps:$4 sm:$0xff]  }
 0x21d   :  { %v5627_v36 = vrot.slane %v19357_v24, %v19613_v9 }
 0x21e   :  { %v8148_v58 = vadd.f32 %v8147_v50, %v5186_v43  ;;  %v5477_v50 = vrot.slane %v19342_v38, %v19613_v9  ;;  %v5457_v0 = vcombine.low %v5412_v48, %v5440_v49  ;;  %v5461_v4 = vcombine.low %v5426_v56, %v5454_v57 }
 0x21f   :  { %v5458_v13 = vcombine.high %v5412_v48, %v5440_v49  ;;  %v5462_v17 = vcombine.high %v5426_v56, %v5454_v57  ;;  %v5641_v38 = vrot.slane %v19360_v26, %v19613_v9  ;;  %v19365_v48 = vld [vmem:[#allocation5 + $0xa4c] ss:$392 sps:$4 sm:$0xff]   ;;  %v5620_v57 = vrot.slane %v19356_v44, %v19613_v9 }
 0x220   :  { %v8149_v62 = vadd.f32 %v8148_v58, %v5190_v47  ;;  %v5460_v58 = vcombine.high %v5419_v33, %v5447_v34  ;;  %v5527_v1 = vcombine.low %v5477_v50, %v5491_v51  ;;  %v5528_v5 = vcombine.high %v5477_v50, %v5491_v51 }
 0x221   :  { %v5667_v51 = vcombine.low %v5641_v38, %v5655_v39 }
 0x222   :  { %v8150_v6 = vadd.f32 %v8149_v62, %v5319_v55  ;;  %v19350_v62 = vld [vmem:[#allocation5 + $0x734] ss:$392 sps:$4 sm:$0xff]   ;;  %v5541_v14 = vrot.slane %v5527_v1, %v19613_v9  ;;  %v5555_v18 = vrot.slane %v5528_v5, %v19613_v9 }
 0x223   :  { %v5512_v11 = vrot.slane %v19350_v62, %v19613_v9 }
 0x224   :  { %v8151_v12 = vadd.f32 %v8150_v6, %v5323_v61  ;;  %v19347_v61 = vld [vmem:[#allocation5 + $0x424] ss:$392 sps:$4 sm:$0xff]   ;;  %v5532_v6 = vcombine.high %v5505_v53, %v5519_v54  ;;  %v5591_v25 = vcombine.low %v5541_v14, %v5569_v15  ;;  %v5592_v37 = vcombine.high %v5541_v14, %v5569_v15 }
 0x226   :  { %v8152_v19 = vadd.f32 %v8151_v12, %v5320_v3  ;;  %v5526_v12 = vrot.slane %v19353_v63, %v19613_v9  ;;  %v5705_v63 = vrot.slane %v5667_v51, %v19613_v9 }
 0x228   :  { %v8153_v23 = vadd.f32 %v8152_v19, %v5324_v10  ;;  %v5498_v10 = vrot.slane %v19347_v61, %v19613_v9  ;;  %v5583_v19 = vrot.slane %v5532_v6, %v19613_v9  ;;  %v5533_v22 = vcombine.low %v5512_v11, %v5526_v12 }
 0x229   :  { %v5534_v30 = vcombine.high %v5512_v11, %v5526_v12  ;;  %v19372_v11 = vld [vmem:[#allocation5 + $0x740] ss:$392 sps:$4 sm:$0xff]   ;;  %v19375_v12 = vld [vmem:[#allocation5 + $0xa50] ss:$392 sps:$4 sm:$0xff]  }
 0x22a   :  { %v8154_v31 = vadd.f32 %v8153_v23, %v5321_v16  ;;  %v5529_v21 = vcombine.low %v5484_v8, %v5498_v10  ;;  %v19354_v23 = vld [vmem:[#allocation5 + $0x118] ss:$392 sps:$4 sm:$0xff]   ;;  %v5530_v29 = vcombine.high %v5484_v8, %v5498_v10  ;;  %v5576_v34 = vrot.slane %v5533_v22, %v19613_v9 }
 0x22b   :  { %v5590_v42 = vrot.slane %v5534_v30, %v19613_v9  ;;  %v19369_v8 = vld [vmem:[#allocation5 + $0x430] ss:$392 sps:$4 sm:$0xff]   ;;  %v5791_v24 = vrot.slane %v19375_v12, %v19613_v9 }
 0x22c   :  { %v8155_v35 = vadd.f32 %v8154_v31, %v5325_v20  ;;  %v5595_v31 = vcombine.low %v5555_v18, %v5583_v19  ;;  %v5548_v33 = vrot.slane %v5529_v21, %v19613_v9  ;;  %v5562_v41 = vrot.slane %v5530_v29, %v19613_v9  ;;  %v19368_v29 = vld [vmem:[#allocation5 + $0x124] ss:$392 sps:$4 sm:$0xff]  }
 0x22d   :  { %v5763_v21 = vrot.slane %v19369_v8, %v19613_v9 }
 0x22e   :  { %v8156_v43 = vadd.f32 %v8155_v35, %v5322_v28  ;;  %v5613_v35 = vrot.slane %v19354_v23, %v19613_v9  ;;  %v5593_v49 = vcombine.low %v5548_v33, %v5576_v34  ;;  %v5597_v53 = vcombine.low %v5562_v41, %v5590_v42 }
 0x22f   :  { %v5594_v61 = vcombine.high %v5548_v33, %v5576_v34  ;;  %v5598_v1 = vcombine.high %v5562_v41, %v5590_v42  ;;  %v5777_v23 = vrot.slane %v19372_v11, %v19613_v9  ;;  %v19377_v33 = vld [vmem:[#allocation5 + $0xa54] ss:$392 sps:$4 sm:$0xff]   ;;  %v5756_v42 = vrot.slane %v19368_v29, %v19613_v9 }
 0x230   :  { %v8157_v47 = vadd.f32 %v8156_v43, %v5326_v32  ;;  %v5596_v43 = vcombine.high %v5555_v18, %v5583_v19  ;;  %v5663_v50 = vcombine.low %v5613_v35, %v5627_v36  ;;  %v5664_v54 = vcombine.high %v5613_v35, %v5627_v36 }
 0x231   :  { %v5803_v36 = vcombine.low %v5777_v23, %v5791_v24 }
 0x232   :  { %v8158_v55 = vadd.f32 %v8157_v47, %v5455_v40  ;;  %v19362_v47 = vld [vmem:[#allocation5 + $0x73c] ss:$392 sps:$4 sm:$0xff]   ;;  %v5677_v62 = vrot.slane %v5663_v50, %v19613_v9  ;;  %v5691_v2 = vrot.slane %v5664_v54, %v19613_v9 }
 0x233   :  { %v5648_v59 = vrot.slane %v19362_v47, %v19613_v9 }
 0x234   :  { %v8159_v60 = vadd.f32 %v8158_v55, %v5459_v46  ;;  %v19359_v46 = vld [vmem:[#allocation5 + $0x42c] ss:$392 sps:$4 sm:$0xff]   ;;  %v5668_v55 = vcombine.high %v5641_v38, %v5655_v39  ;;  %v5727_v10 = vcombine.low %v5677_v62, %v5705_v63  ;;  %v5728_v22 = vcombine.high %v5677_v62, %v5705_v63 }
 0x236   :  { %v8160_v3 = vadd.f32 %v8159_v60, %v5456_v52  ;;  %v5662_v60 = vrot.slane %v19365_v48, %v19613_v9  ;;  %v5841_v48 = vrot.slane %v5803_v36, %v19613_v9 }
 0x238   :  { %v8161_v7 = vadd.f32 %v8160_v3, %v5460_v58  ;;  %v5634_v58 = vrot.slane %v19359_v46, %v19613_v9  ;;  %v5719_v3 = vrot.slane %v5668_v55, %v19613_v9  ;;  %v5669_v6 = vcombine.low %v5648_v59, %v5662_v60 }
 0x239   :  { %v5670_v15 = vcombine.high %v5648_v59, %v5662_v60  ;;  %v19384_v59 = vld [vmem:[#allocation5 + $0x748] ss:$392 sps:$4 sm:$0xff]   ;;  %v19387_v60 = vld [vmem:[#allocation5 + $0xa58] ss:$392 sps:$4 sm:$0xff]  }
 0x23a   :  { %v8162_v16 = vadd.f32 %v8161_v7, %v5457_v0  ;;  %v5665_v5 = vcombine.low %v5620_v57, %v5634_v58  ;;  %v19366_v7 = vld [vmem:[#allocation5 + $0x120] ss:$392 sps:$4 sm:$0xff]   ;;  %v5666_v14 = vcombine.high %v5620_v57, %v5634_v58  ;;  %v5712_v19 = vrot.slane %v5669_v6, %v19613_v9 }
 0x23b   :  { %v5726_v27 = vrot.slane %v5670_v15, %v19613_v9  ;;  %v19381_v57 = vld [vmem:[#allocation5 + $0x438] ss:$392 sps:$4 sm:$0xff]   ;;  %v5927_v8 = vrot.slane %v19387_v60, %v19613_v9 }
 0x23c   :  { %v8163_v20 = vadd.f32 %v8162_v16, %v5461_v4  ;;  %v5731_v16 = vcombine.low %v5691_v2, %v5719_v3  ;;  %v5684_v18 = vrot.slane %v5665_v5, %v19613_v9  ;;  %v5698_v26 = vrot.slane %v5666_v14, %v19613_v9  ;;  %v19380_v14 = vld [vmem:[#allocation5 + $0x12c] ss:$392 sps:$4 sm:$0xff]  }
 0x23d   :  { %v5899_v5 = vrot.slane %v19381_v57, %v19613_v9 }
 0x23e   :  { %v8164_v28 = vadd.f32 %v8163_v20, %v5458_v13  ;;  %v5749_v20 = vrot.slane %v19366_v7, %v19613_v9  ;;  %v5729_v34 = vcombine.low %v5684_v18, %v5712_v19  ;;  %v5733_v38 = vcombine.low %v5698_v26, %v5726_v27 }
 0x23f   :  { %v5730_v46 = vcombine.high %v5684_v18, %v5712_v19  ;;  %v5734_v50 = vcombine.high %v5698_v26, %v5726_v27  ;;  %v5913_v7 = vrot.slane %v19384_v59, %v19613_v9  ;;  %v19389_v18 = vld [vmem:[#allocation5 + $0xa5c] ss:$392 sps:$4 sm:$0xff]   ;;  %v5892_v27 = vrot.slane %v19380_v14, %v19613_v9 }
 0x240   :  { %v8165_v32 = vadd.f32 %v8164_v28, %v5462_v17  ;;  %v5732_v28 = vcombine.high %v5691_v2, %v5719_v3  ;;  %v5799_v35 = vcombine.low %v5749_v20, %v5763_v21  ;;  %v5800_v39 = vcombine.high %v5749_v20, %v5763_v21 }
 0x241   :  { %v5939_v21 = vcombine.low %v5913_v7, %v5927_v8 }
 0x242   :  { %v8166_v40 = vadd.f32 %v8165_v32, %v5591_v25  ;;  %v19374_v32 = vld [vmem:[#allocation5 + $0x744] ss:$392 sps:$4 sm:$0xff]   ;;  %v5813_v47 = vrot.slane %v5799_v35, %v19613_v9  ;;  %v5827_v51 = vrot.slane %v5800_v39, %v19613_v9 }
 0x243   :  { %v5784_v44 = vrot.slane %v19374_v32, %v19613_v9 }
 0x244   :  { %v8167_v45 = vadd.f32 %v8166_v40, %v5595_v31  ;;  %v19371_v31 = vld [vmem:[#allocation5 + $0x434] ss:$392 sps:$4 sm:$0xff]   ;;  %v5804_v40 = vcombine.high %v5777_v23, %v5791_v24  ;;  %v5863_v58 = vcombine.low %v5813_v47, %v5841_v48  ;;  %v5864_v6 = vcombine.high %v5813_v47, %v5841_v48 }
 0x246   :  { %v8168_v52 = vadd.f32 %v8167_v45, %v5592_v37  ;;  %v5798_v45 = vrot.slane %v19377_v33, %v19613_v9  ;;  %v5977_v33 = vrot.slane %v5939_v21, %v19613_v9 }
 0x248   :  { %v8169_v56 = vadd.f32 %v8168_v52, %v5596_v43  ;;  %v5770_v43 = vrot.slane %v19371_v31, %v19613_v9  ;;  %v5855_v52 = vrot.slane %v5804_v40, %v19613_v9  ;;  %v5805_v55 = vcombine.low %v5784_v44, %v5798_v45 }
 0x249   :  { %v5806_v63 = vcombine.high %v5784_v44, %v5798_v45  ;;  %v19396_v44 = vld [vmem:[#allocation5 + $0x750] ss:$392 sps:$4 sm:$0xff]   ;;  %v19399_v45 = vld [vmem:[#allocation5 + $0xa60] ss:$392 sps:$4 sm:$0xff]  }
 0x24a   :  { %v8170_v0 = vadd.f32 %v8169_v56, %v5593_v49  ;;  %v5801_v54 = vcombine.low %v5756_v42, %v5770_v43  ;;  %v19378_v56 = vld [vmem:[#allocation5 + $0x128] ss:$392 sps:$4 sm:$0xff]   ;;  %v5802_v62 = vcombine.high %v5756_v42, %v5770_v43  ;;  %v5848_v3 = vrot.slane %v5805_v55, %v19613_v9 }
 0x24b   :  { %v5862_v12 = vrot.slane %v5806_v63, %v19613_v9  ;;  %v19393_v42 = vld [vmem:[#allocation5 + $0x440] ss:$392 sps:$4 sm:$0xff]   ;;  %v6063_v57 = vrot.slane %v19399_v45, %v19613_v9 }
 0x24c   :  { %v8171_v4 = vadd.f32 %v8170_v0, %v5597_v53  ;;  %v5867_v0 = vcombine.low %v5827_v51, %v5855_v52  ;;  %v5820_v2 = vrot.slane %v5801_v54, %v19613_v9  ;;  %v5834_v11 = vrot.slane %v5802_v62, %v19613_v9  ;;  %v19392_v62 = vld [vmem:[#allocation5 + $0x134] ss:$392 sps:$4 sm:$0xff]  }
 0x24d   :  { %v6035_v54 = vrot.slane %v19393_v42, %v19613_v9 }
 0x24e   :  { %v8172_v13 = vadd.f32 %v8171_v4, %v5594_v61  ;;  %v5885_v4 = vrot.slane %v19378_v56, %v19613_v9  ;;  %v5865_v19 = vcombine.low %v5820_v2, %v5848_v3  ;;  %v5869_v23 = vcombine.low %v5834_v11, %v5862_v12 }
 0x24f   :  { %v5866_v31 = vcombine.high %v5820_v2, %v5848_v3  ;;  %v5870_v35 = vcombine.high %v5834_v11, %v5862_v12  ;;  %v6049_v56 = vrot.slane %v19396_v44, %v19613_v9  ;;  %v19401_v2 = vld [vmem:[#allocation5 + $0xa64] ss:$392 sps:$4 sm:$0xff]   ;;  %v6028_v12 = vrot.slane %v19392_v62, %v19613_v9 }
 0x250   :  { %v8173_v17 = vadd.f32 %v8172_v13, %v5598_v1  ;;  %v5868_v13 = vcombine.high %v5827_v51, %v5855_v52  ;;  %v5935_v20 = vcombine.low %v5885_v4, %v5899_v5  ;;  %v5936_v24 = vcombine.high %v5885_v4, %v5899_v5 }
 0x251   :  { %v6075_v5 = vcombine.low %v6049_v56, %v6063_v57 }
 0x252   :  { %v8174_v25 = vadd.f32 %v8173_v17, %v5727_v10  ;;  %v19386_v17 = vld [vmem:[#allocation5 + $0x74c] ss:$392 sps:$4 sm:$0xff]   ;;  %v5949_v32 = vrot.slane %v5935_v20, %v19613_v9  ;;  %v5963_v36 = vrot.slane %v5936_v24, %v19613_v9 }
 0x253   :  { %v5920_v29 = vrot.slane %v19386_v17, %v19613_v9 }
 0x254   :  { %v8175_v30 = vadd.f32 %v8174_v25, %v5731_v16  ;;  %v19383_v16 = vld [vmem:[#allocation5 + $0x43c] ss:$392 sps:$4 sm:$0xff]   ;;  %v5940_v25 = vcombine.high %v5913_v7, %v5927_v8  ;;  %v5999_v43 = vcombine.low %v5949_v32, %v5977_v33  ;;  %v6000_v55 = vcombine.high %v5949_v32, %v5977_v33 }
 0x256   :  { %v8176_v37 = vadd.f32 %v8175_v30, %v5728_v22  ;;  %v5934_v30 = vrot.slane %v19389_v18, %v19613_v9  ;;  %v6113_v18 = vrot.slane %v6075_v5, %v19613_v9 }
 0x258   :  { %v8177_v41 = vadd.f32 %v8176_v37, %v5732_v28  ;;  %v5906_v28 = vrot.slane %v19383_v16, %v19613_v9  ;;  %v5991_v37 = vrot.slane %v5940_v25, %v19613_v9  ;;  %v5941_v40 = vcombine.low %v5920_v29, %v5934_v30 }
 0x259   :  { %v5942_v48 = vcombine.high %v5920_v29, %v5934_v30  ;;  %v19408_v29 = vld [vmem:[#allocation5 + $0x758] ss:$392 sps:$4 sm:$0xff]   ;;  %v19411_v30 = vld [vmem:[#allocation5 + $0xa68] ss:$392 sps:$4 sm:$0xff]  }
 0x25a   :  { %v8178_v49 = vadd.f32 %v8177_v41, %v5729_v34  ;;  %v5937_v39 = vcombine.low %v5892_v27, %v5906_v28  ;;  %v19390_v41 = vld [vmem:[#allocation5 + $0x130] ss:$392 sps:$4 sm:$0xff]   ;;  %v5938_v47 = vcombine.high %v5892_v27, %v5906_v28  ;;  %v5984_v52 = vrot.slane %v5941_v40, %v19613_v9 }
 0x25b   :  { %v5998_v60 = vrot.slane %v5942_v48, %v19613_v9  ;;  %v19405_v27 = vld [vmem:[#allocation5 + $0x448] ss:$392 sps:$4 sm:$0xff]   ;;  %v6199_v42 = vrot.slane %v19411_v30, %v19613_v9 }
 0x25c   :  { %v8179_v53 = vadd.f32 %v8178_v49, %v5733_v38  ;;  %v6003_v49 = vcombine.low %v5963_v36, %v5991_v37  ;;  %v5956_v51 = vrot.slane %v5937_v39, %v19613_v9  ;;  %v5970_v59 = vrot.slane %v5938_v47, %v19613_v9  ;;  %v19404_v47 = vld [vmem:[#allocation5 + $0x13c] ss:$392 sps:$4 sm:$0xff]  }
 0x25d   :  { %v6171_v39 = vrot.slane %v19405_v27, %v19613_v9 }
 0x25e   :  { %v8180_v61 = vadd.f32 %v8179_v53, %v5730_v46  ;;  %v6021_v53 = vrot.slane %v19390_v41, %v19613_v9  ;;  %v6001_v3 = vcombine.low %v5956_v51, %v5984_v52  ;;  %v6005_v7 = vcombine.low %v5970_v59, %v5998_v60 }
 0x25f   :  { %v6002_v16 = vcombine.high %v5956_v51, %v5984_v52  ;;  %v6006_v20 = vcombine.high %v5970_v59, %v5998_v60  ;;  %v6185_v41 = vrot.slane %v19408_v29, %v19613_v9  ;;  %v19413_v51 = vld [vmem:[#allocation5 + $0xa6c] ss:$392 sps:$4 sm:$0xff]   ;;  %v6164_v60 = vrot.slane %v19404_v47, %v19613_v9 }
 0x260   :  { %v8181_v1 = vadd.f32 %v8180_v61, %v5734_v50  ;;  %v6004_v61 = vcombine.high %v5963_v36, %v5991_v37  ;;  %v6071_v4 = vcombine.low %v6021_v53, %v6035_v54  ;;  %v6072_v8 = vcombine.high %v6021_v53, %v6035_v54 }
 0x261   :  { %v6211_v54 = vcombine.low %v6185_v41, %v6199_v42 }
 0x262   :  { %v8182_v10 = vadd.f32 %v8181_v1, %v5863_v58  ;;  %v19398_v1 = vld [vmem:[#allocation5 + $0x754] ss:$392 sps:$4 sm:$0xff]   ;;  %v6085_v17 = vrot.slane %v6071_v4, %v19613_v9  ;;  %v6099_v21 = vrot.slane %v6072_v8, %v19613_v9 }
 0x263   :  { %v6056_v14 = vrot.slane %v19398_v1, %v19613_v9 }
 0x264   :  { %v8183_v15 = vadd.f32 %v8182_v10, %v5867_v0  ;;  %v19395_v0 = vld [vmem:[#allocation5 + $0x444] ss:$392 sps:$4 sm:$0xff]   ;;  %v6076_v10 = vcombine.high %v6049_v56, %v6063_v57  ;;  %v6135_v28 = vcombine.low %v6085_v17, %v6113_v18  ;;  %v6136_v40 = vcombine.high %v6085_v17, %v6113_v18 }
 0x266   :  { %v8184_v22 = vadd.f32 %v8183_v15, %v5864_v6  ;;  %v6070_v15 = vrot.slane %v19401_v2, %v19613_v9  ;;  %v6249_v2 = vrot.slane %v6211_v54, %v19613_v9 }
 0x268   :  { %v8185_v26 = vadd.f32 %v8184_v22, %v5868_v13  ;;  %v6042_v13 = vrot.slane %v19395_v0, %v19613_v9  ;;  %v6127_v22 = vrot.slane %v6076_v10, %v19613_v9  ;;  %v6077_v25 = vcombine.low %v6056_v14, %v6070_v15 }
 0x269   :  { %v6078_v33 = vcombine.high %v6056_v14, %v6070_v15  ;;  %v19420_v14 = vld [vmem:[#allocation5 + $0x760] ss:$392 sps:$4 sm:$0xff]   ;;  %v19423_v15 = vld [vmem:[#allocation5 + $0xa70] ss:$392 sps:$4 sm:$0xff]  }
 0x26a   :  { %v8186_v34 = vadd.f32 %v8185_v26, %v5865_v19  ;;  %v6073_v24 = vcombine.low %v6028_v12, %v6042_v13  ;;  %v19402_v26 = vld [vmem:[#allocation5 + $0x138] ss:$392 sps:$4 sm:$0xff]   ;;  %v6074_v32 = vcombine.high %v6028_v12, %v6042_v13  ;;  %v6120_v37 = vrot.slane %v6077_v25, %v19613_v9 }
 0x26b   :  { %v6134_v45 = vrot.slane %v6078_v33, %v19613_v9  ;;  %v19417_v12 = vld [vmem:[#allocation5 + $0x450] ss:$392 sps:$4 sm:$0xff]   ;;  %v6335_v27 = vrot.slane %v19423_v15, %v19613_v9 }
 0x26c   :  { %v8187_v38 = vadd.f32 %v8186_v34, %v5869_v23  ;;  %v6139_v34 = vcombine.low %v6099_v21, %v6127_v22  ;;  %v6092_v36 = vrot.slane %v6073_v24, %v19613_v9  ;;  %v6106_v44 = vrot.slane %v6074_v32, %v19613_v9  ;;  %v19416_v32 = vld [vmem:[#allocation5 + $0x144] ss:$392 sps:$4 sm:$0xff]  }
 0x26d   :  { %v6307_v24 = vrot.slane %v19417_v12, %v19613_v9 }
 0x26e   :  { %v8188_v46 = vadd.f32 %v8187_v38, %v5866_v31  ;;  %v6157_v38 = vrot.slane %v19402_v26, %v19613_v9  ;;  %v6137_v52 = vcombine.low %v6092_v36, %v6120_v37  ;;  %v6141_v56 = vcombine.low %v6106_v44, %v6134_v45 }
 0x26f   :  { %v6138_v0 = vcombine.high %v6092_v36, %v6120_v37  ;;  %v6142_v4 = vcombine.high %v6106_v44, %v6134_v45  ;;  %v6321_v26 = vrot.slane %v19420_v14, %v19613_v9  ;;  %v19425_v36 = vld [vmem:[#allocation5 + $0xa74] ss:$392 sps:$4 sm:$0xff]   ;;  %v6300_v45 = vrot.slane %v19416_v32, %v19613_v9 }
 0x270   :  { %v8189_v50 = vadd.f32 %v8188_v46, %v5870_v35  ;;  %v6140_v46 = vcombine.high %v6099_v21, %v6127_v22  ;;  %v6207_v53 = vcombine.low %v6157_v38, %v6171_v39  ;;  %v6208_v57 = vcombine.high %v6157_v38, %v6171_v39 }
 0x271   :  { %v6347_v39 = vcombine.low %v6321_v26, %v6335_v27 }
 0x272   :  { %v8190_v58 = vadd.f32 %v8189_v50, %v5999_v43  ;;  %v19410_v50 = vld [vmem:[#allocation5 + $0x75c] ss:$392 sps:$4 sm:$0xff]   ;;  %v6221_v1 = vrot.slane %v6207_v53, %v19613_v9  ;;  %v6235_v5 = vrot.slane %v6208_v57, %v19613_v9 }
 0x273   :  { %v6192_v62 = vrot.slane %v19410_v50, %v19613_v9 }
 0x274   :  { %v8191_v63 = vadd.f32 %v8190_v58, %v6003_v49  ;;  %v19407_v49 = vld [vmem:[#allocation5 + $0x44c] ss:$392 sps:$4 sm:$0xff]   ;;  %v6212_v58 = vcombine.high %v6185_v41, %v6199_v42  ;;  %v6271_v13 = vcombine.low %v6221_v1, %v6249_v2  ;;  %v6272_v25 = vcombine.high %v6221_v1, %v6249_v2 }
 0x276   :  { %v8192_v6 = vadd.f32 %v8191_v63, %v6000_v55  ;;  %v6206_v63 = vrot.slane %v19413_v51, %v19613_v9  ;;  %v6385_v51 = vrot.slane %v6347_v39, %v19613_v9 }
 0x278   :  { %v8193_v11 = vadd.f32 %v8192_v6, %v6004_v61  ;;  %v6178_v61 = vrot.slane %v19407_v49, %v19613_v9  ;;  %v6263_v6 = vrot.slane %v6212_v58, %v19613_v9  ;;  %v6213_v10 = vcombine.low %v6192_v62, %v6206_v63 }
 0x279   :  { %v6214_v18 = vcombine.high %v6192_v62, %v6206_v63  ;;  %v19432_v62 = vld [vmem:[#allocation5 + $0x768] ss:$392 sps:$4 sm:$0xff]   ;;  %v19435_v63 = vld [vmem:[#allocation5 + $0xa78] ss:$392 sps:$4 sm:$0xff]  }
 0x27a   :  { %v8194_v19 = vadd.f32 %v8193_v11, %v6001_v3  ;;  %v6209_v8 = vcombine.low %v6164_v60, %v6178_v61  ;;  %v19414_v11 = vld [vmem:[#allocation5 + $0x140] ss:$392 sps:$4 sm:$0xff]   ;;  %v6210_v17 = vcombine.high %v6164_v60, %v6178_v61  ;;  %v6256_v22 = vrot.slane %v6213_v10, %v19613_v9 }
 0x27b   :  { %v6270_v30 = vrot.slane %v6214_v18, %v19613_v9  ;;  %v19429_v60 = vld [vmem:[#allocation5 + $0x458] ss:$392 sps:$4 sm:$0xff]   ;;  %v6471_v12 = vrot.slane %v19435_v63, %v19613_v9 }
 0x27c   :  { %v8195_v23 = vadd.f32 %v8194_v19, %v6005_v7  ;;  %v6275_v19 = vcombine.low %v6235_v5, %v6263_v6  ;;  %v6228_v21 = vrot.slane %v6209_v8, %v19613_v9  ;;  %v6242_v29 = vrot.slane %v6210_v17, %v19613_v9  ;;  %v19428_v17 = vld [vmem:[#allocation5 + $0x14c] ss:$392 sps:$4 sm:$0xff]  }
 0x27d   :  { %v6443_v8 = vrot.slane %v19429_v60, %v19613_v9 }
 0x27e   :  { %v8196_v31 = vadd.f32 %v8195_v23, %v6002_v16  ;;  %v6293_v23 = vrot.slane %v19414_v11, %v19613_v9  ;;  %v6273_v37 = vcombine.low %v6228_v21, %v6256_v22  ;;  %v6277_v41 = vcombine.low %v6242_v29, %v6270_v30 }
 0x27f   :  { %v6274_v49 = vcombine.high %v6228_v21, %v6256_v22  ;;  %v6278_v53 = vcombine.high %v6242_v29, %v6270_v30  ;;  %v6457_v11 = vrot.slane %v19432_v62, %v19613_v9  ;;  %v19437_v21 = vld [vmem:[#allocation5 + $0xa7c] ss:$392 sps:$4 sm:$0xff]   ;;  %v6436_v30 = vrot.slane %v19428_v17, %v19613_v9 }
 0x280   :  { %v8197_v35 = vadd.f32 %v8196_v31, %v6006_v20  ;;  %v6276_v31 = vcombine.high %v6235_v5, %v6263_v6  ;;  %v6343_v38 = vcombine.low %v6293_v23, %v6307_v24  ;;  %v6344_v42 = vcombine.high %v6293_v23, %v6307_v24 }
 0x281   :  { %v6483_v24 = vcombine.low %v6457_v11, %v6471_v12 }
 0x282   :  { %v8198_v43 = vadd.f32 %v8197_v35, %v6135_v28  ;;  %v19422_v35 = vld [vmem:[#allocation5 + $0x764] ss:$392 sps:$4 sm:$0xff]   ;;  %v6357_v50 = vrot.slane %v6343_v38, %v19613_v9  ;;  %v6371_v54 = vrot.slane %v6344_v42, %v19613_v9 }
 0x283   :  { %v6328_v47 = vrot.slane %v19422_v35, %v19613_v9 }
 0x284   :  { %v8199_v48 = vadd.f32 %v8198_v43, %v6139_v34  ;;  %v19419_v34 = vld [vmem:[#allocation5 + $0x454] ss:$392 sps:$4 sm:$0xff]   ;;  %v6348_v43 = vcombine.high %v6321_v26, %v6335_v27  ;;  %v6407_v61 = vcombine.low %v6357_v50, %v6385_v51  ;;  %v6408_v10 = vcombine.high %v6357_v50, %v6385_v51 }
 0x286   :  { %v8200_v55 = vadd.f32 %v8199_v48, %v6136_v40  ;;  %v6342_v48 = vrot.slane %v19425_v36, %v19613_v9  ;;  %v6521_v36 = vrot.slane %v6483_v24, %v19613_v9 }
 0x288   :  { %v8201_v59 = vadd.f32 %v8200_v55, %v6140_v46  ;;  %v6314_v46 = vrot.slane %v19419_v34, %v19613_v9  ;;  %v6399_v55 = vrot.slane %v6348_v43, %v19613_v9  ;;  %v6349_v58 = vcombine.low %v6328_v47, %v6342_v48 }
 0x289   :  { %v6350_v2 = vcombine.high %v6328_v47, %v6342_v48  ;;  %v19444_v47 = vld [vmem:[#allocation5 + $0x770] ss:$392 sps:$4 sm:$0xff]   ;;  %v19447_v48 = vld [vmem:[#allocation5 + $0xa80] ss:$392 sps:$4 sm:$0xff]  }
 0x28a   :  { %v8202_v3 = vadd.f32 %v8201_v59, %v6137_v52  ;;  %v6345_v57 = vcombine.low %v6300_v45, %v6314_v46  ;;  %v19426_v59 = vld [vmem:[#allocation5 + $0x148] ss:$392 sps:$4 sm:$0xff]   ;;  %v6346_v1 = vcombine.high %v6300_v45, %v6314_v46  ;;  %v6392_v6 = vrot.slane %v6349_v58, %v19613_v9 }
 0x28b   :  { %v6406_v15 = vrot.slane %v6350_v2, %v19613_v9  ;;  %v19441_v45 = vld [vmem:[#allocation5 + $0x460] ss:$392 sps:$4 sm:$0xff]   ;;  %v6607_v60 = vrot.slane %v19447_v48, %v19613_v9 }
 0x28c   :  { %v8203_v7 = vadd.f32 %v8202_v3, %v6141_v56  ;;  %v6411_v3 = vcombine.low %v6371_v54, %v6399_v55  ;;  %v6364_v5 = vrot.slane %v6345_v57, %v19613_v9  ;;  %v6378_v14 = vrot.slane %v6346_v1, %v19613_v9  ;;  %v19440_v1 = vld [vmem:[#allocation5 + $0x154] ss:$392 sps:$4 sm:$0xff]  }
 0x28d   :  { %v6579_v57 = vrot.slane %v19441_v45, %v19613_v9 }
 0x28e   :  { %v8204_v16 = vadd.f32 %v8203_v7, %v6138_v0  ;;  %v6429_v7 = vrot.slane %v19426_v59, %v19613_v9  ;;  %v6409_v22 = vcombine.low %v6364_v5, %v6392_v6  ;;  %v6413_v26 = vcombine.low %v6378_v14, %v6406_v15 }
 0x28f   :  { %v6410_v34 = vcombine.high %v6364_v5, %v6392_v6  ;;  %v6414_v38 = vcombine.high %v6378_v14, %v6406_v15  ;;  %v6593_v59 = vrot.slane %v19444_v47, %v19613_v9  ;;  %v19449_v5 = vld [vmem:[#allocation5 + $0xa84] ss:$392 sps:$4 sm:$0xff]   ;;  %v6572_v15 = vrot.slane %v19440_v1, %v19613_v9 }
 0x290   :  { %v8205_v20 = vadd.f32 %v8204_v16, %v6142_v4  ;;  %v6412_v16 = vcombine.high %v6371_v54, %v6399_v55  ;;  %v6479_v23 = vcombine.low %v6429_v7, %v6443_v8  ;;  %v6480_v27 = vcombine.high %v6429_v7, %v6443_v8 }
 0x291   :  { %v6619_v8 = vcombine.low %v6593_v59, %v6607_v60 }
 0x292   :  { %v8206_v28 = vadd.f32 %v8205_v20, %v6271_v13  ;;  %v19434_v20 = vld [vmem:[#allocation5 + $0x76c] ss:$392 sps:$4 sm:$0xff]   ;;  %v6493_v35 = vrot.slane %v6479_v23, %v19613_v9  ;;  %v6507_v39 = vrot.slane %v6480_v27, %v19613_v9 }
 0x293   :  { %v6464_v32 = vrot.slane %v19434_v20, %v19613_v9 }
 0x294   :  { %v8207_v33 = vadd.f32 %v8206_v28, %v6275_v19  ;;  %v19431_v19 = vld [vmem:[#allocation5 + $0x45c] ss:$392 sps:$4 sm:$0xff]   ;;  %v6484_v28 = vcombine.high %v6457_v11, %v6471_v12  ;;  %v6543_v46 = vcombine.low %v6493_v35, %v6521_v36  ;;  %v6544_v58 = vcombine.high %v6493_v35, %v6521_v36 }
 0x296   :  { %v8208_v40 = vadd.f32 %v8207_v33, %v6272_v25  ;;  %v6478_v33 = vrot.slane %v19437_v21, %v19613_v9  ;;  %v6657_v21 = vrot.slane %v6619_v8, %v19613_v9 }
 0x298   :  { %v8209_v44 = vadd.f32 %v8208_v40, %v6276_v31  ;;  %v6450_v31 = vrot.slane %v19431_v19, %v19613_v9  ;;  %v6535_v40 = vrot.slane %v6484_v28, %v19613_v9  ;;  %v6485_v43 = vcombine.low %v6464_v32, %v6478_v33 }
 0x299   :  { %v6486_v51 = vcombine.high %v6464_v32, %v6478_v33  ;;  %v19456_v32 = vld [vmem:[#allocation5 + $0x778] ss:$392 sps:$4 sm:$0xff]   ;;  %v19459_v33 = vld [vmem:[#allocation5 + $0xa88] ss:$392 sps:$4 sm:$0xff]  }
 0x29a   :  { %v8210_v52 = vadd.f32 %v8209_v44, %v6273_v37  ;;  %v6481_v42 = vcombine.low %v6436_v30, %v6450_v31  ;;  %v19438_v44 = vld [vmem:[#allocation5 + $0x150] ss:$392 sps:$4 sm:$0xff]   ;;  %v6482_v50 = vcombine.high %v6436_v30, %v6450_v31  ;;  %v6528_v55 = vrot.slane %v6485_v43, %v19613_v9 }
 0x29b   :  { %v6542_v63 = vrot.slane %v6486_v51, %v19613_v9  ;;  %v19453_v30 = vld [vmem:[#allocation5 + $0x468] ss:$392 sps:$4 sm:$0xff]   ;;  %v6743_v45 = vrot.slane %v19459_v33, %v19613_v9 }
 0x29c   :  { %v8211_v56 = vadd.f32 %v8210_v52, %v6277_v41  ;;  %v6547_v52 = vcombine.low %v6507_v39, %v6535_v40  ;;  %v6500_v54 = vrot.slane %v6481_v42, %v19613_v9  ;;  %v6514_v62 = vrot.slane %v6482_v50, %v19613_v9  ;;  %v19452_v50 = vld [vmem:[#allocation5 + $0x15c] ss:$392 sps:$4 sm:$0xff]  }
 0x29d   :  { %v6715_v42 = vrot.slane %v19453_v30, %v19613_v9 }
 0x29e   :  { %v8212_v0 = vadd.f32 %v8211_v56, %v6274_v49  ;;  %v6565_v56 = vrot.slane %v19438_v44, %v19613_v9  ;;  %v6545_v6 = vcombine.low %v6500_v54, %v6528_v55  ;;  %v6549_v11 = vcombine.low %v6514_v62, %v6542_v63 }
 0x29f   :  { %v6546_v19 = vcombine.high %v6500_v54, %v6528_v55  ;;  %v6550_v23 = vcombine.high %v6514_v62, %v6542_v63  ;;  %v6729_v44 = vrot.slane %v19456_v32, %v19613_v9  ;;  %v19461_v54 = vld [vmem:[#allocation5 + $0xa8c] ss:$392 sps:$4 sm:$0xff]   ;;  %v6708_v63 = vrot.slane %v19452_v50, %v19613_v9 }
 0x2a0   :  { %v8213_v4 = vadd.f32 %v8212_v0, %v6278_v53  ;;  %v6548_v0 = vcombine.high %v6507_v39, %v6535_v40  ;;  %v6615_v7 = vcombine.low %v6565_v56, %v6579_v57  ;;  %v6616_v12 = vcombine.high %v6565_v56, %v6579_v57 }
 0x2a1   :  { %v6755_v57 = vcombine.low %v6729_v44, %v6743_v45 }
 0x2a2   :  { %v8214_v13 = vadd.f32 %v8213_v4, %v6407_v61  ;;  %v19446_v4 = vld [vmem:[#allocation5 + $0x774] ss:$392 sps:$4 sm:$0xff]   ;;  %v6629_v20 = vrot.slane %v6615_v7, %v19613_v9  ;;  %v6643_v24 = vrot.slane %v6616_v12, %v19613_v9 }
 0x2a3   :  { %v6600_v17 = vrot.slane %v19446_v4, %v19613_v9 }
 0x2a4   :  { %v8215_v18 = vadd.f32 %v8214_v13, %v6411_v3  ;;  %v19443_v3 = vld [vmem:[#allocation5 + $0x464] ss:$392 sps:$4 sm:$0xff]   ;;  %v6620_v13 = vcombine.high %v6593_v59, %v6607_v60  ;;  %v6679_v31 = vcombine.low %v6629_v20, %v6657_v21  ;;  %v6680_v43 = vcombine.high %v6629_v20, %v6657_v21 }
 0x2a6   :  { %v8216_v25 = vadd.f32 %v8215_v18, %v6408_v10  ;;  %v6614_v18 = vrot.slane %v19449_v5, %v19613_v9  ;;  %v6793_v5 = vrot.slane %v6755_v57, %v19613_v9 }
 0x2a8   :  { %v8217_v29 = vadd.f32 %v8216_v25, %v6412_v16  ;;  %v6586_v16 = vrot.slane %v19443_v3, %v19613_v9  ;;  %v6671_v25 = vrot.slane %v6620_v13, %v19613_v9  ;;  %v6621_v28 = vcombine.low %v6600_v17, %v6614_v18 }
 0x2a9   :  { %v6622_v36 = vcombine.high %v6600_v17, %v6614_v18  ;;  %v19468_v17 = vld [vmem:[#allocation5 + $0x780] ss:$392 sps:$4 sm:$0xff]   ;;  %v19471_v18 = vld [vmem:[#allocation5 + $0xa90] ss:$392 sps:$4 sm:$0xff]  }
 0x2aa   :  { %v8218_v37 = vadd.f32 %v8217_v29, %v6409_v22  ;;  %v6617_v27 = vcombine.low %v6572_v15, %v6586_v16  ;;  %v19450_v29 = vld [vmem:[#allocation5 + $0x158] ss:$392 sps:$4 sm:$0xff]   ;;  %v6618_v35 = vcombine.high %v6572_v15, %v6586_v16  ;;  %v6664_v40 = vrot.slane %v6621_v28, %v19613_v9 }
 0x2ab   :  { %v6678_v48 = vrot.slane %v6622_v36, %v19613_v9  ;;  %v19465_v15 = vld [vmem:[#allocation5 + $0x470] ss:$392 sps:$4 sm:$0xff]   ;;  %v6879_v30 = vrot.slane %v19471_v18, %v19613_v9 }
 0x2ac   :  { %v8219_v41 = vadd.f32 %v8218_v37, %v6413_v26  ;;  %v6683_v37 = vcombine.low %v6643_v24, %v6671_v25  ;;  %v6636_v39 = vrot.slane %v6617_v27, %v19613_v9  ;;  %v6650_v47 = vrot.slane %v6618_v35, %v19613_v9  ;;  %v19464_v35 = vld [vmem:[#allocation5 + $0x164] ss:$392 sps:$4 sm:$0xff]  }
 0x2ad   :  { %v6851_v27 = vrot.slane %v19465_v15, %v19613_v9 }
 0x2ae   :  { %v8220_v49 = vadd.f32 %v8219_v41, %v6410_v34  ;;  %v6701_v41 = vrot.slane %v19450_v29, %v19613_v9  ;;  %v6681_v55 = vcombine.low %v6636_v39, %v6664_v40  ;;  %v6685_v59 = vcombine.low %v6650_v47, %v6678_v48 }
 0x2af   :  { %v6682_v3 = vcombine.high %v6636_v39, %v6664_v40  ;;  %v6686_v7 = vcombine.high %v6650_v47, %v6678_v48  ;;  %v6865_v29 = vrot.slane %v19468_v17, %v19613_v9  ;;  %v19473_v39 = vld [vmem:[#allocation5 + $0xa94] ss:$392 sps:$4 sm:$0xff]   ;;  %v6844_v48 = vrot.slane %v19464_v35, %v19613_v9 }
 0x2b0   :  { %v8221_v53 = vadd.f32 %v8220_v49, %v6414_v38  ;;  %v6684_v49 = vcombine.high %v6643_v24, %v6671_v25  ;;  %v6751_v56 = vcombine.low %v6701_v41, %v6715_v42  ;;  %v6752_v60 = vcombine.high %v6701_v41, %v6715_v42 }
 0x2b1   :  { %v6891_v42 = vcombine.low %v6865_v29, %v6879_v30 }
 0x2b2   :  { %v8222_v61 = vadd.f32 %v8221_v53, %v6543_v46  ;;  %v19458_v53 = vld [vmem:[#allocation5 + $0x77c] ss:$392 sps:$4 sm:$0xff]   ;;  %v6765_v4 = vrot.slane %v6751_v56, %v19613_v9  ;;  %v6779_v8 = vrot.slane %v6752_v60, %v19613_v9 }
 0x2b3   :  { %v6736_v1 = vrot.slane %v19458_v53, %v19613_v9 }
 0x2b4   :  { %v8223_v2 = vadd.f32 %v8222_v61, %v6547_v52  ;;  %v19455_v52 = vld [vmem:[#allocation5 + $0x46c] ss:$392 sps:$4 sm:$0xff]   ;;  %v6756_v61 = vcombine.high %v6729_v44, %v6743_v45  ;;  %v6815_v16 = vcombine.low %v6765_v4, %v6793_v5  ;;  %v6816_v28 = vcombine.high %v6765_v4, %v6793_v5 }
 0x2b6   :  { %v8224_v10 = vadd.f32 %v8223_v2, %v6544_v58  ;;  %v6750_v2 = vrot.slane %v19461_v54, %v19613_v9  ;;  %v6929_v54 = vrot.slane %v6891_v42, %v19613_v9 }
 0x2b8   :  { %v8225_v14 = vadd.f32 %v8224_v10, %v6548_v0  ;;  %v6722_v0 = vrot.slane %v19455_v52, %v19613_v9  ;;  %v6807_v10 = vrot.slane %v6756_v61, %v19613_v9  ;;  %v6757_v13 = vcombine.low %v6736_v1, %v6750_v2 }
 0x2b9   :  { %v6758_v21 = vcombine.high %v6736_v1, %v6750_v2  ;;  %v19480_v1 = vld [vmem:[#allocation5 + $0x788] ss:$392 sps:$4 sm:$0xff]   ;;  %v19483_v2 = vld [vmem:[#allocation5 + $0xa98] ss:$392 sps:$4 sm:$0xff]  }
 0x2ba   :  { %v8226_v22 = vadd.f32 %v8225_v14, %v6545_v6  ;;  %v6753_v12 = vcombine.low %v6708_v63, %v6722_v0  ;;  %v19462_v14 = vld [vmem:[#allocation5 + $0x160] ss:$392 sps:$4 sm:$0xff]   ;;  %v6754_v20 = vcombine.high %v6708_v63, %v6722_v0  ;;  %v6800_v25 = vrot.slane %v6757_v13, %v19613_v9 }
 0x2bb   :  { %v6814_v33 = vrot.slane %v6758_v21, %v19613_v9  ;;  %v19477_v63 = vld [vmem:[#allocation5 + $0x478] ss:$392 sps:$4 sm:$0xff]   ;;  %v7015_v15 = vrot.slane %v19483_v2, %v19613_v9 }
 0x2bc   :  { %v8227_v26 = vadd.f32 %v8226_v22, %v6549_v11  ;;  %v6819_v22 = vcombine.low %v6779_v8, %v6807_v10  ;;  %v6772_v24 = vrot.slane %v6753_v12, %v19613_v9  ;;  %v6786_v32 = vrot.slane %v6754_v20, %v19613_v9  ;;  %v19476_v20 = vld [vmem:[#allocation5 + $0x16c] ss:$392 sps:$4 sm:$0xff]  }
 0x2bd   :  { %v6987_v12 = vrot.slane %v19477_v63, %v19613_v9 }
 0x2be   :  { %v8228_v34 = vadd.f32 %v8227_v26, %v6546_v19  ;;  %v6837_v26 = vrot.slane %v19462_v14, %v19613_v9  ;;  %v6817_v40 = vcombine.low %v6772_v24, %v6800_v25  ;;  %v6821_v44 = vcombine.low %v6786_v32, %v6814_v33 }
 0x2bf   :  { %v6818_v52 = vcombine.high %v6772_v24, %v6800_v25  ;;  %v6822_v56 = vcombine.high %v6786_v32, %v6814_v33  ;;  %v7001_v14 = vrot.slane %v19480_v1, %v19613_v9  ;;  %v19485_v24 = vld [vmem:[#allocation5 + $0xa9c] ss:$392 sps:$4 sm:$0xff]   ;;  %v6980_v33 = vrot.slane %v19476_v20, %v19613_v9 }
 0x2c0   :  { %v8229_v38 = vadd.f32 %v8228_v34, %v6550_v23  ;;  %v6820_v34 = vcombine.high %v6779_v8, %v6807_v10  ;;  %v6887_v41 = vcombine.low %v6837_v26, %v6851_v27  ;;  %v6888_v45 = vcombine.high %v6837_v26, %v6851_v27 }
 0x2c1   :  { %v7027_v27 = vcombine.low %v7001_v14, %v7015_v15 }
 0x2c2   :  { %v8230_v46 = vadd.f32 %v8229_v38, %v6679_v31  ;;  %v19470_v38 = vld [vmem:[#allocation5 + $0x784] ss:$392 sps:$4 sm:$0xff]   ;;  %v6901_v53 = vrot.slane %v6887_v41, %v19613_v9  ;;  %v6915_v57 = vrot.slane %v6888_v45, %v19613_v9 }
 0x2c3   :  { %v6872_v50 = vrot.slane %v19470_v38, %v19613_v9 }
 0x2c4   :  { %v8231_v51 = vadd.f32 %v8230_v46, %v6683_v37  ;;  %v19467_v37 = vld [vmem:[#allocation5 + $0x474] ss:$392 sps:$4 sm:$0xff]   ;;  %v6892_v46 = vcombine.high %v6865_v29, %v6879_v30  ;;  %v6951_v0 = vcombine.low %v6901_v53, %v6929_v54  ;;  %v6952_v13 = vcombine.high %v6901_v53, %v6929_v54 }
 0x2c6   :  { %v8232_v58 = vadd.f32 %v8231_v51, %v6680_v43  ;;  %v6886_v51 = vrot.slane %v19473_v39, %v19613_v9  ;;  %v7065_v39 = vrot.slane %v7027_v27, %v19613_v9 }
 0x2c8   :  { %v8233_v62 = vadd.f32 %v8232_v58, %v6684_v49  ;;  %v6858_v49 = vrot.slane %v19467_v37, %v19613_v9  ;;  %v6943_v58 = vrot.slane %v6892_v46, %v19613_v9  ;;  %v6893_v61 = vcombine.low %v6872_v50, %v6886_v51 }
 0x2c9   :  { %v6894_v5 = vcombine.high %v6872_v50, %v6886_v51  ;;  %v19492_v50 = vld [vmem:[#allocation5 + $0x790] ss:$392 sps:$4 sm:$0xff]   ;;  %v19495_v51 = vld [vmem:[#allocation5 + $0xaa0] ss:$392 sps:$4 sm:$0xff]  }
 0x2ca   :  { %v8234_v6 = vadd.f32 %v8233_v62, %v6681_v55  ;;  %v6889_v60 = vcombine.low %v6844_v48, %v6858_v49  ;;  %v19474_v62 = vld [vmem:[#allocation5 + $0x168] ss:$392 sps:$4 sm:$0xff]   ;;  %v6890_v4 = vcombine.high %v6844_v48, %v6858_v49  ;;  %v6936_v10 = vrot.slane %v6893_v61, %v19613_v9 }
 0x2cb   :  { %v6950_v18 = vrot.slane %v6894_v5, %v19613_v9  ;;  %v19489_v48 = vld [vmem:[#allocation5 + $0x480] ss:$392 sps:$4 sm:$0xff]   ;;  %v7151_v63 = vrot.slane %v19495_v51, %v19613_v9 }
 0x2cc   :  { %v8235_v11 = vadd.f32 %v8234_v6, %v6685_v59  ;;  %v6955_v6 = vcombine.low %v6915_v57, %v6943_v58  ;;  %v6908_v8 = vrot.slane %v6889_v60, %v19613_v9  ;;  %v6922_v17 = vrot.slane %v6890_v4, %v19613_v9  ;;  %v19488_v4 = vld [vmem:[#allocation5 + $0x174] ss:$392 sps:$4 sm:$0xff]  }
 0x2cd   :  { %v7123_v60 = vrot.slane %v19489_v48, %v19613_v9 }
 0x2ce   :  { %v8236_v19 = vadd.f32 %v8235_v11, %v6682_v3  ;;  %v6973_v11 = vrot.slane %v19474_v62, %v19613_v9  ;;  %v6953_v25 = vcombine.low %v6908_v8, %v6936_v10  ;;  %v6957_v29 = vcombine.low %v6922_v17, %v6950_v18 }
 0x2cf   :  { %v6954_v37 = vcombine.high %v6908_v8, %v6936_v10  ;;  %v6958_v41 = vcombine.high %v6922_v17, %v6950_v18  ;;  %v7137_v62 = vrot.slane %v19492_v50, %v19613_v9  ;;  %v19497_v8 = vld [vmem:[#allocation5 + $0xaa4] ss:$392 sps:$4 sm:$0xff]   ;;  %v7116_v18 = vrot.slane %v19488_v4, %v19613_v9 }
 0x2d0   :  { %v8237_v23 = vadd.f32 %v8236_v19, %v6686_v7  ;;  %v6956_v19 = vcombine.high %v6915_v57, %v6943_v58  ;;  %v7023_v26 = vcombine.low %v6973_v11, %v6987_v12  ;;  %v7024_v30 = vcombine.high %v6973_v11, %v6987_v12 }
 0x2d1   :  { %v7163_v12 = vcombine.low %v7137_v62, %v7151_v63 }
 0x2d2   :  { %v8238_v31 = vadd.f32 %v8237_v23, %v6815_v16  ;;  %v19482_v23 = vld [vmem:[#allocation5 + $0x78c] ss:$392 sps:$4 sm:$0xff]   ;;  %v7037_v38 = vrot.slane %v7023_v26, %v19613_v9  ;;  %v7051_v42 = vrot.slane %v7024_v30, %v19613_v9 }
 0x2d3   :  { %v7008_v35 = vrot.slane %v19482_v23, %v19613_v9 }
 0x2d4   :  { %v8239_v36 = vadd.f32 %v8238_v31, %v6819_v22  ;;  %v19479_v22 = vld [vmem:[#allocation5 + $0x47c] ss:$392 sps:$4 sm:$0xff]   ;;  %v7028_v31 = vcombine.high %v7001_v14, %v7015_v15  ;;  %v7087_v49 = vcombine.low %v7037_v38, %v7065_v39  ;;  %v7088_v61 = vcombine.high %v7037_v38, %v7065_v39 }
 0x2d6   :  { %v8240_v43 = vadd.f32 %v8239_v36, %v6816_v28  ;;  %v7022_v36 = vrot.slane %v19485_v24, %v19613_v9  ;;  %v7201_v24 = vrot.slane %v7163_v12, %v19613_v9 }
 0x2d8   :  { %v8241_v47 = vadd.f32 %v8240_v43, %v6820_v34  ;;  %v6994_v34 = vrot.slane %v19479_v22, %v19613_v9  ;;  %v7079_v43 = vrot.slane %v7028_v31, %v19613_v9  ;;  %v7029_v46 = vcombine.low %v7008_v35, %v7022_v36 }
 0x2d9   :  { %v7030_v54 = vcombine.high %v7008_v35, %v7022_v36  ;;  %v19504_v35 = vld [vmem:[#allocation5 + $0x798] ss:$392 sps:$4 sm:$0xff]   ;;  %v19507_v36 = vld [vmem:[#allocation5 + $0xaa8] ss:$392 sps:$4 sm:$0xff]  }
 0x2da   :  { %v8242_v55 = vadd.f32 %v8241_v47, %v6817_v40  ;;  %v7025_v45 = vcombine.low %v6980_v33, %v6994_v34  ;;  %v19486_v47 = vld [vmem:[#allocation5 + $0x170] ss:$392 sps:$4 sm:$0xff]   ;;  %v7026_v53 = vcombine.high %v6980_v33, %v6994_v34  ;;  %v7072_v58 = vrot.slane %v7029_v46, %v19613_v9 }
 0x2db   :  { %v7086_v2 = vrot.slane %v7030_v54, %v19613_v9  ;;  %v19501_v33 = vld [vmem:[#allocation5 + $0x488] ss:$392 sps:$4 sm:$0xff]   ;;  %v7287_v48 = vrot.slane %v19507_v36, %v19613_v9 }
 0x2dc   :  { %v8243_v59 = vadd.f32 %v8242_v55, %v6821_v44  ;;  %v7091_v55 = vcombine.low %v7051_v42, %v7079_v43  ;;  %v7044_v57 = vrot.slane %v7025_v45, %v19613_v9  ;;  %v7058_v1 = vrot.slane %v7026_v53, %v19613_v9  ;;  %v19500_v53 = vld [vmem:[#allocation5 + $0x17c] ss:$392 sps:$4 sm:$0xff]  }
 0x2dd   :  { %v7259_v45 = vrot.slane %v19501_v33, %v19613_v9 }
 0x2de   :  { %v8244_v3 = vadd.f32 %v8243_v59, %v6818_v52  ;;  %v7109_v59 = vrot.slane %v19486_v47, %v19613_v9  ;;  %v7089_v10 = vcombine.low %v7044_v57, %v7072_v58  ;;  %v7093_v14 = vcombine.low %v7058_v1, %v7086_v2 }
 0x2df   :  { %v7090_v22 = vcombine.high %v7044_v57, %v7072_v58  ;;  %v7094_v26 = vcombine.high %v7058_v1, %v7086_v2  ;;  %v7273_v47 = vrot.slane %v19504_v35, %v19613_v9  ;;  %v19509_v57 = vld [vmem:[#allocation5 + $0xaac] ss:$392 sps:$4 sm:$0xff]   ;;  %v7252_v2 = vrot.slane %v19500_v53, %v19613_v9 }
 0x2e0   :  { %v8245_v7 = vadd.f32 %v8244_v3, %v6822_v56  ;;  %v7092_v3 = vcombine.high %v7051_v42, %v7079_v43  ;;  %v7159_v11 = vcombine.low %v7109_v59, %v7123_v60  ;;  %v7160_v15 = vcombine.high %v7109_v59, %v7123_v60 }
 0x2e1   :  { %v7299_v60 = vcombine.low %v7273_v47, %v7287_v48 }
 0x2e2   :  { %v8246_v16 = vadd.f32 %v8245_v7, %v6951_v0  ;;  %v19494_v7 = vld [vmem:[#allocation5 + $0x794] ss:$392 sps:$4 sm:$0xff]   ;;  %v7173_v23 = vrot.slane %v7159_v11, %v19613_v9  ;;  %v7187_v27 = vrot.slane %v7160_v15, %v19613_v9 }
 0x2e3   :  { %v7144_v20 = vrot.slane %v19494_v7, %v19613_v9 }
 0x2e4   :  { %v8247_v21 = vadd.f32 %v8246_v16, %v6955_v6  ;;  %v19491_v6 = vld [vmem:[#allocation5 + $0x484] ss:$392 sps:$4 sm:$0xff]   ;;  %v7164_v16 = vcombine.high %v7137_v62, %v7151_v63  ;;  %v7223_v34 = vcombine.low %v7173_v23, %v7201_v24  ;;  %v7224_v46 = vcombine.high %v7173_v23, %v7201_v24 }
 0x2e6   :  { %v8248_v28 = vadd.f32 %v8247_v21, %v6952_v13  ;;  %v7158_v21 = vrot.slane %v19497_v8, %v19613_v9  ;;  %v7337_v8 = vrot.slane %v7299_v60, %v19613_v9 }
 0x2e8   :  { %v8249_v32 = vadd.f32 %v8248_v28, %v6956_v19  ;;  %v7130_v19 = vrot.slane %v19491_v6, %v19613_v9  ;;  %v7215_v28 = vrot.slane %v7164_v16, %v19613_v9  ;;  %v7165_v31 = vcombine.low %v7144_v20, %v7158_v21 }
 0x2e9   :  { %v7166_v39 = vcombine.high %v7144_v20, %v7158_v21  ;;  %v19516_v20 = vld [vmem:[#allocation5 + $0x7a0] ss:$392 sps:$4 sm:$0xff]   ;;  %v19519_v21 = vld [vmem:[#allocation5 + $0xab0] ss:$392 sps:$4 sm:$0xff]  }
 0x2ea   :  { %v8250_v40 = vadd.f32 %v8249_v32, %v6953_v25  ;;  %v7161_v30 = vcombine.low %v7116_v18, %v7130_v19  ;;  %v19498_v32 = vld [vmem:[#allocation5 + $0x178] ss:$392 sps:$4 sm:$0xff]   ;;  %v7162_v38 = vcombine.high %v7116_v18, %v7130_v19  ;;  %v7208_v43 = vrot.slane %v7165_v31, %v19613_v9 }
 0x2eb   :  { %v7222_v51 = vrot.slane %v7166_v39, %v19613_v9  ;;  %v19513_v18 = vld [vmem:[#allocation5 + $0x490] ss:$392 sps:$4 sm:$0xff]   ;;  %v7423_v33 = vrot.slane %v19519_v21, %v19613_v9  ;;  %v19512_v39 = vld [vmem:[#allocation5 + $0x184] ss:$392 sps:$4 sm:$0xff]  }
 0x2ec   :  { %v8251_v44 = vadd.f32 %v8250_v40, %v6957_v29  ;;  %v7227_v40 = vcombine.low %v7187_v27, %v7215_v28  ;;  %v7180_v42 = vrot.slane %v7161_v30, %v19613_v9  ;;  %v7194_v50 = vrot.slane %v7162_v38, %v19613_v9 }
 0x2ed   :  { %v7395_v30 = vrot.slane %v19513_v18, %v19613_v9 }
 0x2ee   :  { %v8252_v52 = vadd.f32 %v8251_v44, %v6954_v37  ;;  %v7245_v44 = vrot.slane %v19498_v32, %v19613_v9  ;;  %v7225_v58 = vcombine.low %v7180_v42, %v7208_v43  ;;  %v7229_v62 = vcombine.low %v7194_v50, %v7222_v51 }
 0x2ef   :  { %v7226_v6 = vcombine.high %v7180_v42, %v7208_v43  ;;  %v7230_v11 = vcombine.high %v7194_v50, %v7222_v51  ;;  %v7409_v32 = vrot.slane %v19516_v20, %v19613_v9  ;;  %v19521_v43 = vld [vmem:[#allocation5 + $0xab4] ss:$392 sps:$4 sm:$0xff]  }
 0x2f0   :  { %v8253_v56 = vadd.f32 %v8252_v52, %v6958_v41  ;;  %v7228_v52 = vcombine.high %v7187_v27, %v7215_v28  ;;  %v7295_v59 = vcombine.low %v7245_v44, %v7259_v45  ;;  %v7296_v63 = vcombine.high %v7245_v44, %v7259_v45 }
 0x2f1   :  { %v7435_v45 = vcombine.low %v7409_v32, %v7423_v33 }
 0x2f2   :  { %v8254_v0 = vadd.f32 %v8253_v56, %v7087_v49  ;;  %v19506_v56 = vld [vmem:[#allocation5 + $0x79c] ss:$392 sps:$4 sm:$0xff]   ;;  %v7309_v7 = vrot.slane %v7295_v59, %v19613_v9  ;;  %v7323_v12 = vrot.slane %v7296_v63, %v19613_v9 }
 0x2f3   :  { %v7280_v4 = vrot.slane %v19506_v56, %v19613_v9 }
 0x2f4   :  { %v8255_v5 = vadd.f32 %v8254_v0, %v7091_v55  ;;  %v19503_v55 = vld [vmem:[#allocation5 + $0x48c] ss:$392 sps:$4 sm:$0xff]   ;;  %v7300_v0 = vcombine.high %v7273_v47, %v7287_v48  ;;  %v7359_v19 = vcombine.low %v7309_v7, %v7337_v8  ;;  %v7360_v31 = vcombine.high %v7309_v7, %v7337_v8 }
 0x2f6   :  { %v8256_v13 = vadd.f32 %v8255_v5, %v7088_v61  ;;  %v7294_v5 = vrot.slane %v19509_v57, %v19613_v9  ;;  %v7473_v57 = vrot.slane %v7435_v45, %v19613_v9 }
 0x2f8   :  { %v8257_v17 = vadd.f32 %v8256_v13, %v7092_v3  ;;  %v7266_v3 = vrot.slane %v19503_v55, %v19613_v9  ;;  %v7351_v13 = vrot.slane %v7300_v0, %v19613_v9  ;;  %v7301_v16 = vcombine.low %v7280_v4, %v7294_v5 }
 0x2f9   :  { %v7302_v24 = vcombine.high %v7280_v4, %v7294_v5  ;;  %v7430_v55 = vrot.slane %v19521_v43, %v19613_v9 }
 0x2fa   :  { %v8258_v25 = vadd.f32 %v8257_v17, %v7089_v10  ;;  %v7297_v15 = vcombine.low %v7252_v2, %v7266_v3  ;;  %v19510_v17 = vld [vmem:[#allocation5 + $0x180] ss:$392 sps:$4 sm:$0xff]   ;;  %v7298_v23 = vcombine.high %v7252_v2, %v7266_v3  ;;  %v7344_v28 = vrot.slane %v7301_v16, %v19613_v9 }
 0x2fb   :  { %v7358_v36 = vrot.slane %v7302_v24, %v19613_v9 }
 0x2fc   :  { %v8259_v29 = vadd.f32 %v8258_v25, %v7093_v14  ;;  %v7363_v25 = vcombine.low %v7323_v12, %v7351_v13  ;;  %v7316_v27 = vrot.slane %v7297_v15, %v19613_v9  ;;  %v7330_v35 = vrot.slane %v7298_v23, %v19613_v9 }
 0x2fe   :  { %v8260_v37 = vadd.f32 %v8259_v29, %v7090_v22  ;;  %v7381_v29 = vrot.slane %v19510_v17, %v19613_v9  ;;  %v7361_v42 = vcombine.low %v7316_v27, %v7344_v28  ;;  %v7365_v47 = vcombine.low %v7330_v35, %v7358_v36 }
 0x2ff   :  { %v7362_v51 = vcombine.high %v7316_v27, %v7344_v28  ;;  %v7366_v59 = vcombine.high %v7330_v35, %v7358_v36  ;;  %v19579_v27 = vmov 0  }
 0x300   :  { %v8261_v41 = vadd.f32 %v8260_v37, %v7094_v26  ;;  %v7364_v37 = vcombine.high %v7323_v12, %v7351_v13  ;;  %v7431_v44 = vcombine.low %v7381_v29, %v7395_v30  ;;  %v7432_v48 = vcombine.high %v7381_v29, %v7395_v30  ;;  %18933 = vset.pattern.permute.xlu0 %v19579_v27 }
 0x301   :  { %v18891_v30 = vstv %s20417_s0  ;;  %s19548_s0 = scalar_lea.vmem %s18915_s4, 128 }
 0x302   :  { %v8262_v49 = vadd.f32 %v8261_v41, %v7223_v34  ;;  %v19518_v41 = vld [vmem:[#allocation5 + $0x7a4] ss:$392 sps:$4 sm:$0xff]   ;;  %v7445_v56 = vrot.slane %v7431_v44, %v19613_v9  ;;  %v7459_v60 = vrot.slane %v7432_v48, %v19613_v9  ;;  %p19549_p8 = scmp.ne.s32.totalorder %s18915_s4, %s19548_s0  ;;  %p19554_p10 = scmp.lt.s32.totalorder %s19548_s0, %s19548_s0 }
 0x304   :  { %v8263_v54 = vadd.f32 %v8262_v49, %v7227_v40  ;;  %v19515_v40 = vld [vmem:[#allocation5 + $0x494] ss:$392 sps:$4 sm:$0xff]   ;;  %v7436_v49 = vcombine.high %v7409_v32, %v7423_v33  ;;  %v18894_v32 = vstv %s20418_s1  ;;  %p19555_p11 = por %p19554_p10, %p19553_p9 }
 0x305   :  { %v7402_v53 = vrot.slane %v19515_v40, %v19613_v9 }
 0x306   :  { %v8264_v61 = vadd.f32 %v8263_v54, %v7224_v46  ;;  %v7416_v54 = vrot.slane %v19518_v41, %v19613_v9  ;;  %p19556_p12 = pnand %p19555_p11, %p19549_p8 }
 0x308   :  { %v8265_v1 = vadd.f32 %v8264_v61, %v7228_v52  ;;  %v7388_v52 = vrot.slane %v19512_v39, %v19613_v9  ;;  %v7487_v61 = vrot.slane %v7436_v49, %v19613_v9  ;;  %v7437_v0 = vcombine.low %v7416_v54, %v7430_v55 }
 0x309   :  { %v7438_v4 = vcombine.high %v7416_v54, %v7430_v55 }
 0x30a   :  { %v8266_v10 = vadd.f32 %v8265_v1, %v7225_v58  ;;  %v7433_v63 = vcombine.low %v7388_v52, %v7402_v53  ;;  %v7495_v1 = vcombine.low %v7445_v56, %v7473_v57  ;;  %v7434_v3 = vcombine.high %v7388_v52, %v7402_v53 }
 0x30b   :  { %v7499_v5 = vcombine.low %v7459_v60, %v7487_v61  ;;  %v7480_v8 = vrot.slane %v7437_v0, %v19613_v9  ;;  %v7494_v13 = vrot.slane %v7438_v4, %v19613_v9 }
 0x30c   :  { %v8267_v14 = vadd.f32 %v8266_v10, %v7229_v62  ;;  %v7452_v7 = vrot.slane %v7433_v63, %v19613_v9  ;;  %v7496_v10 = vcombine.high %v7445_v56, %v7473_v57  ;;  %v7466_v12 = vrot.slane %v7434_v3, %v19613_v9 }
 0x30e   :  { %v8268_v22 = vadd.f32 %v8267_v14, %v7226_v6  ;;  %v7500_v14 = vcombine.high %v7459_v60, %v7487_v61  ;;  %v7497_v16 = vcombine.low %v7452_v7, %v7480_v8  ;;  %v7501_v18 = vcombine.low %v7466_v12, %v7494_v13 }
 0x30f   :  { %v7498_v20 = vcombine.high %v7452_v7, %v7480_v8 }
 0x310   :  { %v8269_v26 = vadd.f32 %v8268_v22, %v7230_v11  ;;  %v7502_v22 = vcombine.high %v7466_v12, %v7494_v13 }
 0x312   :  { %v8270_v34 = vadd.f32 %v8269_v26, %v7359_v19  ;;  %v19578_v26 = vmov 0.0  }
 0x313   :  { %46 = vst.msk [vmem:[#allocation2] sm:$0xff] %vm45_vm0, %v19578_v26 }
 0x314   :  { %v8271_v38 = vadd.f32 %v8270_v34, %v7363_v25 }
 0x316   :  { %v8272_v46 = vadd.f32 %v8271_v38, %v7360_v31 }
 0x318   :  { %v8273_v50 = vadd.f32 %v8272_v46, %v7364_v37 }
 0x31a   :  { %v8274_v58 = vadd.f32 %v8273_v50, %v7361_v42  ;;  %v54_v28 = vld [vmem:[#allocation2] sm:$0xff] }
 0x31c   :  { %v8275_v62 = vadd.f32 %v8274_v58, %v7365_v47 }
 0x31e   :  { %v8276_v2 = vadd.f32 %v8275_v62, %v7362_v51 }
 0x320   :  { %v8277_v6 = vadd.f32 %v8276_v2, %v7366_v59 }
 0x322   :  { %v8278_v11 = vadd.f32 %v8277_v6, %v7495_v1 }
 0x324   :  { %v8279_v15 = vadd.f32 %v8278_v11, %v7499_v5 }
 0x326   :  { %v8280_v17 = vadd.f32 %v8279_v15, %v7496_v10 }
 0x328   :  { %v8281_v19 = vadd.f32 %v8280_v17, %v7500_v14 }
 0x32a   :  { %v8282_v21 = vadd.f32 %v8281_v19, %v7497_v16 }
 0x32c   :  { %v8283_v23 = vadd.f32 %v8282_v21, %v7501_v18 }
 0x32e   :  { %v8284_v24 = vadd.f32 %v8283_v23, %v7498_v20 }
 0x330   :  { %v8285_v25 = vadd.f32 %v8284_v24, %v7502_v22 }
 0x332   :  { %8286 = vadd.xlane.f32.xlu0 %v8285_v25 }
 0x3bf   :  { %v8287_v9 = vpop.xlane.xlu0 %8286 }
 0x3c0   :  { %v8288_v29 = vadd.f32 %v8287_v9, %v54_v28 }
 0x3c2   :  { %8290 = vst.msk [vmem:[#allocation2] sm:$0xff] %vm45_vm0, %v8288_v29 }
 0x3c9   :  { %v18889_v31 = vld [vmem:[#allocation2] sm:$0xff] }
 0x3ca   :  { %v18892_v33 = vmul.f32 %v18891_v30, %v18889_v31 }
 0x3cc   :  { %v18895_v34 = vadd.f32 %v18894_v32, %v18892_v33 }
 0x3ce   :  { %v18925_v35 = vmul.f32 -1.442695, %v18895_v34 }
 0x3d0   :  { %19522 = vpow2.f32 %v18925_v35 }
 0x3da   :  { %v19523_v36 = vpop.eup %19522 }
 0x3db   :  { %v18899_v37 = vadd.f32 1.0, %v19523_v36 }
 0x3dd   :  { %19524 = vrcp.f32 %v18899_v37 }
 0x3e7   :  { %v19525_v38 = vpop.eup %19524 }
 0x3e8   :  { %18904 = vperm.xlu0 %18933, %v19525_v38  }
 0x467   :  { %v18905_v39 = vpop.permute.xlu0 %18904 }
 0x468   :  { %18907 = vst [vmem:[#allocation8] sm:$0xff] %v18905_v39 }
 0x469   :  { %19559 = shalt.err (!%p19556_p12)
}
 0x46a   :  { %s19560_s6 = scalar_lea.hbm %s20420_s3, 128 }
 0x46b   :  { %p19561_p13 = scmp.ne.s32.totalorder %s20420_s3, %s19560_s6  ;;  %p19564_p0 = scmp.lt.u32.totalorder %s19560_s6, %s20420_s3 }
 0x46d   :  { %p19566_p1 = pnand %p19564_p0, %p19561_p13 }
 0x46f   :  { %19569 = shalt.err (!%p19566_p1)
}
 0x470   :  { %18917 = dma.vmem_to_hbm [thread:$0]  %s18915_s4, 128, %s20420_s3, [#allocation7]  }
 0x471   :  { %19572 = dma.done.wait [#allocation7], 128  }
 0x472   :  { %19573 = vsyncadd [#allocation7], 4294967168 }
 0x473   :  { %18921 = vsyncpa [#allocation6], 1 }
 0x474   :  { %18922 = vsyncpa [#allocation7], 1 }

</bundles_post_ra>
